<compile_context>
chip_gen: v7x
topology: tpu7x:2x2x1
jax: 0.10.0
libtpu: 0.0.40
codegen_flags: <defaults>
</compile_context>

<pallas_src>
import functools

import jax
import jax.numpy as jnp
import numpy as np
from jax.experimental import pallas as pl
from jax.experimental.pallas import tpu as pltpu

LANE = 128  # one lane tile; all packed weight/bias columns live in a single tile


# ----------------------------- Pallas kernel --------------------------------

def aegru_kernel(
    # inputs (all VMEM refs)
    x2d_ref,                       # (T*Bp, I)   bf16, time-major rows
    e0_wih_ref,                    # (I, 128)    bf16  cols [r, z, n, 0]
    e0_whh_ref,                    # (H, 128)    bf16  cols [r, z, n, 0]
    e0_bgi_ref,                    # (1, 128)    f32   [bir+bhr, biz+bhz, bin, 0]
    e0_bhn_ref,                    # (1, H)      f32   b_hh_n
    e1_w_ref,                      # (2H, 128)   bf16  fused [r+, z+, gi_n, gh_n]
    e1_b_ref,                      # (1, 128)    f32   [bir+bhr, biz+bhz, bin, bhn]
    d0_whh_ref,                    # (H, 128)    bf16  cols [r, z, n, 0]
    d0_b_ref,                      # (1, 128)    f32   [bir+bhr, biz+bhz, bhn, 0]
    d0_bin_ref,                    # (1, H)      f32   b_ih_n
    d1_w_ref,                      # (2H, 128)   bf16  fused
    d1_b_ref,                      # (1, 128)    f32
    tdd_w_ref,                     # (H, 128)    bf16  first O cols valid
    tdd_b_ref,                     # (1, 128)    f32   first O cols valid
    # outputs
    dec_o_ref,                     # (out_len*Bp, 128) f32, lane-dense
    dec_h_ref,                     # (2, Bp, H)        f32
    # scratch
    gi0_scr,                       # (T*Bp, 128) f32 — staged encoder layer-0 gi
    h1_scr,                        # (out_len*Bp, H) f32 — staged decoder h1
    *, hidden, seq_len, out_len, batch_pad,
):
    H = hidden
    Bp = batch_pad
    f32 = jnp.float32
    bf16 = jnp.bfloat16

    def mm(a, w_ref):
        # bf16 operands on the MXU, f32 accumulation; weight read at the call site
        # so its live range is the single matmul, not the whole kernel.
        return jnp.dot(a.astype(bf16), w_ref[...], preferred_element_type=f32)

    # ---- encoder layer-0 input projection, batched & staged in VMEM scratch ----
    # gi0 columns: [gi_r + b_ir + b_hr, gi_z + b_iz + b_hz, gi_n + b_in, 0]
    gi0_scr[...] = (
        jnp.dot(x2d_ref[...], e0_wih_ref[...], preferred_element_type=f32)
        + e0_bgi_ref[...]
    )

    def cell_l0(gi, gh, bhn, h):
        # layer-0 GRU cell; gi already carries all input-side (and folded r/z) biases
        r = jax.nn.sigmoid(gi[:, 0:H] + gh[:, 0:H])
        z = jax.nn.sigmoid(gi[:, H:2 * H] + gh[:, H:2 * H])
        n = jnp.tanh(gi[:, 2 * H:3 * H] + r * (gh[:, 2 * H:3 * H] + bhn))
        return (1.0 - z) * n + z * h

    def cell_l1(g, b, h):
        # fused layer-1 cell; g columns = [gi_r+gh_r, gi_z+gh_z, gi_n, gh_n]
        t = g + b
        r = jax.nn.sigmoid(t[:, 0:H])
        z = jax.nn.sigmoid(t[:, H:2 * H])
        n = jnp.tanh(t[:, 2 * H:3 * H] + r * t[:, 3 * H:4 * H])
        return (1.0 - z) * n + z * h

    # AEGRU.forward always calls the encoder with input_h=None -> zero init.
    h0 = jnp.zeros((Bp, H), f32)
    h1 = jnp.zeros((Bp, H), f32)

    # -------------------------------- encoder --------------------------------
    for t in range(seq_len):                       # static trip count, unrolled
        gi0 = gi0_scr[t * Bp:(t + 1) * Bp, :]      # sublane-tile aligned load
        gh0 = mm(h0, e0_whh_ref)
        h0 = cell_l0(gi0, gh0, e0_bhn_ref[...], h0)
        g1 = mm(jnp.concatenate([h0, h1], axis=1), e1_w_ref)   # fused ih+hh matmul
        h1 = cell_l1(g1, e1_b_ref[...], h1)

    # -------------------------------- decoder --------------------------------
    # decoder input is torch.zeros -> layer-0 input projection collapses into biases
    for t in range(out_len):
        t0 = mm(h0, d0_whh_ref) + d0_b_ref[...]
        r = jax.nn.sigmoid(t0[:, 0:H])
        z = jax.nn.sigmoid(t0[:, H:2 * H])
        n = jnp.tanh(d0_bin_ref[...] + r * t0[:, 2 * H:3 * H])
        h0 = (1.0 - z) * n + z * h0
        g1 = mm(jnp.concatenate([h0, h1], axis=1), d1_w_ref)   # fused ih+hh matmul
        h1 = cell_l1(g1, d1_b_ref[...], h1)
        h1_scr[t * Bp:(t + 1) * Bp, :] = h1        # stage for batched TDD

    # time-distributed linear: one batched matmul, lane-dense (128-wide) store.
    dec_o_ref[...] = (
        jnp.dot(h1_scr[...].astype(bf16), tdd_w_ref[...], preferred_element_type=f32)
        + tdd_b_ref[...]
    )
    dec_h_ref[0, :, :] = h0
    dec_h_ref[1, :, :] = h1


# ------------------------------- wrapper -------------------------------------

def aegru_forward(x, packed, *, hidden, out_len, out_size):
    """x: (B, T, input_size) f32. Returns (dec_o (B,out_len,O), dec_h (2,B,H))."""
    B, T, I = x.shape
    Bp = ((B + 7) // 8) * 8                       # pad batch to a full sublane tile

    x_pad = jnp.zeros((Bp, T, I), jnp.float32).at[:B].set(x)
    # time-major rows: row t*Bp + b == x_pad[b, t, :]
    x2d = jnp.transpose(x_pad, (1, 0, 2)).reshape(T * Bp, I).astype(jnp.bfloat16)

    kernel = functools.partial(aegru_kernel, hidden=hidden, seq_len=T,
                               out_len=out_len, batch_pad=Bp)
    n_in = 1 + len(packed)

    dec_o2d, dec_h = pl.pallas_call(
        kernel,
        out_shape=(
            jax.ShapeDtypeStruct((out_len * Bp, LANE), jnp.float32),
            jax.ShapeDtypeStruct((2, Bp, hidden), jnp.float32),
        ),
        in_specs=[pl.BlockSpec(memory_space=pltpu.MemorySpace.VMEM)] * n_in,
        out_specs=(
            pl.BlockSpec(memory_space=pltpu.MemorySpace.VMEM),
            pl.BlockSpec(memory_space=pltpu.MemorySpace.VMEM),
        ),
        scratch_shapes=[
            pltpu.VMEM((T * Bp, LANE), jnp.float32),         # gi0 staging
            pltpu.VMEM((out_len * Bp, hidden), jnp.float32), # h1 staging for TDD
        ],
        compiler_params=pltpu.CompilerParams(vmem_limit_bytes=32 * 1024 * 1024),
    )(x2d, *packed)

    # slice padded lanes / padded batch back out (free XLA plumbing)
    dec_o = dec_o2d.reshape(out_len, Bp, LANE)[:, :B, :out_size].transpose(1, 0, 2)
    dec_h = dec_h[:, :B, :]
    return dec_o, dec_h


# --------------------------- parameter construction --------------------------

def make_params(key, input_size, hidden, out_size):
    """PyTorch-layout synthetic params, uniform(-1/sqrt(H), 1/sqrt(H))."""
    k = 1.0 / np.sqrt(hidden)
    keys = iter(jax.random.split(key, 24))

    def u(shape):
        return jax.random.uniform(next(keys), shape, jnp.float32, -k, k)

    def gru_layer(in_sz):
        return (u((3 * hidden, in_sz)),   # W_ih
                u((3 * hidden, hidden)),  # W_hh
                u((3 * hidden,)),         # b_ih
                u((3 * hidden,)))         # b_hh

    layers = (gru_layer(input_size),  # encoder layer 0
              gru_layer(hidden),      # encoder layer 1
              gru_layer(hidden),      # decoder layer 0 (input_size = hidden)
              gru_layer(hidden))      # decoder layer 1
    tdd = (u((out_size, hidden)), u((out_size,)))
    return layers, tdd


def pack_params(layers, tdd, hidden):
    """Kernel layout: compact gate packing (all gates of one matmul inside a single
    128-lane tile), fused [W_ih | W_hh] weights for layer 1, biases folded into
    per-layer (1,128) lane tiles, matmul weights bf16."""
    H = hidden
    assert 4 * H <= LANE, "fused layer-1 packing needs 4*hidden <= 128"
    e0, e1, d0, d1 = layers

    def gate_t(w, g):                 # (3H, in) -> (in, H)
        return w[g * H:(g + 1) * H, :].T

    def bgate(b, g):
        return b[g * H:(g + 1) * H]

    def pack_cols(w):                 # (3H, in) -> (in, LANE) bf16, cols [r, z, n, 0]
        out = jnp.zeros((w.shape[1], LANE), jnp.float32)
        for g in range(3):
            out = out.at[:, g * H:(g + 1) * H].set(gate_t(w, g))
        return out.astype(jnp.bfloat16)

    def pack_fused(w_ih, w_hh):       # -> (2H, LANE) bf16, cols [r+, z+, gi_n, gh_n]
        out = jnp.zeros((2 * H, LANE), jnp.float32)
        for g in range(2):            # r, z gates: ih + hh summed by the matmul
            out = out.at[:H, g * H:(g + 1) * H].set(gate_t(w_ih, g))
            out = out.at[H:, g * H:(g + 1) * H].set(gate_t(w_hh, g))
        out = out.at[:H, 2 * H:3 * H].set(gate_t(w_ih, 2))   # gi_n (separate)
        out = out.at[H:, 3 * H:4 * H].set(gate_t(w_hh, 2))   # gh_n (separate)
        return out.astype(jnp.bfloat16)

    def bias_tile(parts):             # list of (H,) -> (1, LANE) f32
        out = jnp.zeros((1, LANE), jnp.float32)
        for g, p in enumerate(parts):
            out = out.at[0, g * H:(g + 1) * H].set(p)
        return out

    packed = []

    # encoder layer 0
    w_ih, w_hh, b_ih, b_hh = e0
    packed += [
        pack_cols(w_ih), pack_cols(w_hh),
        bias_tile([bgate(b_ih, 0) + bgate(b_hh, 0),
                   bgate(b_ih, 1) + bgate(b_hh, 1),
                   bgate(b_ih, 2)]),                 # folded into gi0 projection
        bgate(b_hh, 2).reshape(1, H),                # b_hh_n (inside r * (...))
    ]
    # encoder layer 1 (fused)
    w_ih, w_hh, b_ih, b_hh = e1
    packed += [
        pack_fused(w_ih, w_hh),
        bias_tile([bgate(b_ih, 0) + bgate(b_hh, 0),
                   bgate(b_ih, 1) + bgate(b_hh, 1),
                   bgate(b_ih, 2), bgate(b_hh, 2)]),
    ]
    # decoder layer 0 (zero input -> no W_ih; its biases collapse into these)
    w_ih, w_hh, b_ih, b_hh = d0
    packed += [
        pack_cols(w_hh),
        bias_tile([bgate(b_ih, 0) + bgate(b_hh, 0),
                   bgate(b_ih, 1) + bgate(b_hh, 1),
                   bgate(b_hh, 2)]),
        bgate(b_ih, 2).reshape(1, H),                # b_ih_n (outside r * (...))
    ]
    # decoder layer 1 (fused)
    w_ih, w_hh, b_ih, b_hh = d1
    packed += [
        pack_fused(w_ih, w_hh),
        bias_tile([bgate(b_ih, 0) + bgate(b_hh, 0),
                   bgate(b_ih, 1) + bgate(b_hh, 1),
                   bgate(b_ih, 2), bgate(b_hh, 2)]),
    ]
    # time-distributed linear, zero-padded to a lane-dense 128-wide output
    tdd_w, tdd_b = tdd
    O = tdd_w.shape[0]
    packed.append(jnp.zeros((H, LANE), jnp.float32)
                  .at[:, :O].set(tdd_w.T).astype(jnp.bfloat16))
    packed.append(jnp.zeros((1, LANE), jnp.float32).at[0, :O].set(tdd_b))
    return packed


# ------------------------------ pure-JAX reference ---------------------------

def _gru_cell_ref(x, h, w_ih, w_hh, b_ih, b_hh, H):
    gi = x @ w_ih.T + b_ih
    gh = h @ w_hh.T + b_hh
    r = jax.nn.sigmoid(gi[:, :H] + gh[:, :H])
    z = jax.nn.sigmoid(gi[:, H:2 * H] + gh[:, H:2 * H])
    n = jnp.tanh(gi[:, 2 * H:] + r * gh[:, 2 * H:])
    return (1.0 - z) * n + z * h


def aegru_ref(x, layers, tdd, *, hidden, out_len):
    B, T, _ = x.shape
    e0, e1, d0, d1 = layers
    tdd_w, tdd_b = tdd

    h0 = jnp.zeros((B, hidden), jnp.float32)
    h1 = jnp.zeros((B, hidden), jnp.float32)
    for t in range(T):
        h0 = _gru_cell_ref(x[:, t, :], h0, *e0, hidden)
        h1 = _gru_cell_ref(h0, h1, *e1, hidden)

    zeros_in = jnp.zeros((B, hidden), jnp.float32)
    outs = []
    for _ in range(out_len):
        h0 = _gru_cell_ref(zeros_in, h0, *d0, hidden)
        h1 = _gru_cell_ref(h0, h1, *d1, hidden)
        outs.append(h1 @ tdd_w.T + tdd_b)
    dec_o = jnp.stack(outs, axis=1)            # (B, out_len, O)
    dec_h = jnp.stack([h0, h1], axis=0)        # (2, B, H)
    return dec_o, dec_h


# ----------------------------------- main ------------------------------------

if __name__ == "__main__":
    B, T = 2, 8
    input_size, hidden_size, output_size, output_len = 4, 32, 4, 8

    key = jax.random.PRNGKey(0)
    kx, kp = jax.random.split(key)
    x = jax.random.normal(kx, (B, T, input_size), jnp.float32)
    layers, tdd = make_params(kp, input_size, hidden_size, output_size)
    packed = pack_params(layers, tdd, hidden_size)

    dec_o, dec_h = aegru_forward(x, packed, hidden=hidden_size,
                                 out_len=output_len, out_size=output_size)
    jax.block_until_ready((dec_o, dec_h))

    ref_o, ref_h = aegru_ref(x, layers, tdd, hidden=hidden_size, out_len=output_len)
    # bf16 MXU operands with f32 accumulation over 16 serial steps -> 2e-2 tolerance.
    np.testing.assert_allclose(np.asarray(dec_o), np.asarray(ref_o),
                               rtol=2e-2, atol=2e-2)
    np.testing.assert_allclose(np.asarray(dec_h), np.asarray(ref_h),
                               rtol=2e-2, atol=2e-2)

    assert dec_o.shape == (B, output_len, output_size)
    assert dec_h.shape == (2, B, hidden_size)
    print("KERNEL_OK")
</pallas_src>

<mosaic_0001>
module attributes {stable_mosaic.version = 11 : i64} {
  func.func @aegru_kernel(%arg0: memref<64x4xbf16, #tpu.memory_space<vmem>>, %arg1: memref<4x128xbf16, #tpu.memory_space<vmem>>, %arg2: memref<32x128xbf16, #tpu.memory_space<vmem>>, %arg3: memref<1x128xf32, #tpu.memory_space<vmem>>, %arg4: memref<1x32xf32, #tpu.memory_space<vmem>>, %arg5: memref<64x128xbf16, #tpu.memory_space<vmem>>, %arg6: memref<1x128xf32, #tpu.memory_space<vmem>>, %arg7: memref<32x128xbf16, #tpu.memory_space<vmem>>, %arg8: memref<1x128xf32, #tpu.memory_space<vmem>>, %arg9: memref<1x32xf32, #tpu.memory_space<vmem>>, %arg10: memref<64x128xbf16, #tpu.memory_space<vmem>>, %arg11: memref<1x128xf32, #tpu.memory_space<vmem>>, %arg12: memref<32x128xbf16, #tpu.memory_space<vmem>>, %arg13: memref<1x128xf32, #tpu.memory_space<vmem>>, %arg14: memref<64x128xf32, #tpu.memory_space<vmem>>, %arg15: memref<2x8x32xf32, #tpu.memory_space<vmem>>, %arg16: memref<64x128xf32, #tpu.memory_space<vmem>>, %arg17: memref<64x32xf32, #tpu.memory_space<vmem>>) attributes {dimension_semantics = [], scalar_prefetch = 0 : i64, scratch_operands = 2 : i64, tpu.core_type = #tpu.core_type<tc>} {
    %c0 = arith.constant 0 : index
    %c0_0 = arith.constant 0 : index
    %0 = vector.load %arg0[%c0, %c0_0] : memref<64x4xbf16, #tpu.memory_space<vmem>>, vector<64x4xbf16>
    %c0_1 = arith.constant 0 : index
    %c0_2 = arith.constant 0 : index
    %1 = vector.load %arg1[%c0_1, %c0_2] : memref<4x128xbf16, #tpu.memory_space<vmem>>, vector<4x128xbf16>
    %cst = arith.constant dense<0.000000e+00> : vector<64x128xf32>
    %2 = tpu.matmul %0, %1, %cst {dimension_numbers = #tpu.dot_dimension_numbers<[1], [0], [0], [1], [0, 0, 1, 1], [], []>} : vector<64x4xbf16>, vector<4x128xbf16>, vector<64x128xf32> -> vector<64x128xf32>
    %c0_3 = arith.constant 0 : index
    %c0_4 = arith.constant 0 : index
    %3 = vector.load %arg3[%c0_3, %c0_4] : memref<1x128xf32, #tpu.memory_space<vmem>>, vector<1x128xf32>
    %4 = vector.broadcast %3 : vector<1x128xf32> to vector<64x128xf32>
    %5 = arith.addf %2, %4 : vector<64x128xf32>
    %c0_5 = arith.constant 0 : index
    %c0_6 = arith.constant 0 : index
    %6 = vector.load %arg16[%c0_5, %c0_6] : memref<64x128xf32, #tpu.memory_space<vmem>>, vector<64x128xf32>
    tpu.vector_store %arg16[%c0_5, %c0_6], %5 {strides = array<i32>} : memref<64x128xf32, #tpu.memory_space<vmem>>, vector<64x128xf32>,
    %cst_7 = arith.constant 0.000000e+00 : f32
    %7 = vector.broadcast %cst_7 : f32 to vector<8x32xf32>
    %cst_8 = arith.constant 0.000000e+00 : f32
    %8 = vector.broadcast %cst_8 : f32 to vector<8x32xf32>
    %c0_9 = arith.constant 0 : index
    %c0_10 = arith.constant 0 : index
    %9 = vector.load %arg16[%c0_9, %c0_10] : memref<64x128xf32, #tpu.memory_space<vmem>>, vector<8x128xf32>
    %10 = arith.truncf %7 : vector<8x32xf32> to vector<8x32xbf16>
    %c0_11 = arith.constant 0 : index
    %c0_12 = arith.constant 0 : index
    %11 = vector.load %arg2[%c0_11, %c0_12] : memref<32x128xbf16, #tpu.memory_space<vmem>>, vector<32x128xbf16>
    %cst_13 = arith.constant dense<0.000000e+00> : vector<8x128xf32>
    %12 = tpu.matmul %10, %11, %cst_13 {dimension_numbers = #tpu.dot_dimension_numbers<[1], [0], [0], [1], [0, 0, 1, 1], [], []>} : vector<8x32xbf16>, vector<32x128xbf16>, vector<8x128xf32> -> vector<8x128xf32>
    %c0_14 = arith.constant 0 : index
    %c0_15 = arith.constant 0 : index
    %13 = vector.load %arg4[%c0_14, %c0_15] : memref<1x32xf32, #tpu.memory_space<vmem>>, vector<1x32xf32>
    %14 = vector.extract_strided_slice %9 {offsets = [0, 0], sizes = [8, 32], strides = [1, 1]} : vector<8x128xf32> to vector<8x32xf32>
    %15 = vector.extract_strided_slice %12 {offsets = [0, 0], sizes = [8, 32], strides = [1, 1]} : vector<8x128xf32> to vector<8x32xf32>
    %16 = arith.addf %14, %15 : vector<8x32xf32>
    %17 = arith.negf %16 : vector<8x32xf32>
    %18 = math.exp %17 : vector<8x32xf32>
    %cst_16 = arith.constant 1.000000e+00 : f32
    %19 = vector.broadcast %cst_16 : f32 to vector<8x32xf32>
    %20 = arith.addf %19, %18 : vector<8x32xf32>
    %21 = arith.divf %19, %20 : vector<8x32xf32>
    %22 = vector.extract_strided_slice %9 {offsets = [0, 32], sizes = [8, 32], strides = [1, 1]} : vector<8x128xf32> to vector<8x32xf32>
    %23 = vector.extract_strided_slice %12 {offsets = [0, 32], sizes = [8, 32], strides = [1, 1]} : vector<8x128xf32> to vector<8x32xf32>
    %24 = arith.addf %22, %23 : vector<8x32xf32>
    %25 = arith.negf %24 : vector<8x32xf32>
    %26 = math.exp %25 : vector<8x32xf32>
    %cst_17 = arith.constant 1.000000e+00 : f32
    %27 = vector.broadcast %cst_17 : f32 to vector<8x32xf32>
    %28 = arith.addf %27, %26 : vector<8x32xf32>
    %29 = arith.divf %27, %28 : vector<8x32xf32>
    %30 = vector.extract_strided_slice %9 {offsets = [0, 64], sizes = [8, 32], strides = [1, 1]} : vector<8x128xf32> to vector<8x32xf32>
    %31 = vector.extract_strided_slice %12 {offsets = [0, 64], sizes = [8, 32], strides = [1, 1]} : vector<8x128xf32> to vector<8x32xf32>
    %32 = vector.broadcast %13 : vector<1x32xf32> to vector<8x32xf32>
    %33 = arith.addf %31, %32 : vector<8x32xf32>
    %34 = arith.mulf %21, %33 : vector<8x32xf32>
    %35 = arith.addf %30, %34 : vector<8x32xf32>
    %36 = math.tanh %35 : vector<8x32xf32>
    %cst_18 = arith.constant 1.000000e+00 : f32
    %37 = vector.broadcast %cst_18 : f32 to vector<8x32xf32>
    %38 = arith.subf %37, %29 : vector<8x32xf32>
    %39 = arith.mulf %38, %36 : vector<8x32xf32>
    %40 = arith.mulf %29, %7 : vector<8x32xf32>
    %41 = arith.addf %39, %40 : vector<8x32xf32>
    %42 = tpu.concatenate %41, %8 in 1 : vector<8x32xf32>, vector<8x32xf32> -> vector<8x64xf32>
    %43 = arith.truncf %42 : vector<8x64xf32> to vector<8x64xbf16>
    %c0_19 = arith.constant 0 : index
    %c0_20 = arith.constant 0 : index
    %44 = vector.load %arg5[%c0_19, %c0_20] : memref<64x128xbf16, #tpu.memory_space<vmem>>, vector<64x128xbf16>
    %cst_21 = arith.constant dense<0.000000e+00> : vector<8x128xf32>
    %45 = tpu.matmul %43, %44, %cst_21 {dimension_numbers = #tpu.dot_dimension_numbers<[1], [0], [0], [1], [0, 0, 1, 1], [], []>} : vector<8x64xbf16>, vector<64x128xbf16>, vector<8x128xf32> -> vector<8x128xf32>
    %c0_22 = arith.constant 0 : index
    %c0_23 = arith.constant 0 : index
    %46 = vector.load %arg6[%c0_22, %c0_23] : memref<1x128xf32, #tpu.memory_space<vmem>>, vector<1x128xf32>
    %47 = vector.broadcast %46 : vector<1x128xf32> to vector<8x128xf32>
    %48 = arith.addf %45, %47 : vector<8x128xf32>
    %49 = vector.extract_strided_slice %48 {offsets = [0, 0], sizes = [8, 32], strides = [1, 1]} : vector<8x128xf32> to vector<8x32xf32>
    %50 = arith.negf %49 : vector<8x32xf32>
    %51 = math.exp %50 : vector<8x32xf32>
    %cst_24 = arith.constant 1.000000e+00 : f32
    %52 = vector.broadcast %cst_24 : f32 to vector<8x32xf32>
    %53 = arith.addf %52, %51 : vector<8x32xf32>
    %54 = arith.divf %52, %53 : vector<8x32xf32>
    %55 = vector.extract_strided_slice %48 {offsets = [0, 32], sizes = [8, 32], strides = [1, 1]} : vector<8x128xf32> to vector<8x32xf32>
    %56 = arith.negf %55 : vector<8x32xf32>
    %57 = math.exp %56 : vector<8x32xf32>
    %cst_25 = arith.constant 1.000000e+00 : f32
    %58 = vector.broadcast %cst_25 : f32 to vector<8x32xf32>
    %59 = arith.addf %58, %57 : vector<8x32xf32>
    %60 = arith.divf %58, %59 : vector<8x32xf32>
    %61 = vector.extract_strided_slice %48 {offsets = [0, 64], sizes = [8, 32], strides = [1, 1]} : vector<8x128xf32> to vector<8x32xf32>
    %62 = vector.extract_strided_slice %48 {offsets = [0, 96], sizes = [8, 32], strides = [1, 1]} : vector<8x128xf32> to vector<8x32xf32>
    %63 = arith.mulf %54, %62 : vector<8x32xf32>
    %64 = arith.addf %61, %63 : vector<8x32xf32>
    %65 = math.tanh %64 : vector<8x32xf32>
    %cst_26 = arith.constant 1.000000e+00 : f32
    %66 = vector.broadcast %cst_26 : f32 to vector<8x32xf32>
    %67 = arith.subf %66, %60 : vector<8x32xf32>
    %68 = arith.mulf %67, %65 : vector<8x32xf32>
    %69 = arith.mulf %60, %8 : vector<8x32xf32>
    %70 = arith.addf %68, %69 : vector<8x32xf32>
    %c8 = arith.constant 8 : index
    %c0_27 = arith.constant 0 : index
    %71 = vector.load %arg16[%c8, %c0_27] : memref<64x128xf32, #tpu.memory_space<vmem>>, vector<8x128xf32>
    %72 = arith.truncf %41 : vector<8x32xf32> to vector<8x32xbf16>
    %c0_28 = arith.constant 0 : index
    %c0_29 = arith.constant 0 : index
    %73 = vector.load %arg2[%c0_28, %c0_29] : memref<32x128xbf16, #tpu.memory_space<vmem>>, vector<32x128xbf16>
    %cst_30 = arith.constant dense<0.000000e+00> : vector<8x128xf32>
    %74 = tpu.matmul %72, %73, %cst_30 {dimension_numbers = #tpu.dot_dimension_numbers<[1], [0], [0], [1], [0, 0, 1, 1], [], []>} : vector<8x32xbf16>, vector<32x128xbf16>, vector<8x128xf32> -> vector<8x128xf32>
    %c0_31 = arith.constant 0 : index
    %c0_32 = arith.constant 0 : index
    %75 = vector.load %arg4[%c0_31, %c0_32] : memref<1x32xf32, #tpu.memory_space<vmem>>, vector<1x32xf32>
    %76 = vector.extract_strided_slice %71 {offsets = [0, 0], sizes = [8, 32], strides = [1, 1]} : vector<8x128xf32> to vector<8x32xf32>
    %77 = vector.extract_strided_slice %74 {offsets = [0, 0], sizes = [8, 32], strides = [1, 1]} : vector<8x128xf32> to vector<8x32xf32>
    %78 = arith.addf %76, %77 : vector<8x32xf32>
    %79 = arith.negf %78 : vector<8x32xf32>
    %80 = math.exp %79 : vector<8x32xf32>
    %cst_33 = arith.constant 1.000000e+00 : f32
    %81 = vector.broadcast %cst_33 : f32 to vector<8x32xf32>
    %82 = arith.addf %81, %80 : vector<8x32xf32>
    %83 = arith.divf %81, %82 : vector<8x32xf32>
    %84 = vector.extract_strided_slice %71 {offsets = [0, 32], sizes = [8, 32], strides = [1, 1]} : vector<8x128xf32> to vector<8x32xf32>
    %85 = vector.extract_strided_slice %74 {offsets = [0, 32], sizes = [8, 32], strides = [1, 1]} : vector<8x128xf32> to vector<8x32xf32>
    %86 = arith.addf %84, %85 : vector<8x32xf32>
    %87 = arith.negf %86 : vector<8x32xf32>
    %88 = math.exp %87 : vector<8x32xf32>
    %cst_34 = arith.constant 1.000000e+00 : f32
    %89 = vector.broadcast %cst_34 : f32 to vector<8x32xf32>
    %90 = arith.addf %89, %88 : vector<8x32xf32>
    %91 = arith.divf %89, %90 : vector<8x32xf32>
    %92 = vector.extract_strided_slice %71 {offsets = [0, 64], sizes = [8, 32], strides = [1, 1]} : vector<8x128xf32> to vector<8x32xf32>
    %93 = vector.extract_strided_slice %74 {offsets = [0, 64], sizes = [8, 32], strides = [1, 1]} : vector<8x128xf32> to vector<8x32xf32>
    %94 = vector.broadcast %75 : vector<1x32xf32> to vector<8x32xf32>
    %95 = arith.addf %93, %94 : vector<8x32xf32>
    %96 = arith.mulf %83, %95 : vector<8x32xf32>
    %97 = arith.addf %92, %96 : vector<8x32xf32>
    %98 = math.tanh %97 : vector<8x32xf32>
    %cst_35 = arith.constant 1.000000e+00 : f32
    %99 = vector.broadcast %cst_35 : f32 to vector<8x32xf32>
    %100 = arith.subf %99, %91 : vector<8x32xf32>
    %101 = arith.mulf %100, %98 : vector<8x32xf32>
    %102 = arith.mulf %91, %41 : vector<8x32xf32>
    %103 = arith.addf %101, %102 : vector<8x32xf32>
    %104 = tpu.concatenate %103, %70 in 1 : vector<8x32xf32>, vector<8x32xf32> -> vector<8x64xf32>
    %105 = arith.truncf %104 : vector<8x64xf32> to vector<8x64xbf16>
    %c0_36 = arith.constant 0 : index
    %c0_37 = arith.constant 0 : index
    %106 = vector.load %arg5[%c0_36, %c0_37] : memref<64x128xbf16, #tpu.memory_space<vmem>>, vector<64x128xbf16>
    %cst_38 = arith.constant dense<0.000000e+00> : vector<8x128xf32>
    %107 = tpu.matmul %105, %106, %cst_38 {dimension_numbers = #tpu.dot_dimension_numbers<[1], [0], [0], [1], [0, 0, 1, 1], [], []>} : vector<8x64xbf16>, vector<64x128xbf16>, vector<8x128xf32> -> vector<8x128xf32>
    %c0_39 = arith.constant 0 : index
    %c0_40 = arith.constant 0 : index
    %108 = vector.load %arg6[%c0_39, %c0_40] : memref<1x128xf32, #tpu.memory_space<vmem>>, vector<1x128xf32>
    %109 = vector.broadcast %108 : vector<1x128xf32> to vector<8x128xf32>
    %110 = arith.addf %107, %109 : vector<8x128xf32>
    %111 = vector.extract_strided_slice %110 {offsets = [0, 0], sizes = [8, 32], strides = [1, 1]} : vector<8x128xf32> to vector<8x32xf32>
    %112 = arith.negf %111 : vector<8x32xf32>
    %113 = math.exp %112 : vector<8x32xf32>
    %cst_41 = arith.constant 1.000000e+00 : f32
    %114 = vector.broadcast %cst_41 : f32 to vector<8x32xf32>
    %115 = arith.addf %114, %113 : vector<8x32xf32>
    %116 = arith.divf %114, %115 : vector<8x32xf32>
    %117 = vector.extract_strided_slice %110 {offsets = [0, 32], sizes = [8, 32], strides = [1, 1]} : vector<8x128xf32> to vector<8x32xf32>
    %118 = arith.negf %117 : vector<8x32xf32>
    %119 = math.exp %118 : vector<8x32xf32>
    %cst_42 = arith.constant 1.000000e+00 : f32
    %120 = vector.broadcast %cst_42 : f32 to vector<8x32xf32>
    %121 = arith.addf %120, %119 : vector<8x32xf32>
    %122 = arith.divf %120, %121 : vector<8x32xf32>
    %123 = vector.extract_strided_slice %110 {offsets = [0, 64], sizes = [8, 32], strides = [1, 1]} : vector<8x128xf32> to vector<8x32xf32>
    %124 = vector.extract_strided_slice %110 {offsets = [0, 96], sizes = [8, 32], strides = [1, 1]} : vector<8x128xf32> to vector<8x32xf32>
    %125 = arith.mulf %116, %124 : vector<8x32xf32>
    %126 = arith.addf %123, %125 : vector<8x32xf32>
    %127 = math.tanh %126 : vector<8x32xf32>
    %cst_43 = arith.constant 1.000000e+00 : f32
    %128 = vector.broadcast %cst_43 : f32 to vector<8x32xf32>
    %129 = arith.subf %128, %122 : vector<8x32xf32>
    %130 = arith.mulf %129, %127 : vector<8x32xf32>
    %131 = arith.mulf %122, %70 : vector<8x32xf32>
    %132 = arith.addf %130, %131 : vector<8x32xf32>
    %c16 = arith.constant 16 : index
    %c0_44 = arith.constant 0 : index
    %133 = vector.load %arg16[%c16, %c0_44] : memref<64x128xf32, #tpu.memory_space<vmem>>, vector<8x128xf32>
    %134 = arith.truncf %103 : vector<8x32xf32> to vector<8x32xbf16>
    %c0_45 = arith.constant 0 : index
    %c0_46 = arith.constant 0 : index
    %135 = vector.load %arg2[%c0_45, %c0_46] : memref<32x128xbf16, #tpu.memory_space<vmem>>, vector<32x128xbf16>
    %cst_47 = arith.constant dense<0.000000e+00> : vector<8x128xf32>
    %136 = tpu.matmul %134, %135, %cst_47 {dimension_numbers = #tpu.dot_dimension_numbers<[1], [0], [0], [1], [0, 0, 1, 1], [], []>} : vector<8x32xbf16>, vector<32x128xbf16>, vector<8x128xf32> -> vector<8x128xf32>
    %c0_48 = arith.constant 0 : index
    %c0_49 = arith.constant 0 : index
    %137 = vector.load %arg4[%c0_48, %c0_49] : memref<1x32xf32, #tpu.memory_space<vmem>>, vector<1x32xf32>
    %138 = vector.extract_strided_slice %133 {offsets = [0, 0], sizes = [8, 32], strides = [1, 1]} : vector<8x128xf32> to vector<8x32xf32>
    %139 = vector.extract_strided_slice %136 {offsets = [0, 0], sizes = [8, 32], strides = [1, 1]} : vector<8x128xf32> to vector<8x32xf32>
    %140 = arith.addf %138, %139 : vector<8x32xf32>
    %141 = arith.negf %140 : vector<8x32xf32>
    %142 = math.exp %141 : vector<8x32xf32>
    %cst_50 = arith.constant 1.000000e+00 : f32
    %143 = vector.broadcast %cst_50 : f32 to vector<8x32xf32>
    %144 = arith.addf %143, %142 : vector<8x32xf32>
    %145 = arith.divf %143, %144 : vector<8x32xf32>
    %146 = vector.extract_strided_slice %133 {offsets = [0, 32], sizes = [8, 32], strides = [1, 1]} : vector<8x128xf32> to vector<8x32xf32>
    %147 = vector.extract_strided_slice %136 {offsets = [0, 32], sizes = [8, 32], strides = [1, 1]} : vector<8x128xf32> to vector<8x32xf32>
    %148 = arith.addf %146, %147 : vector<8x32xf32>
    %149 = arith.negf %148 : vector<8x32xf32>
    %150 = math.exp %149 : vector<8x32xf32>
    %cst_51 = arith.constant 1.000000e+00 : f32
    %151 = vector.broadcast %cst_51 : f32 to vector<8x32xf32>
    %152 = arith.addf %151, %150 : vector<8x32xf32>
    %153 = arith.divf %151, %152 : vector<8x32xf32>
    %154 = vector.extract_strided_slice %133 {offsets = [0, 64], sizes = [8, 32], strides = [1, 1]} : vector<8x128xf32> to vector<8x32xf32>
    %155 = vector.extract_strided_slice %136 {offsets = [0, 64], sizes = [8, 32], strides = [1, 1]} : vector<8x128xf32> to vector<8x32xf32>
    %156 = vector.broadcast %137 : vector<1x32xf32> to vector<8x32xf32>
    %157 = arith.addf %155, %156 : vector<8x32xf32>
    %158 = arith.mulf %145, %157 : vector<8x32xf32>
    %159 = arith.addf %154, %158 : vector<8x32xf32>
    %160 = math.tanh %159 : vector<8x32xf32>
    %cst_52 = arith.constant 1.000000e+00 : f32
    %161 = vector.broadcast %cst_52 : f32 to vector<8x32xf32>
    %162 = arith.subf %161, %153 : vector<8x32xf32>
    %163 = arith.mulf %162, %160 : vector<8x32xf32>
    %164 = arith.mulf %153, %103 : vector<8x32xf32>
    %165 = arith.addf %163, %164 : vector<8x32xf32>
    %166 = tpu.concatenate %165, %132 in 1 : vector<8x32xf32>, vector<8x32xf32> -> vector<8x64xf32>
    %167 = arith.truncf %166 : vector<8x64xf32> to vector<8x64xbf16>
    %c0_53 = arith.constant 0 : index
    %c0_54 = arith.constant 0 : index
    %168 = vector.load %arg5[%c0_53, %c0_54] : memref<64x128xbf16, #tpu.memory_space<vmem>>, vector<64x128xbf16>
    %cst_55 = arith.constant dense<0.000000e+00> : vector<8x128xf32>
    %169 = tpu.matmul %167, %168, %cst_55 {dimension_numbers = #tpu.dot_dimension_numbers<[1], [0], [0], [1], [0, 0, 1, 1], [], []>} : vector<8x64xbf16>, vector<64x128xbf16>, vector<8x128xf32> -> vector<8x128xf32>
    %c0_56 = arith.constant 0 : index
    %c0_57 = arith.constant 0 : index
    %170 = vector.load %arg6[%c0_56, %c0_57] : memref<1x128xf32, #tpu.memory_space<vmem>>, vector<1x128xf32>
    %171 = vector.broadcast %170 : vector<1x128xf32> to vector<8x128xf32>
    %172 = arith.addf %169, %171 : vector<8x128xf32>
    %173 = vector.extract_strided_slice %172 {offsets = [0, 0], sizes = [8, 32], strides = [1, 1]} : vector<8x128xf32> to vector<8x32xf32>
    %174 = arith.negf %173 : vector<8x32xf32>
    %175 = math.exp %174 : vector<8x32xf32>
    %cst_58 = arith.constant 1.000000e+00 : f32
    %176 = vector.broadcast %cst_58 : f32 to vector<8x32xf32>
    %177 = arith.addf %176, %175 : vector<8x32xf32>
    %178 = arith.divf %176, %177 : vector<8x32xf32>
    %179 = vector.extract_strided_slice %172 {offsets = [0, 32], sizes = [8, 32], strides = [1, 1]} : vector<8x128xf32> to vector<8x32xf32>
    %180 = arith.negf %179 : vector<8x32xf32>
    %181 = math.exp %180 : vector<8x32xf32>
    %cst_59 = arith.constant 1.000000e+00 : f32
    %182 = vector.broadcast %cst_59 : f32 to vector<8x32xf32>
    %183 = arith.addf %182, %181 : vector<8x32xf32>
    %184 = arith.divf %182, %183 : vector<8x32xf32>
    %185 = vector.extract_strided_slice %172 {offsets = [0, 64], sizes = [8, 32], strides = [1, 1]} : vector<8x128xf32> to vector<8x32xf32>
    %186 = vector.extract_strided_slice %172 {offsets = [0, 96], sizes = [8, 32], strides = [1, 1]} : vector<8x128xf32> to vector<8x32xf32>
    %187 = arith.mulf %178, %186 : vector<8x32xf32>
    %188 = arith.addf %185, %187 : vector<8x32xf32>
    %189 = math.tanh %188 : vector<8x32xf32>
    %cst_60 = arith.constant 1.000000e+00 : f32
    %190 = vector.broadcast %cst_60 : f32 to vector<8x32xf32>
    %191 = arith.subf %190, %184 : vector<8x32xf32>
    %192 = arith.mulf %191, %189 : vector<8x32xf32>
    %193 = arith.mulf %184, %132 : vector<8x32xf32>
    %194 = arith.addf %192, %193 : vector<8x32xf32>
    %c24 = arith.constant 24 : index
    %c0_61 = arith.constant 0 : index
    %195 = vector.load %arg16[%c24, %c0_61] : memref<64x128xf32, #tpu.memory_space<vmem>>, vector<8x128xf32>
    %196 = arith.truncf %165 : vector<8x32xf32> to vector<8x32xbf16>
    %c0_62 = arith.constant 0 : index
    %c0_63 = arith.constant 0 : index
    %197 = vector.load %arg2[%c0_62, %c0_63] : memref<32x128xbf16, #tpu.memory_space<vmem>>, vector<32x128xbf16>
    %cst_64 = arith.constant dense<0.000000e+00> : vector<8x128xf32>
    %198 = tpu.matmul %196, %197, %cst_64 {dimension_numbers = #tpu.dot_dimension_numbers<[1], [0], [0], [1], [0, 0, 1, 1], [], []>} : vector<8x32xbf16>, vector<32x128xbf16>, vector<8x128xf32> -> vector<8x128xf32>
    %c0_65 = arith.constant 0 : index
    %c0_66 = arith.constant 0 : index
    %199 = vector.load %arg4[%c0_65, %c0_66] : memref<1x32xf32, #tpu.memory_space<vmem>>, vector<1x32xf32>
    %200 = vector.extract_strided_slice %195 {offsets = [0, 0], sizes = [8, 32], strides = [1, 1]} : vector<8x128xf32> to vector<8x32xf32>
    %201 = vector.extract_strided_slice %198 {offsets = [0, 0], sizes = [8, 32], strides = [1, 1]} : vector<8x128xf32> to vector<8x32xf32>
    %202 = arith.addf %200, %201 : vector<8x32xf32>
    %203 = arith.negf %202 : vector<8x32xf32>
    %204 = math.exp %203 : vector<8x32xf32>
    %cst_67 = arith.constant 1.000000e+00 : f32
    %205 = vector.broadcast %cst_67 : f32 to vector<8x32xf32>
    %206 = arith.addf %205, %204 : vector<8x32xf32>
    %207 = arith.divf %205, %206 : vector<8x32xf32>
    %208 = vector.extract_strided_slice %195 {offsets = [0, 32], sizes = [8, 32], strides = [1, 1]} : vector<8x128xf32> to vector<8x32xf32>
    %209 = vector.extract_strided_slice %198 {offsets = [0, 32], sizes = [8, 32], strides = [1, 1]} : vector<8x128xf32> to vector<8x32xf32>
    %210 = arith.addf %208, %209 : vector<8x32xf32>
    %211 = arith.negf %210 : vector<8x32xf32>
    %212 = math.exp %211 : vector<8x32xf32>
    %cst_68 = arith.constant 1.000000e+00 : f32
    %213 = vector.broadcast %cst_68 : f32 to vector<8x32xf32>
    %214 = arith.addf %213, %212 : vector<8x32xf32>
    %215 = arith.divf %213, %214 : vector<8x32xf32>
    %216 = vector.extract_strided_slice %195 {offsets = [0, 64], sizes = [8, 32], strides = [1, 1]} : vector<8x128xf32> to vector<8x32xf32>
    %217 = vector.extract_strided_slice %198 {offsets = [0, 64], sizes = [8, 32], strides = [1, 1]} : vector<8x128xf32> to vector<8x32xf32>
    %218 = vector.broadcast %199 : vector<1x32xf32> to vector<8x32xf32>
    %219 = arith.addf %217, %218 : vector<8x32xf32>
    %220 = arith.mulf %207, %219 : vector<8x32xf32>
    %221 = arith.addf %216, %220 : vector<8x32xf32>
    %222 = math.tanh %221 : vector<8x32xf32>
    %cst_69 = arith.constant 1.000000e+00 : f32
    %223 = vector.broadcast %cst_69 : f32 to vector<8x32xf32>
    %224 = arith.subf %223, %215 : vector<8x32xf32>
    %225 = arith.mulf %224, %222 : vector<8x32xf32>
    %226 = arith.mulf %215, %165 : vector<8x32xf32>
    %227 = arith.addf %225, %226 : vector<8x32xf32>
    %228 = tpu.concatenate %227, %194 in 1 : vector<8x32xf32>, vector<8x32xf32> -> vector<8x64xf32>
    %229 = arith.truncf %228 : vector<8x64xf32> to vector<8x64xbf16>
    %c0_70 = arith.constant 0 : index
    %c0_71 = arith.constant 0 : index
    %230 = vector.load %arg5[%c0_70, %c0_71] : memref<64x128xbf16, #tpu.memory_space<vmem>>, vector<64x128xbf16>
    %cst_72 = arith.constant dense<0.000000e+00> : vector<8x128xf32>
    %231 = tpu.matmul %229, %230, %cst_72 {dimension_numbers = #tpu.dot_dimension_numbers<[1], [0], [0], [1], [0, 0, 1, 1], [], []>} : vector<8x64xbf16>, vector<64x128xbf16>, vector<8x128xf32> -> vector<8x128xf32>
    %c0_73 = arith.constant 0 : index
    %c0_74 = arith.constant 0 : index
    %232 = vector.load %arg6[%c0_73, %c0_74] : memref<1x128xf32, #tpu.memory_space<vmem>>, vector<1x128xf32>
    %233 = vector.broadcast %232 : vector<1x128xf32> to vector<8x128xf32>
    %234 = arith.addf %231, %233 : vector<8x128xf32>
    %235 = vector.extract_strided_slice %234 {offsets = [0, 0], sizes = [8, 32], strides = [1, 1]} : vector<8x128xf32> to vector<8x32xf32>
    %236 = arith.negf %235 : vector<8x32xf32>
    %237 = math.exp %236 : vector<8x32xf32>
    %cst_75 = arith.constant 1.000000e+00 : f32
    %238 = vector.broadcast %cst_75 : f32 to vector<8x32xf32>
    %239 = arith.addf %238, %237 : vector<8x32xf32>
    %240 = arith.divf %238, %239 : vector<8x32xf32>
    %241 = vector.extract_strided_slice %234 {offsets = [0, 32], sizes = [8, 32], strides = [1, 1]} : vector<8x128xf32> to vector<8x32xf32>
    %242 = arith.negf %241 : vector<8x32xf32>
    %243 = math.exp %242 : vector<8x32xf32>
    %cst_76 = arith.constant 1.000000e+00 : f32
    %244 = vector.broadcast %cst_76 : f32 to vector<8x32xf32>
    %245 = arith.addf %244, %243 : vector<8x32xf32>
    %246 = arith.divf %244, %245 : vector<8x32xf32>
    %247 = vector.extract_strided_slice %234 {offsets = [0, 64], sizes = [8, 32], strides = [1, 1]} : vector<8x128xf32> to vector<8x32xf32>
    %248 = vector.extract_strided_slice %234 {offsets = [0, 96], sizes = [8, 32], strides = [1, 1]} : vector<8x128xf32> to vector<8x32xf32>
    %249 = arith.mulf %240, %248 : vector<8x32xf32>
    %250 = arith.addf %247, %249 : vector<8x32xf32>
    %251 = math.tanh %250 : vector<8x32xf32>
    %cst_77 = arith.constant 1.000000e+00 : f32
    %252 = vector.broadcast %cst_77 : f32 to vector<8x32xf32>
    %253 = arith.subf %252, %246 : vector<8x32xf32>
    %254 = arith.mulf %253, %251 : vector<8x32xf32>
    %255 = arith.mulf %246, %194 : vector<8x32xf32>
    %256 = arith.addf %254, %255 : vector<8x32xf32>
    %c32 = arith.constant 32 : index
    %c0_78 = arith.constant 0 : index
    %257 = vector.load %arg16[%c32, %c0_78] : memref<64x128xf32, #tpu.memory_space<vmem>>, vector<8x128xf32>
    %258 = arith.truncf %227 : vector<8x32xf32> to vector<8x32xbf16>
    %c0_79 = arith.constant 0 : index
    %c0_80 = arith.constant 0 : index
    %259 = vector.load %arg2[%c0_79, %c0_80] : memref<32x128xbf16, #tpu.memory_space<vmem>>, vector<32x128xbf16>
    %cst_81 = arith.constant dense<0.000000e+00> : vector<8x128xf32>
    %260 = tpu.matmul %258, %259, %cst_81 {dimension_numbers = #tpu.dot_dimension_numbers<[1], [0], [0], [1], [0, 0, 1, 1], [], []>} : vector<8x32xbf16>, vector<32x128xbf16>, vector<8x128xf32> -> vector<8x128xf32>
    %c0_82 = arith.constant 0 : index
    %c0_83 = arith.constant 0 : index
    %261 = vector.load %arg4[%c0_82, %c0_83] : memref<1x32xf32, #tpu.memory_space<vmem>>, vector<1x32xf32>
    %262 = vector.extract_strided_slice %257 {offsets = [0, 0], sizes = [8, 32], strides = [1, 1]} : vector<8x128xf32> to vector<8x32xf32>
    %263 = vector.extract_strided_slice %260 {offsets = [0, 0], sizes = [8, 32], strides = [1, 1]} : vector<8x128xf32> to vector<8x32xf32>
    %264 = arith.addf %262, %263 : vector<8x32xf32>
    %265 = arith.negf %264 : vector<8x32xf32>
    %266 = math.exp %265 : vector<8x32xf32>
    %cst_84 = arith.constant 1.000000e+00 : f32
    %267 = vector.broadcast %cst_84 : f32 to vector<8x32xf32>
    %268 = arith.addf %267, %266 : vector<8x32xf32>
    %269 = arith.divf %267, %268 : vector<8x32xf32>
    %270 = vector.extract_strided_slice %257 {offsets = [0, 32], sizes = [8, 32], strides = [1, 1]} : vector<8x128xf32> to vector<8x32xf32>
    %271 = vector.extract_strided_slice %260 {offsets = [0, 32], sizes = [8, 32], strides = [1, 1]} : vector<8x128xf32> to vector<8x32xf32>
    %272 = arith.addf %270, %271 : vector<8x32xf32>
    %273 = arith.negf %272 : vector<8x32xf32>
    %274 = math.exp %273 : vector<8x32xf32>
    %cst_85 = arith.constant 1.000000e+00 : f32
    %275 = vector.broadcast %cst_85 : f32 to vector<8x32xf32>
    %276 = arith.addf %275, %274 : vector<8x32xf32>
    %277 = arith.divf %275, %276 : vector<8x32xf32>
    %278 = vector.extract_strided_slice %257 {offsets = [0, 64], sizes = [8, 32], strides = [1, 1]} : vector<8x128xf32> to vector<8x32xf32>
    %279 = vector.extract_strided_slice %260 {offsets = [0, 64], sizes = [8, 32], strides = [1, 1]} : vector<8x128xf32> to vector<8x32xf32>
    %280 = vector.broadcast %261 : vector<1x32xf32> to vector<8x32xf32>
    %281 = arith.addf %279, %280 : vector<8x32xf32>
    %282 = arith.mulf %269, %281 : vector<8x32xf32>
    %283 = arith.addf %278, %282 : vector<8x32xf32>
    %284 = math.tanh %283 : vector<8x32xf32>
    %cst_86 = arith.constant 1.000000e+00 : f32
    %285 = vector.broadcast %cst_86 : f32 to vector<8x32xf32>
    %286 = arith.subf %285, %277 : vector<8x32xf32>
    %287 = arith.mulf %286, %284 : vector<8x32xf32>
    %288 = arith.mulf %277, %227 : vector<8x32xf32>
    %289 = arith.addf %287, %288 : vector<8x32xf32>
    %290 = tpu.concatenate %289, %256 in 1 : vector<8x32xf32>, vector<8x32xf32> -> vector<8x64xf32>
    %291 = arith.truncf %290 : vector<8x64xf32> to vector<8x64xbf16>
    %c0_87 = arith.constant 0 : index
    %c0_88 = arith.constant 0 : index
    %292 = vector.load %arg5[%c0_87, %c0_88] : memref<64x128xbf16, #tpu.memory_space<vmem>>, vector<64x128xbf16>
    %cst_89 = arith.constant dense<0.000000e+00> : vector<8x128xf32>
    %293 = tpu.matmul %291, %292, %cst_89 {dimension_numbers = #tpu.dot_dimension_numbers<[1], [0], [0], [1], [0, 0, 1, 1], [], []>} : vector<8x64xbf16>, vector<64x128xbf16>, vector<8x128xf32> -> vector<8x128xf32>
    %c0_90 = arith.constant 0 : index
    %c0_91 = arith.constant 0 : index
    %294 = vector.load %arg6[%c0_90, %c0_91] : memref<1x128xf32, #tpu.memory_space<vmem>>, vector<1x128xf32>
    %295 = vector.broadcast %294 : vector<1x128xf32> to vector<8x128xf32>
    %296 = arith.addf %293, %295 : vector<8x128xf32>
    %297 = vector.extract_strided_slice %296 {offsets = [0, 0], sizes = [8, 32], strides = [1, 1]} : vector<8x128xf32> to vector<8x32xf32>
    %298 = arith.negf %297 : vector<8x32xf32>
    %299 = math.exp %298 : vector<8x32xf32>
    %cst_92 = arith.constant 1.000000e+00 : f32
    %300 = vector.broadcast %cst_92 : f32 to vector<8x32xf32>
    %301 = arith.addf %300, %299 : vector<8x32xf32>
    %302 = arith.divf %300, %301 : vector<8x32xf32>
    %303 = vector.extract_strided_slice %296 {offsets = [0, 32], sizes = [8, 32], strides = [1, 1]} : vector<8x128xf32> to vector<8x32xf32>
    %304 = arith.negf %303 : vector<8x32xf32>
    %305 = math.exp %304 : vector<8x32xf32>
    %cst_93 = arith.constant 1.000000e+00 : f32
    %306 = vector.broadcast %cst_93 : f32 to vector<8x32xf32>
    %307 = arith.addf %306, %305 : vector<8x32xf32>
    %308 = arith.divf %306, %307 : vector<8x32xf32>
    %309 = vector.extract_strided_slice %296 {offsets = [0, 64], sizes = [8, 32], strides = [1, 1]} : vector<8x128xf32> to vector<8x32xf32>
    %310 = vector.extract_strided_slice %296 {offsets = [0, 96], sizes = [8, 32], strides = [1, 1]} : vector<8x128xf32> to vector<8x32xf32>
    %311 = arith.mulf %302, %310 : vector<8x32xf32>
    %312 = arith.addf %309, %311 : vector<8x32xf32>
    %313 = math.tanh %312 : vector<8x32xf32>
    %cst_94 = arith.constant 1.000000e+00 : f32
    %314 = vector.broadcast %cst_94 : f32 to vector<8x32xf32>
    %315 = arith.subf %314, %308 : vector<8x32xf32>
    %316 = arith.mulf %315, %313 : vector<8x32xf32>
    %317 = arith.mulf %308, %256 : vector<8x32xf32>
    %318 = arith.addf %316, %317 : vector<8x32xf32>
    %c40 = arith.constant 40 : index
    %c0_95 = arith.constant 0 : index
    %319 = vector.load %arg16[%c40, %c0_95] : memref<64x128xf32, #tpu.memory_space<vmem>>, vector<8x128xf32>
    %320 = arith.truncf %289 : vector<8x32xf32> to vector<8x32xbf16>
    %c0_96 = arith.constant 0 : index
    %c0_97 = arith.constant 0 : index
    %321 = vector.load %arg2[%c0_96, %c0_97] : memref<32x128xbf16, #tpu.memory_space<vmem>>, vector<32x128xbf16>
    %cst_98 = arith.constant dense<0.000000e+00> : vector<8x128xf32>
    %322 = tpu.matmul %320, %321, %cst_98 {dimension_numbers = #tpu.dot_dimension_numbers<[1], [0], [0], [1], [0, 0, 1, 1], [], []>} : vector<8x32xbf16>, vector<32x128xbf16>, vector<8x128xf32> -> vector<8x128xf32>
    %c0_99 = arith.constant 0 : index
    %c0_100 = arith.constant 0 : index
    %323 = vector.load %arg4[%c0_99, %c0_100] : memref<1x32xf32, #tpu.memory_space<vmem>>, vector<1x32xf32>
    %324 = vector.extract_strided_slice %319 {offsets = [0, 0], sizes = [8, 32], strides = [1, 1]} : vector<8x128xf32> to vector<8x32xf32>
    %325 = vector.extract_strided_slice %322 {offsets = [0, 0], sizes = [8, 32], strides = [1, 1]} : vector<8x128xf32> to vector<8x32xf32>
    %326 = arith.addf %324, %325 : vector<8x32xf32>
    %327 = arith.negf %326 : vector<8x32xf32>
    %328 = math.exp %327 : vector<8x32xf32>
    %cst_101 = arith.constant 1.000000e+00 : f32
    %329 = vector.broadcast %cst_101 : f32 to vector<8x32xf32>
    %330 = arith.addf %329, %328 : vector<8x32xf32>
    %331 = arith.divf %329, %330 : vector<8x32xf32>
    %332 = vector.extract_strided_slice %319 {offsets = [0, 32], sizes = [8, 32], strides = [1, 1]} : vector<8x128xf32> to vector<8x32xf32>
    %333 = vector.extract_strided_slice %322 {offsets = [0, 32], sizes = [8, 32], strides = [1, 1]} : vector<8x128xf32> to vector<8x32xf32>
    %334 = arith.addf %332, %333 : vector<8x32xf32>
    %335 = arith.negf %334 : vector<8x32xf32>
    %336 = math.exp %335 : vector<8x32xf32>
    %cst_102 = arith.constant 1.000000e+00 : f32
    %337 = vector.broadcast %cst_102 : f32 to vector<8x32xf32>
    %338 = arith.addf %337, %336 : vector<8x32xf32>
    %339 = arith.divf %337, %338 : vector<8x32xf32>
    %340 = vector.extract_strided_slice %319 {offsets = [0, 64], sizes = [8, 32], strides = [1, 1]} : vector<8x128xf32> to vector<8x32xf32>
    %341 = vector.extract_strided_slice %322 {offsets = [0, 64], sizes = [8, 32], strides = [1, 1]} : vector<8x128xf32> to vector<8x32xf32>
    %342 = vector.broadcast %323 : vector<1x32xf32> to vector<8x32xf32>
    %343 = arith.addf %341, %342 : vector<8x32xf32>
    %344 = arith.mulf %331, %343 : vector<8x32xf32>
    %345 = arith.addf %340, %344 : vector<8x32xf32>
    %346 = math.tanh %345 : vector<8x32xf32>
    %cst_103 = arith.constant 1.000000e+00 : f32
    %347 = vector.broadcast %cst_103 : f32 to vector<8x32xf32>
    %348 = arith.subf %347, %339 : vector<8x32xf32>
    %349 = arith.mulf %348, %346 : vector<8x32xf32>
    %350 = arith.mulf %339, %289 : vector<8x32xf32>
    %351 = arith.addf %349, %350 : vector<8x32xf32>
    %352 = tpu.concatenate %351, %318 in 1 : vector<8x32xf32>, vector<8x32xf32> -> vector<8x64xf32>
    %353 = arith.truncf %352 : vector<8x64xf32> to vector<8x64xbf16>
    %c0_104 = arith.constant 0 : index
    %c0_105 = arith.constant 0 : index
    %354 = vector.load %arg5[%c0_104, %c0_105] : memref<64x128xbf16, #tpu.memory_space<vmem>>, vector<64x128xbf16>
    %cst_106 = arith.constant dense<0.000000e+00> : vector<8x128xf32>
    %355 = tpu.matmul %353, %354, %cst_106 {dimension_numbers = #tpu.dot_dimension_numbers<[1], [0], [0], [1], [0, 0, 1, 1], [], []>} : vector<8x64xbf16>, vector<64x128xbf16>, vector<8x128xf32> -> vector<8x128xf32>
    %c0_107 = arith.constant 0 : index
    %c0_108 = arith.constant 0 : index
    %356 = vector.load %arg6[%c0_107, %c0_108] : memref<1x128xf32, #tpu.memory_space<vmem>>, vector<1x128xf32>
    %357 = vector.broadcast %356 : vector<1x128xf32> to vector<8x128xf32>
    %358 = arith.addf %355, %357 : vector<8x128xf32>
    %359 = vector.extract_strided_slice %358 {offsets = [0, 0], sizes = [8, 32], strides = [1, 1]} : vector<8x128xf32> to vector<8x32xf32>
    %360 = arith.negf %359 : vector<8x32xf32>
    %361 = math.exp %360 : vector<8x32xf32>
    %cst_109 = arith.constant 1.000000e+00 : f32
    %362 = vector.broadcast %cst_109 : f32 to vector<8x32xf32>
    %363 = arith.addf %362, %361 : vector<8x32xf32>
    %364 = arith.divf %362, %363 : vector<8x32xf32>
    %365 = vector.extract_strided_slice %358 {offsets = [0, 32], sizes = [8, 32], strides = [1, 1]} : vector<8x128xf32> to vector<8x32xf32>
    %366 = arith.negf %365 : vector<8x32xf32>
    %367 = math.exp %366 : vector<8x32xf32>
    %cst_110 = arith.constant 1.000000e+00 : f32
    %368 = vector.broadcast %cst_110 : f32 to vector<8x32xf32>
    %369 = arith.addf %368, %367 : vector<8x32xf32>
    %370 = arith.divf %368, %369 : vector<8x32xf32>
    %371 = vector.extract_strided_slice %358 {offsets = [0, 64], sizes = [8, 32], strides = [1, 1]} : vector<8x128xf32> to vector<8x32xf32>
    %372 = vector.extract_strided_slice %358 {offsets = [0, 96], sizes = [8, 32], strides = [1, 1]} : vector<8x128xf32> to vector<8x32xf32>
    %373 = arith.mulf %364, %372 : vector<8x32xf32>
    %374 = arith.addf %371, %373 : vector<8x32xf32>
    %375 = math.tanh %374 : vector<8x32xf32>
    %cst_111 = arith.constant 1.000000e+00 : f32
    %376 = vector.broadcast %cst_111 : f32 to vector<8x32xf32>
    %377 = arith.subf %376, %370 : vector<8x32xf32>
    %378 = arith.mulf %377, %375 : vector<8x32xf32>
    %379 = arith.mulf %370, %318 : vector<8x32xf32>
    %380 = arith.addf %378, %379 : vector<8x32xf32>
    %c48 = arith.constant 48 : index
    %c0_112 = arith.constant 0 : index
    %381 = vector.load %arg16[%c48, %c0_112] : memref<64x128xf32, #tpu.memory_space<vmem>>, vector<8x128xf32>
    %382 = arith.truncf %351 : vector<8x32xf32> to vector<8x32xbf16>
    %c0_113 = arith.constant 0 : index
    %c0_114 = arith.constant 0 : index
    %383 = vector.load %arg2[%c0_113, %c0_114] : memref<32x128xbf16, #tpu.memory_space<vmem>>, vector<32x128xbf16>
    %cst_115 = arith.constant dense<0.000000e+00> : vector<8x128xf32>
    %384 = tpu.matmul %382, %383, %cst_115 {dimension_numbers = #tpu.dot_dimension_numbers<[1], [0], [0], [1], [0, 0, 1, 1], [], []>} : vector<8x32xbf16>, vector<32x128xbf16>, vector<8x128xf32> -> vector<8x128xf32>
    %c0_116 = arith.constant 0 : index
    %c0_117 = arith.constant 0 : index
    %385 = vector.load %arg4[%c0_116, %c0_117] : memref<1x32xf32, #tpu.memory_space<vmem>>, vector<1x32xf32>
    %386 = vector.extract_strided_slice %381 {offsets = [0, 0], sizes = [8, 32], strides = [1, 1]} : vector<8x128xf32> to vector<8x32xf32>
    %387 = vector.extract_strided_slice %384 {offsets = [0, 0], sizes = [8, 32], strides = [1, 1]} : vector<8x128xf32> to vector<8x32xf32>
    %388 = arith.addf %386, %387 : vector<8x32xf32>
    %389 = arith.negf %388 : vector<8x32xf32>
    %390 = math.exp %389 : vector<8x32xf32>
    %cst_118 = arith.constant 1.000000e+00 : f32
    %391 = vector.broadcast %cst_118 : f32 to vector<8x32xf32>
    %392 = arith.addf %391, %390 : vector<8x32xf32>
    %393 = arith.divf %391, %392 : vector<8x32xf32>
    %394 = vector.extract_strided_slice %381 {offsets = [0, 32], sizes = [8, 32], strides = [1, 1]} : vector<8x128xf32> to vector<8x32xf32>
    %395 = vector.extract_strided_slice %384 {offsets = [0, 32], sizes = [8, 32], strides = [1, 1]} : vector<8x128xf32> to vector<8x32xf32>
    %396 = arith.addf %394, %395 : vector<8x32xf32>
    %397 = arith.negf %396 : vector<8x32xf32>
    %398 = math.exp %397 : vector<8x32xf32>
    %cst_119 = arith.constant 1.000000e+00 : f32
    %399 = vector.broadcast %cst_119 : f32 to vector<8x32xf32>
    %400 = arith.addf %399, %398 : vector<8x32xf32>
    %401 = arith.divf %399, %400 : vector<8x32xf32>
    %402 = vector.extract_strided_slice %381 {offsets = [0, 64], sizes = [8, 32], strides = [1, 1]} : vector<8x128xf32> to vector<8x32xf32>
    %403 = vector.extract_strided_slice %384 {offsets = [0, 64], sizes = [8, 32], strides = [1, 1]} : vector<8x128xf32> to vector<8x32xf32>
    %404 = vector.broadcast %385 : vector<1x32xf32> to vector<8x32xf32>
    %405 = arith.addf %403, %404 : vector<8x32xf32>
    %406 = arith.mulf %393, %405 : vector<8x32xf32>
    %407 = arith.addf %402, %406 : vector<8x32xf32>
    %408 = math.tanh %407 : vector<8x32xf32>
    %cst_120 = arith.constant 1.000000e+00 : f32
    %409 = vector.broadcast %cst_120 : f32 to vector<8x32xf32>
    %410 = arith.subf %409, %401 : vector<8x32xf32>
    %411 = arith.mulf %410, %408 : vector<8x32xf32>
    %412 = arith.mulf %401, %351 : vector<8x32xf32>
    %413 = arith.addf %411, %412 : vector<8x32xf32>
    %414 = tpu.concatenate %413, %380 in 1 : vector<8x32xf32>, vector<8x32xf32> -> vector<8x64xf32>
    %415 = arith.truncf %414 : vector<8x64xf32> to vector<8x64xbf16>
    %c0_121 = arith.constant 0 : index
    %c0_122 = arith.constant 0 : index
    %416 = vector.load %arg5[%c0_121, %c0_122] : memref<64x128xbf16, #tpu.memory_space<vmem>>, vector<64x128xbf16>
    %cst_123 = arith.constant dense<0.000000e+00> : vector<8x128xf32>
    %417 = tpu.matmul %415, %416, %cst_123 {dimension_numbers = #tpu.dot_dimension_numbers<[1], [0], [0], [1], [0, 0, 1, 1], [], []>} : vector<8x64xbf16>, vector<64x128xbf16>, vector<8x128xf32> -> vector<8x128xf32>
    %c0_124 = arith.constant 0 : index
    %c0_125 = arith.constant 0 : index
    %418 = vector.load %arg6[%c0_124, %c0_125] : memref<1x128xf32, #tpu.memory_space<vmem>>, vector<1x128xf32>
    %419 = vector.broadcast %418 : vector<1x128xf32> to vector<8x128xf32>
    %420 = arith.addf %417, %419 : vector<8x128xf32>
    %421 = vector.extract_strided_slice %420 {offsets = [0, 0], sizes = [8, 32], strides = [1, 1]} : vector<8x128xf32> to vector<8x32xf32>
    %422 = arith.negf %421 : vector<8x32xf32>
    %423 = math.exp %422 : vector<8x32xf32>
    %cst_126 = arith.constant 1.000000e+00 : f32
    %424 = vector.broadcast %cst_126 : f32 to vector<8x32xf32>
    %425 = arith.addf %424, %423 : vector<8x32xf32>
    %426 = arith.divf %424, %425 : vector<8x32xf32>
    %427 = vector.extract_strided_slice %420 {offsets = [0, 32], sizes = [8, 32], strides = [1, 1]} : vector<8x128xf32> to vector<8x32xf32>
    %428 = arith.negf %427 : vector<8x32xf32>
    %429 = math.exp %428 : vector<8x32xf32>
    %cst_127 = arith.constant 1.000000e+00 : f32
    %430 = vector.broadcast %cst_127 : f32 to vector<8x32xf32>
    %431 = arith.addf %430, %429 : vector<8x32xf32>
    %432 = arith.divf %430, %431 : vector<8x32xf32>
    %433 = vector.extract_strided_slice %420 {offsets = [0, 64], sizes = [8, 32], strides = [1, 1]} : vector<8x128xf32> to vector<8x32xf32>
    %434 = vector.extract_strided_slice %420 {offsets = [0, 96], sizes = [8, 32], strides = [1, 1]} : vector<8x128xf32> to vector<8x32xf32>
    %435 = arith.mulf %426, %434 : vector<8x32xf32>
    %436 = arith.addf %433, %435 : vector<8x32xf32>
    %437 = math.tanh %436 : vector<8x32xf32>
    %cst_128 = arith.constant 1.000000e+00 : f32
    %438 = vector.broadcast %cst_128 : f32 to vector<8x32xf32>
    %439 = arith.subf %438, %432 : vector<8x32xf32>
    %440 = arith.mulf %439, %437 : vector<8x32xf32>
    %441 = arith.mulf %432, %380 : vector<8x32xf32>
    %442 = arith.addf %440, %441 : vector<8x32xf32>
    %c56 = arith.constant 56 : index
    %c0_129 = arith.constant 0 : index
    %443 = vector.load %arg16[%c56, %c0_129] : memref<64x128xf32, #tpu.memory_space<vmem>>, vector<8x128xf32>
    %444 = arith.truncf %413 : vector<8x32xf32> to vector<8x32xbf16>
    %c0_130 = arith.constant 0 : index
    %c0_131 = arith.constant 0 : index
    %445 = vector.load %arg2[%c0_130, %c0_131] : memref<32x128xbf16, #tpu.memory_space<vmem>>, vector<32x128xbf16>
    %cst_132 = arith.constant dense<0.000000e+00> : vector<8x128xf32>
    %446 = tpu.matmul %444, %445, %cst_132 {dimension_numbers = #tpu.dot_dimension_numbers<[1], [0], [0], [1], [0, 0, 1, 1], [], []>} : vector<8x32xbf16>, vector<32x128xbf16>, vector<8x128xf32> -> vector<8x128xf32>
    %c0_133 = arith.constant 0 : index
    %c0_134 = arith.constant 0 : index
    %447 = vector.load %arg4[%c0_133, %c0_134] : memref<1x32xf32, #tpu.memory_space<vmem>>, vector<1x32xf32>
    %448 = vector.extract_strided_slice %443 {offsets = [0, 0], sizes = [8, 32], strides = [1, 1]} : vector<8x128xf32> to vector<8x32xf32>
    %449 = vector.extract_strided_slice %446 {offsets = [0, 0], sizes = [8, 32], strides = [1, 1]} : vector<8x128xf32> to vector<8x32xf32>
    %450 = arith.addf %448, %449 : vector<8x32xf32>
    %451 = arith.negf %450 : vector<8x32xf32>
    %452 = math.exp %451 : vector<8x32xf32>
    %cst_135 = arith.constant 1.000000e+00 : f32
    %453 = vector.broadcast %cst_135 : f32 to vector<8x32xf32>
    %454 = arith.addf %453, %452 : vector<8x32xf32>
    %455 = arith.divf %453, %454 : vector<8x32xf32>
    %456 = vector.extract_strided_slice %443 {offsets = [0, 32], sizes = [8, 32], strides = [1, 1]} : vector<8x128xf32> to vector<8x32xf32>
    %457 = vector.extract_strided_slice %446 {offsets = [0, 32], sizes = [8, 32], strides = [1, 1]} : vector<8x128xf32> to vector<8x32xf32>
    %458 = arith.addf %456, %457 : vector<8x32xf32>
    %459 = arith.negf %458 : vector<8x32xf32>
    %460 = math.exp %459 : vector<8x32xf32>
    %cst_136 = arith.constant 1.000000e+00 : f32
    %461 = vector.broadcast %cst_136 : f32 to vector<8x32xf32>
    %462 = arith.addf %461, %460 : vector<8x32xf32>
    %463 = arith.divf %461, %462 : vector<8x32xf32>
    %464 = vector.extract_strided_slice %443 {offsets = [0, 64], sizes = [8, 32], strides = [1, 1]} : vector<8x128xf32> to vector<8x32xf32>
    %465 = vector.extract_strided_slice %446 {offsets = [0, 64], sizes = [8, 32], strides = [1, 1]} : vector<8x128xf32> to vector<8x32xf32>
    %466 = vector.broadcast %447 : vector<1x32xf32> to vector<8x32xf32>
    %467 = arith.addf %465, %466 : vector<8x32xf32>
    %468 = arith.mulf %455, %467 : vector<8x32xf32>
    %469 = arith.addf %464, %468 : vector<8x32xf32>
    %470 = math.tanh %469 : vector<8x32xf32>
    %cst_137 = arith.constant 1.000000e+00 : f32
    %471 = vector.broadcast %cst_137 : f32 to vector<8x32xf32>
    %472 = arith.subf %471, %463 : vector<8x32xf32>
    %473 = arith.mulf %472, %470 : vector<8x32xf32>
    %474 = arith.mulf %463, %413 : vector<8x32xf32>
    %475 = arith.addf %473, %474 : vector<8x32xf32>
    %476 = tpu.concatenate %475, %442 in 1 : vector<8x32xf32>, vector<8x32xf32> -> vector<8x64xf32>
    %477 = arith.truncf %476 : vector<8x64xf32> to vector<8x64xbf16>
    %c0_138 = arith.constant 0 : index
    %c0_139 = arith.constant 0 : index
    %478 = vector.load %arg5[%c0_138, %c0_139] : memref<64x128xbf16, #tpu.memory_space<vmem>>, vector<64x128xbf16>
    %cst_140 = arith.constant dense<0.000000e+00> : vector<8x128xf32>
    %479 = tpu.matmul %477, %478, %cst_140 {dimension_numbers = #tpu.dot_dimension_numbers<[1], [0], [0], [1], [0, 0, 1, 1], [], []>} : vector<8x64xbf16>, vector<64x128xbf16>, vector<8x128xf32> -> vector<8x128xf32>
    %c0_141 = arith.constant 0 : index
    %c0_142 = arith.constant 0 : index
    %480 = vector.load %arg6[%c0_141, %c0_142] : memref<1x128xf32, #tpu.memory_space<vmem>>, vector<1x128xf32>
    %481 = vector.broadcast %480 : vector<1x128xf32> to vector<8x128xf32>
    %482 = arith.addf %479, %481 : vector<8x128xf32>
    %483 = vector.extract_strided_slice %482 {offsets = [0, 0], sizes = [8, 32], strides = [1, 1]} : vector<8x128xf32> to vector<8x32xf32>
    %484 = arith.negf %483 : vector<8x32xf32>
    %485 = math.exp %484 : vector<8x32xf32>
    %cst_143 = arith.constant 1.000000e+00 : f32
    %486 = vector.broadcast %cst_143 : f32 to vector<8x32xf32>
    %487 = arith.addf %486, %485 : vector<8x32xf32>
    %488 = arith.divf %486, %487 : vector<8x32xf32>
    %489 = vector.extract_strided_slice %482 {offsets = [0, 32], sizes = [8, 32], strides = [1, 1]} : vector<8x128xf32> to vector<8x32xf32>
    %490 = arith.negf %489 : vector<8x32xf32>
    %491 = math.exp %490 : vector<8x32xf32>
    %cst_144 = arith.constant 1.000000e+00 : f32
    %492 = vector.broadcast %cst_144 : f32 to vector<8x32xf32>
    %493 = arith.addf %492, %491 : vector<8x32xf32>
    %494 = arith.divf %492, %493 : vector<8x32xf32>
    %495 = vector.extract_strided_slice %482 {offsets = [0, 64], sizes = [8, 32], strides = [1, 1]} : vector<8x128xf32> to vector<8x32xf32>
    %496 = vector.extract_strided_slice %482 {offsets = [0, 96], sizes = [8, 32], strides = [1, 1]} : vector<8x128xf32> to vector<8x32xf32>
    %497 = arith.mulf %488, %496 : vector<8x32xf32>
    %498 = arith.addf %495, %497 : vector<8x32xf32>
    %499 = math.tanh %498 : vector<8x32xf32>
    %cst_145 = arith.constant 1.000000e+00 : f32
    %500 = vector.broadcast %cst_145 : f32 to vector<8x32xf32>
    %501 = arith.subf %500, %494 : vector<8x32xf32>
    %502 = arith.mulf %501, %499 : vector<8x32xf32>
    %503 = arith.mulf %494, %442 : vector<8x32xf32>
    %504 = arith.addf %502, %503 : vector<8x32xf32>
    %505 = arith.truncf %475 : vector<8x32xf32> to vector<8x32xbf16>
    %c0_146 = arith.constant 0 : index
    %c0_147 = arith.constant 0 : index
    %506 = vector.load %arg7[%c0_146, %c0_147] : memref<32x128xbf16, #tpu.memory_space<vmem>>, vector<32x128xbf16>
    %cst_148 = arith.constant dense<0.000000e+00> : vector<8x128xf32>
    %507 = tpu.matmul %505, %506, %cst_148 {dimension_numbers = #tpu.dot_dimension_numbers<[1], [0], [0], [1], [0, 0, 1, 1], [], []>} : vector<8x32xbf16>, vector<32x128xbf16>, vector<8x128xf32> -> vector<8x128xf32>
    %c0_149 = arith.constant 0 : index
    %c0_150 = arith.constant 0 : index
    %508 = vector.load %arg8[%c0_149, %c0_150] : memref<1x128xf32, #tpu.memory_space<vmem>>, vector<1x128xf32>
    %509 = vector.broadcast %508 : vector<1x128xf32> to vector<8x128xf32>
    %510 = arith.addf %507, %509 : vector<8x128xf32>
    %511 = vector.extract_strided_slice %510 {offsets = [0, 0], sizes = [8, 32], strides = [1, 1]} : vector<8x128xf32> to vector<8x32xf32>
    %512 = arith.negf %511 : vector<8x32xf32>
    %513 = math.exp %512 : vector<8x32xf32>
    %cst_151 = arith.constant 1.000000e+00 : f32
    %514 = vector.broadcast %cst_151 : f32 to vector<8x32xf32>
    %515 = arith.addf %514, %513 : vector<8x32xf32>
    %516 = arith.divf %514, %515 : vector<8x32xf32>
    %517 = vector.extract_strided_slice %510 {offsets = [0, 32], sizes = [8, 32], strides = [1, 1]} : vector<8x128xf32> to vector<8x32xf32>
    %518 = arith.negf %517 : vector<8x32xf32>
    %519 = math.exp %518 : vector<8x32xf32>
    %cst_152 = arith.constant 1.000000e+00 : f32
    %520 = vector.broadcast %cst_152 : f32 to vector<8x32xf32>
    %521 = arith.addf %520, %519 : vector<8x32xf32>
    %522 = arith.divf %520, %521 : vector<8x32xf32>
    %c0_153 = arith.constant 0 : index
    %c0_154 = arith.constant 0 : index
    %523 = vector.load %arg9[%c0_153, %c0_154] : memref<1x32xf32, #tpu.memory_space<vmem>>, vector<1x32xf32>
    %524 = vector.extract_strided_slice %510 {offsets = [0, 64], sizes = [8, 32], strides = [1, 1]} : vector<8x128xf32> to vector<8x32xf32>
    %525 = arith.mulf %516, %524 : vector<8x32xf32>
    %526 = vector.broadcast %523 : vector<1x32xf32> to vector<8x32xf32>
    %527 = arith.addf %526, %525 : vector<8x32xf32>
    %528 = math.tanh %527 : vector<8x32xf32>
    %cst_155 = arith.constant 1.000000e+00 : f32
    %529 = vector.broadcast %cst_155 : f32 to vector<8x32xf32>
    %530 = arith.subf %529, %522 : vector<8x32xf32>
    %531 = arith.mulf %530, %528 : vector<8x32xf32>
    %532 = arith.mulf %522, %475 : vector<8x32xf32>
    %533 = arith.addf %531, %532 : vector<8x32xf32>
    %534 = tpu.concatenate %533, %504 in 1 : vector<8x32xf32>, vector<8x32xf32> -> vector<8x64xf32>
    %535 = arith.truncf %534 : vector<8x64xf32> to vector<8x64xbf16>
    %c0_156 = arith.constant 0 : index
    %c0_157 = arith.constant 0 : index
    %536 = vector.load %arg10[%c0_156, %c0_157] : memref<64x128xbf16, #tpu.memory_space<vmem>>, vector<64x128xbf16>
    %cst_158 = arith.constant dense<0.000000e+00> : vector<8x128xf32>
    %537 = tpu.matmul %535, %536, %cst_158 {dimension_numbers = #tpu.dot_dimension_numbers<[1], [0], [0], [1], [0, 0, 1, 1], [], []>} : vector<8x64xbf16>, vector<64x128xbf16>, vector<8x128xf32> -> vector<8x128xf32>
    %c0_159 = arith.constant 0 : index
    %c0_160 = arith.constant 0 : index
    %538 = vector.load %arg11[%c0_159, %c0_160] : memref<1x128xf32, #tpu.memory_space<vmem>>, vector<1x128xf32>
    %539 = vector.broadcast %538 : vector<1x128xf32> to vector<8x128xf32>
    %540 = arith.addf %537, %539 : vector<8x128xf32>
    %541 = vector.extract_strided_slice %540 {offsets = [0, 0], sizes = [8, 32], strides = [1, 1]} : vector<8x128xf32> to vector<8x32xf32>
    %542 = arith.negf %541 : vector<8x32xf32>
    %543 = math.exp %542 : vector<8x32xf32>
    %cst_161 = arith.constant 1.000000e+00 : f32
    %544 = vector.broadcast %cst_161 : f32 to vector<8x32xf32>
    %545 = arith.addf %544, %543 : vector<8x32xf32>
    %546 = arith.divf %544, %545 : vector<8x32xf32>
    %547 = vector.extract_strided_slice %540 {offsets = [0, 32], sizes = [8, 32], strides = [1, 1]} : vector<8x128xf32> to vector<8x32xf32>
    %548 = arith.negf %547 : vector<8x32xf32>
    %549 = math.exp %548 : vector<8x32xf32>
    %cst_162 = arith.constant 1.000000e+00 : f32
    %550 = vector.broadcast %cst_162 : f32 to vector<8x32xf32>
    %551 = arith.addf %550, %549 : vector<8x32xf32>
    %552 = arith.divf %550, %551 : vector<8x32xf32>
    %553 = vector.extract_strided_slice %540 {offsets = [0, 64], sizes = [8, 32], strides = [1, 1]} : vector<8x128xf32> to vector<8x32xf32>
    %554 = vector.extract_strided_slice %540 {offsets = [0, 96], sizes = [8, 32], strides = [1, 1]} : vector<8x128xf32> to vector<8x32xf32>
    %555 = arith.mulf %546, %554 : vector<8x32xf32>
    %556 = arith.addf %553, %555 : vector<8x32xf32>
    %557 = math.tanh %556 : vector<8x32xf32>
    %cst_163 = arith.constant 1.000000e+00 : f32
    %558 = vector.broadcast %cst_163 : f32 to vector<8x32xf32>
    %559 = arith.subf %558, %552 : vector<8x32xf32>
    %560 = arith.mulf %559, %557 : vector<8x32xf32>
    %561 = arith.mulf %552, %504 : vector<8x32xf32>
    %562 = arith.addf %560, %561 : vector<8x32xf32>
    %c0_164 = arith.constant 0 : index
    %c0_165 = arith.constant 0 : index
    %563 = vector.load %arg17[%c0_164, %c0_165] : memref<64x32xf32, #tpu.memory_space<vmem>>, vector<8x32xf32>
    tpu.vector_store %arg17[%c0_164, %c0_165], %562 {strides = array<i32>} : memref<64x32xf32, #tpu.memory_space<vmem>>, vector<8x32xf32>,
    %564 = arith.truncf %533 : vector<8x32xf32> to vector<8x32xbf16>
    %c0_166 = arith.constant 0 : index
    %c0_167 = arith.constant 0 : index
    %565 = vector.load %arg7[%c0_166, %c0_167] : memref<32x128xbf16, #tpu.memory_space<vmem>>, vector<32x128xbf16>
    %cst_168 = arith.constant dense<0.000000e+00> : vector<8x128xf32>
    %566 = tpu.matmul %564, %565, %cst_168 {dimension_numbers = #tpu.dot_dimension_numbers<[1], [0], [0], [1], [0, 0, 1, 1], [], []>} : vector<8x32xbf16>, vector<32x128xbf16>, vector<8x128xf32> -> vector<8x128xf32>
    %c0_169 = arith.constant 0 : index
    %c0_170 = arith.constant 0 : index
    %567 = vector.load %arg8[%c0_169, %c0_170] : memref<1x128xf32, #tpu.memory_space<vmem>>, vector<1x128xf32>
    %568 = vector.broadcast %567 : vector<1x128xf32> to vector<8x128xf32>
    %569 = arith.addf %566, %568 : vector<8x128xf32>
    %570 = vector.extract_strided_slice %569 {offsets = [0, 0], sizes = [8, 32], strides = [1, 1]} : vector<8x128xf32> to vector<8x32xf32>
    %571 = arith.negf %570 : vector<8x32xf32>
    %572 = math.exp %571 : vector<8x32xf32>
    %cst_171 = arith.constant 1.000000e+00 : f32
    %573 = vector.broadcast %cst_171 : f32 to vector<8x32xf32>
    %574 = arith.addf %573, %572 : vector<8x32xf32>
    %575 = arith.divf %573, %574 : vector<8x32xf32>
    %576 = vector.extract_strided_slice %569 {offsets = [0, 32], sizes = [8, 32], strides = [1, 1]} : vector<8x128xf32> to vector<8x32xf32>
    %577 = arith.negf %576 : vector<8x32xf32>
    %578 = math.exp %577 : vector<8x32xf32>
    %cst_172 = arith.constant 1.000000e+00 : f32
    %579 = vector.broadcast %cst_172 : f32 to vector<8x32xf32>
    %580 = arith.addf %579, %578 : vector<8x32xf32>
    %581 = arith.divf %579, %580 : vector<8x32xf32>
    %c0_173 = arith.constant 0 : index
    %c0_174 = arith.constant 0 : index
    %582 = vector.load %arg9[%c0_173, %c0_174] : memref<1x32xf32, #tpu.memory_space<vmem>>, vector<1x32xf32>
    %583 = vector.extract_strided_slice %569 {offsets = [0, 64], sizes = [8, 32], strides = [1, 1]} : vector<8x128xf32> to vector<8x32xf32>
    %584 = arith.mulf %575, %583 : vector<8x32xf32>
    %585 = vector.broadcast %582 : vector<1x32xf32> to vector<8x32xf32>
    %586 = arith.addf %585, %584 : vector<8x32xf32>
    %587 = math.tanh %586 : vector<8x32xf32>
    %cst_175 = arith.constant 1.000000e+00 : f32
    %588 = vector.broadcast %cst_175 : f32 to vector<8x32xf32>
    %589 = arith.subf %588, %581 : vector<8x32xf32>
    %590 = arith.mulf %589, %587 : vector<8x32xf32>
    %591 = arith.mulf %581, %533 : vector<8x32xf32>
    %592 = arith.addf %590, %591 : vector<8x32xf32>
    %593 = tpu.concatenate %592, %562 in 1 : vector<8x32xf32>, vector<8x32xf32> -> vector<8x64xf32>
    %594 = arith.truncf %593 : vector<8x64xf32> to vector<8x64xbf16>
    %c0_176 = arith.constant 0 : index
    %c0_177 = arith.constant 0 : index
    %595 = vector.load %arg10[%c0_176, %c0_177] : memref<64x128xbf16, #tpu.memory_space<vmem>>, vector<64x128xbf16>
    %cst_178 = arith.constant dense<0.000000e+00> : vector<8x128xf32>
    %596 = tpu.matmul %594, %595, %cst_178 {dimension_numbers = #tpu.dot_dimension_numbers<[1], [0], [0], [1], [0, 0, 1, 1], [], []>} : vector<8x64xbf16>, vector<64x128xbf16>, vector<8x128xf32> -> vector<8x128xf32>
    %c0_179 = arith.constant 0 : index
    %c0_180 = arith.constant 0 : index
    %597 = vector.load %arg11[%c0_179, %c0_180] : memref<1x128xf32, #tpu.memory_space<vmem>>, vector<1x128xf32>
    %598 = vector.broadcast %597 : vector<1x128xf32> to vector<8x128xf32>
    %599 = arith.addf %596, %598 : vector<8x128xf32>
    %600 = vector.extract_strided_slice %599 {offsets = [0, 0], sizes = [8, 32], strides = [1, 1]} : vector<8x128xf32> to vector<8x32xf32>
    %601 = arith.negf %600 : vector<8x32xf32>
    %602 = math.exp %601 : vector<8x32xf32>
    %cst_181 = arith.constant 1.000000e+00 : f32
    %603 = vector.broadcast %cst_181 : f32 to vector<8x32xf32>
    %604 = arith.addf %603, %602 : vector<8x32xf32>
    %605 = arith.divf %603, %604 : vector<8x32xf32>
    %606 = vector.extract_strided_slice %599 {offsets = [0, 32], sizes = [8, 32], strides = [1, 1]} : vector<8x128xf32> to vector<8x32xf32>
    %607 = arith.negf %606 : vector<8x32xf32>
    %608 = math.exp %607 : vector<8x32xf32>
    %cst_182 = arith.constant 1.000000e+00 : f32
    %609 = vector.broadcast %cst_182 : f32 to vector<8x32xf32>
    %610 = arith.addf %609, %608 : vector<8x32xf32>
    %611 = arith.divf %609, %610 : vector<8x32xf32>
    %612 = vector.extract_strided_slice %599 {offsets = [0, 64], sizes = [8, 32], strides = [1, 1]} : vector<8x128xf32> to vector<8x32xf32>
    %613 = vector.extract_strided_slice %599 {offsets = [0, 96], sizes = [8, 32], strides = [1, 1]} : vector<8x128xf32> to vector<8x32xf32>
    %614 = arith.mulf %605, %613 : vector<8x32xf32>
    %615 = arith.addf %612, %614 : vector<8x32xf32>
    %616 = math.tanh %615 : vector<8x32xf32>
    %cst_183 = arith.constant 1.000000e+00 : f32
    %617 = vector.broadcast %cst_183 : f32 to vector<8x32xf32>
    %618 = arith.subf %617, %611 : vector<8x32xf32>
    %619 = arith.mulf %618, %616 : vector<8x32xf32>
    %620 = arith.mulf %611, %562 : vector<8x32xf32>
    %621 = arith.addf %619, %620 : vector<8x32xf32>
    %c8_184 = arith.constant 8 : index
    %c0_185 = arith.constant 0 : index
    %622 = vector.load %arg17[%c8_184, %c0_185] : memref<64x32xf32, #tpu.memory_space<vmem>>, vector<8x32xf32>
    tpu.vector_store %arg17[%c8_184, %c0_185], %621 {strides = array<i32>} : memref<64x32xf32, #tpu.memory_space<vmem>>, vector<8x32xf32>,
    %623 = arith.truncf %592 : vector<8x32xf32> to vector<8x32xbf16>
    %c0_186 = arith.constant 0 : index
    %c0_187 = arith.constant 0 : index
    %624 = vector.load %arg7[%c0_186, %c0_187] : memref<32x128xbf16, #tpu.memory_space<vmem>>, vector<32x128xbf16>
    %cst_188 = arith.constant dense<0.000000e+00> : vector<8x128xf32>
    %625 = tpu.matmul %623, %624, %cst_188 {dimension_numbers = #tpu.dot_dimension_numbers<[1], [0], [0], [1], [0, 0, 1, 1], [], []>} : vector<8x32xbf16>, vector<32x128xbf16>, vector<8x128xf32> -> vector<8x128xf32>
    %c0_189 = arith.constant 0 : index
    %c0_190 = arith.constant 0 : index
    %626 = vector.load %arg8[%c0_189, %c0_190] : memref<1x128xf32, #tpu.memory_space<vmem>>, vector<1x128xf32>
    %627 = vector.broadcast %626 : vector<1x128xf32> to vector<8x128xf32>
    %628 = arith.addf %625, %627 : vector<8x128xf32>
    %629 = vector.extract_strided_slice %628 {offsets = [0, 0], sizes = [8, 32], strides = [1, 1]} : vector<8x128xf32> to vector<8x32xf32>
    %630 = arith.negf %629 : vector<8x32xf32>
    %631 = math.exp %630 : vector<8x32xf32>
    %cst_191 = arith.constant 1.000000e+00 : f32
    %632 = vector.broadcast %cst_191 : f32 to vector<8x32xf32>
    %633 = arith.addf %632, %631 : vector<8x32xf32>
    %634 = arith.divf %632, %633 : vector<8x32xf32>
    %635 = vector.extract_strided_slice %628 {offsets = [0, 32], sizes = [8, 32], strides = [1, 1]} : vector<8x128xf32> to vector<8x32xf32>
    %636 = arith.negf %635 : vector<8x32xf32>
    %637 = math.exp %636 : vector<8x32xf32>
    %cst_192 = arith.constant 1.000000e+00 : f32
    %638 = vector.broadcast %cst_192 : f32 to vector<8x32xf32>
    %639 = arith.addf %638, %637 : vector<8x32xf32>
    %640 = arith.divf %638, %639 : vector<8x32xf32>
    %c0_193 = arith.constant 0 : index
    %c0_194 = arith.constant 0 : index
    %641 = vector.load %arg9[%c0_193, %c0_194] : memref<1x32xf32, #tpu.memory_space<vmem>>, vector<1x32xf32>
    %642 = vector.extract_strided_slice %628 {offsets = [0, 64], sizes = [8, 32], strides = [1, 1]} : vector<8x128xf32> to vector<8x32xf32>
    %643 = arith.mulf %634, %642 : vector<8x32xf32>
    %644 = vector.broadcast %641 : vector<1x32xf32> to vector<8x32xf32>
    %645 = arith.addf %644, %643 : vector<8x32xf32>
    %646 = math.tanh %645 : vector<8x32xf32>
    %cst_195 = arith.constant 1.000000e+00 : f32
    %647 = vector.broadcast %cst_195 : f32 to vector<8x32xf32>
    %648 = arith.subf %647, %640 : vector<8x32xf32>
    %649 = arith.mulf %648, %646 : vector<8x32xf32>
    %650 = arith.mulf %640, %592 : vector<8x32xf32>
    %651 = arith.addf %649, %650 : vector<8x32xf32>
    %652 = tpu.concatenate %651, %621 in 1 : vector<8x32xf32>, vector<8x32xf32> -> vector<8x64xf32>
    %653 = arith.truncf %652 : vector<8x64xf32> to vector<8x64xbf16>
    %c0_196 = arith.constant 0 : index
    %c0_197 = arith.constant 0 : index
    %654 = vector.load %arg10[%c0_196, %c0_197] : memref<64x128xbf16, #tpu.memory_space<vmem>>, vector<64x128xbf16>
    %cst_198 = arith.constant dense<0.000000e+00> : vector<8x128xf32>
    %655 = tpu.matmul %653, %654, %cst_198 {dimension_numbers = #tpu.dot_dimension_numbers<[1], [0], [0], [1], [0, 0, 1, 1], [], []>} : vector<8x64xbf16>, vector<64x128xbf16>, vector<8x128xf32> -> vector<8x128xf32>
    %c0_199 = arith.constant 0 : index
    %c0_200 = arith.constant 0 : index
    %656 = vector.load %arg11[%c0_199, %c0_200] : memref<1x128xf32, #tpu.memory_space<vmem>>, vector<1x128xf32>
    %657 = vector.broadcast %656 : vector<1x128xf32> to vector<8x128xf32>
    %658 = arith.addf %655, %657 : vector<8x128xf32>
    %659 = vector.extract_strided_slice %658 {offsets = [0, 0], sizes = [8, 32], strides = [1, 1]} : vector<8x128xf32> to vector<8x32xf32>
    %660 = arith.negf %659 : vector<8x32xf32>
    %661 = math.exp %660 : vector<8x32xf32>
    %cst_201 = arith.constant 1.000000e+00 : f32
    %662 = vector.broadcast %cst_201 : f32 to vector<8x32xf32>
    %663 = arith.addf %662, %661 : vector<8x32xf32>
    %664 = arith.divf %662, %663 : vector<8x32xf32>
    %665 = vector.extract_strided_slice %658 {offsets = [0, 32], sizes = [8, 32], strides = [1, 1]} : vector<8x128xf32> to vector<8x32xf32>
    %666 = arith.negf %665 : vector<8x32xf32>
    %667 = math.exp %666 : vector<8x32xf32>
    %cst_202 = arith.constant 1.000000e+00 : f32
    %668 = vector.broadcast %cst_202 : f32 to vector<8x32xf32>
    %669 = arith.addf %668, %667 : vector<8x32xf32>
    %670 = arith.divf %668, %669 : vector<8x32xf32>
    %671 = vector.extract_strided_slice %658 {offsets = [0, 64], sizes = [8, 32], strides = [1, 1]} : vector<8x128xf32> to vector<8x32xf32>
    %672 = vector.extract_strided_slice %658 {offsets = [0, 96], sizes = [8, 32], strides = [1, 1]} : vector<8x128xf32> to vector<8x32xf32>
    %673 = arith.mulf %664, %672 : vector<8x32xf32>
    %674 = arith.addf %671, %673 : vector<8x32xf32>
    %675 = math.tanh %674 : vector<8x32xf32>
    %cst_203 = arith.constant 1.000000e+00 : f32
    %676 = vector.broadcast %cst_203 : f32 to vector<8x32xf32>
    %677 = arith.subf %676, %670 : vector<8x32xf32>
    %678 = arith.mulf %677, %675 : vector<8x32xf32>
    %679 = arith.mulf %670, %621 : vector<8x32xf32>
    %680 = arith.addf %678, %679 : vector<8x32xf32>
    %c16_204 = arith.constant 16 : index
    %c0_205 = arith.constant 0 : index
    %681 = vector.load %arg17[%c16_204, %c0_205] : memref<64x32xf32, #tpu.memory_space<vmem>>, vector<8x32xf32>
    tpu.vector_store %arg17[%c16_204, %c0_205], %680 {strides = array<i32>} : memref<64x32xf32, #tpu.memory_space<vmem>>, vector<8x32xf32>,
    %682 = arith.truncf %651 : vector<8x32xf32> to vector<8x32xbf16>
    %c0_206 = arith.constant 0 : index
    %c0_207 = arith.constant 0 : index
    %683 = vector.load %arg7[%c0_206, %c0_207] : memref<32x128xbf16, #tpu.memory_space<vmem>>, vector<32x128xbf16>
    %cst_208 = arith.constant dense<0.000000e+00> : vector<8x128xf32>
    %684 = tpu.matmul %682, %683, %cst_208 {dimension_numbers = #tpu.dot_dimension_numbers<[1], [0], [0], [1], [0, 0, 1, 1], [], []>} : vector<8x32xbf16>, vector<32x128xbf16>, vector<8x128xf32> -> vector<8x128xf32>
    %c0_209 = arith.constant 0 : index
    %c0_210 = arith.constant 0 : index
    %685 = vector.load %arg8[%c0_209, %c0_210] : memref<1x128xf32, #tpu.memory_space<vmem>>, vector<1x128xf32>
    %686 = vector.broadcast %685 : vector<1x128xf32> to vector<8x128xf32>
    %687 = arith.addf %684, %686 : vector<8x128xf32>
    %688 = vector.extract_strided_slice %687 {offsets = [0, 0], sizes = [8, 32], strides = [1, 1]} : vector<8x128xf32> to vector<8x32xf32>
    %689 = arith.negf %688 : vector<8x32xf32>
    %690 = math.exp %689 : vector<8x32xf32>
    %cst_211 = arith.constant 1.000000e+00 : f32
    %691 = vector.broadcast %cst_211 : f32 to vector<8x32xf32>
    %692 = arith.addf %691, %690 : vector<8x32xf32>
    %693 = arith.divf %691, %692 : vector<8x32xf32>
    %694 = vector.extract_strided_slice %687 {offsets = [0, 32], sizes = [8, 32], strides = [1, 1]} : vector<8x128xf32> to vector<8x32xf32>
    %695 = arith.negf %694 : vector<8x32xf32>
    %696 = math.exp %695 : vector<8x32xf32>
    %cst_212 = arith.constant 1.000000e+00 : f32
    %697 = vector.broadcast %cst_212 : f32 to vector<8x32xf32>
    %698 = arith.addf %697, %696 : vector<8x32xf32>
    %699 = arith.divf %697, %698 : vector<8x32xf32>
    %c0_213 = arith.constant 0 : index
    %c0_214 = arith.constant 0 : index
    %700 = vector.load %arg9[%c0_213, %c0_214] : memref<1x32xf32, #tpu.memory_space<vmem>>, vector<1x32xf32>
    %701 = vector.extract_strided_slice %687 {offsets = [0, 64], sizes = [8, 32], strides = [1, 1]} : vector<8x128xf32> to vector<8x32xf32>
    %702 = arith.mulf %693, %701 : vector<8x32xf32>
    %703 = vector.broadcast %700 : vector<1x32xf32> to vector<8x32xf32>
    %704 = arith.addf %703, %702 : vector<8x32xf32>
    %705 = math.tanh %704 : vector<8x32xf32>
    %cst_215 = arith.constant 1.000000e+00 : f32
    %706 = vector.broadcast %cst_215 : f32 to vector<8x32xf32>
    %707 = arith.subf %706, %699 : vector<8x32xf32>
    %708 = arith.mulf %707, %705 : vector<8x32xf32>
    %709 = arith.mulf %699, %651 : vector<8x32xf32>
    %710 = arith.addf %708, %709 : vector<8x32xf32>
    %711 = tpu.concatenate %710, %680 in 1 : vector<8x32xf32>, vector<8x32xf32> -> vector<8x64xf32>
    %712 = arith.truncf %711 : vector<8x64xf32> to vector<8x64xbf16>
    %c0_216 = arith.constant 0 : index
    %c0_217 = arith.constant 0 : index
    %713 = vector.load %arg10[%c0_216, %c0_217] : memref<64x128xbf16, #tpu.memory_space<vmem>>, vector<64x128xbf16>
    %cst_218 = arith.constant dense<0.000000e+00> : vector<8x128xf32>
    %714 = tpu.matmul %712, %713, %cst_218 {dimension_numbers = #tpu.dot_dimension_numbers<[1], [0], [0], [1], [0, 0, 1, 1], [], []>} : vector<8x64xbf16>, vector<64x128xbf16>, vector<8x128xf32> -> vector<8x128xf32>
    %c0_219 = arith.constant 0 : index
    %c0_220 = arith.constant 0 : index
    %715 = vector.load %arg11[%c0_219, %c0_220] : memref<1x128xf32, #tpu.memory_space<vmem>>, vector<1x128xf32>
    %716 = vector.broadcast %715 : vector<1x128xf32> to vector<8x128xf32>
    %717 = arith.addf %714, %716 : vector<8x128xf32>
    %718 = vector.extract_strided_slice %717 {offsets = [0, 0], sizes = [8, 32], strides = [1, 1]} : vector<8x128xf32> to vector<8x32xf32>
    %719 = arith.negf %718 : vector<8x32xf32>
    %720 = math.exp %719 : vector<8x32xf32>
    %cst_221 = arith.constant 1.000000e+00 : f32
    %721 = vector.broadcast %cst_221 : f32 to vector<8x32xf32>
    %722 = arith.addf %721, %720 : vector<8x32xf32>
    %723 = arith.divf %721, %722 : vector<8x32xf32>
    %724 = vector.extract_strided_slice %717 {offsets = [0, 32], sizes = [8, 32], strides = [1, 1]} : vector<8x128xf32> to vector<8x32xf32>
    %725 = arith.negf %724 : vector<8x32xf32>
    %726 = math.exp %725 : vector<8x32xf32>
    %cst_222 = arith.constant 1.000000e+00 : f32
    %727 = vector.broadcast %cst_222 : f32 to vector<8x32xf32>
    %728 = arith.addf %727, %726 : vector<8x32xf32>
    %729 = arith.divf %727, %728 : vector<8x32xf32>
    %730 = vector.extract_strided_slice %717 {offsets = [0, 64], sizes = [8, 32], strides = [1, 1]} : vector<8x128xf32> to vector<8x32xf32>
    %731 = vector.extract_strided_slice %717 {offsets = [0, 96], sizes = [8, 32], strides = [1, 1]} : vector<8x128xf32> to vector<8x32xf32>
    %732 = arith.mulf %723, %731 : vector<8x32xf32>
    %733 = arith.addf %730, %732 : vector<8x32xf32>
    %734 = math.tanh %733 : vector<8x32xf32>
    %cst_223 = arith.constant 1.000000e+00 : f32
    %735 = vector.broadcast %cst_223 : f32 to vector<8x32xf32>
    %736 = arith.subf %735, %729 : vector<8x32xf32>
    %737 = arith.mulf %736, %734 : vector<8x32xf32>
    %738 = arith.mulf %729, %680 : vector<8x32xf32>
    %739 = arith.addf %737, %738 : vector<8x32xf32>
    %c24_224 = arith.constant 24 : index
    %c0_225 = arith.constant 0 : index
    %740 = vector.load %arg17[%c24_224, %c0_225] : memref<64x32xf32, #tpu.memory_space<vmem>>, vector<8x32xf32>
    tpu.vector_store %arg17[%c24_224, %c0_225], %739 {strides = array<i32>} : memref<64x32xf32, #tpu.memory_space<vmem>>, vector<8x32xf32>,
    %741 = arith.truncf %710 : vector<8x32xf32> to vector<8x32xbf16>
    %c0_226 = arith.constant 0 : index
    %c0_227 = arith.constant 0 : index
    %742 = vector.load %arg7[%c0_226, %c0_227] : memref<32x128xbf16, #tpu.memory_space<vmem>>, vector<32x128xbf16>
    %cst_228 = arith.constant dense<0.000000e+00> : vector<8x128xf32>
    %743 = tpu.matmul %741, %742, %cst_228 {dimension_numbers = #tpu.dot_dimension_numbers<[1], [0], [0], [1], [0, 0, 1, 1], [], []>} : vector<8x32xbf16>, vector<32x128xbf16>, vector<8x128xf32> -> vector<8x128xf32>
    %c0_229 = arith.constant 0 : index
    %c0_230 = arith.constant 0 : index
    %744 = vector.load %arg8[%c0_229, %c0_230] : memref<1x128xf32, #tpu.memory_space<vmem>>, vector<1x128xf32>
    %745 = vector.broadcast %744 : vector<1x128xf32> to vector<8x128xf32>
    %746 = arith.addf %743, %745 : vector<8x128xf32>
    %747 = vector.extract_strided_slice %746 {offsets = [0, 0], sizes = [8, 32], strides = [1, 1]} : vector<8x128xf32> to vector<8x32xf32>
    %748 = arith.negf %747 : vector<8x32xf32>
    %749 = math.exp %748 : vector<8x32xf32>
    %cst_231 = arith.constant 1.000000e+00 : f32
    %750 = vector.broadcast %cst_231 : f32 to vector<8x32xf32>
    %751 = arith.addf %750, %749 : vector<8x32xf32>
    %752 = arith.divf %750, %751 : vector<8x32xf32>
    %753 = vector.extract_strided_slice %746 {offsets = [0, 32], sizes = [8, 32], strides = [1, 1]} : vector<8x128xf32> to vector<8x32xf32>
    %754 = arith.negf %753 : vector<8x32xf32>
    %755 = math.exp %754 : vector<8x32xf32>
    %cst_232 = arith.constant 1.000000e+00 : f32
    %756 = vector.broadcast %cst_232 : f32 to vector<8x32xf32>
    %757 = arith.addf %756, %755 : vector<8x32xf32>
    %758 = arith.divf %756, %757 : vector<8x32xf32>
    %c0_233 = arith.constant 0 : index
    %c0_234 = arith.constant 0 : index
    %759 = vector.load %arg9[%c0_233, %c0_234] : memref<1x32xf32, #tpu.memory_space<vmem>>, vector<1x32xf32>
    %760 = vector.extract_strided_slice %746 {offsets = [0, 64], sizes = [8, 32], strides = [1, 1]} : vector<8x128xf32> to vector<8x32xf32>
    %761 = arith.mulf %752, %760 : vector<8x32xf32>
    %762 = vector.broadcast %759 : vector<1x32xf32> to vector<8x32xf32>
    %763 = arith.addf %762, %761 : vector<8x32xf32>
    %764 = math.tanh %763 : vector<8x32xf32>
    %cst_235 = arith.constant 1.000000e+00 : f32
    %765 = vector.broadcast %cst_235 : f32 to vector<8x32xf32>
    %766 = arith.subf %765, %758 : vector<8x32xf32>
    %767 = arith.mulf %766, %764 : vector<8x32xf32>
    %768 = arith.mulf %758, %710 : vector<8x32xf32>
    %769 = arith.addf %767, %768 : vector<8x32xf32>
    %770 = tpu.concatenate %769, %739 in 1 : vector<8x32xf32>, vector<8x32xf32> -> vector<8x64xf32>
    %771 = arith.truncf %770 : vector<8x64xf32> to vector<8x64xbf16>
    %c0_236 = arith.constant 0 : index
    %c0_237 = arith.constant 0 : index
    %772 = vector.load %arg10[%c0_236, %c0_237] : memref<64x128xbf16, #tpu.memory_space<vmem>>, vector<64x128xbf16>
    %cst_238 = arith.constant dense<0.000000e+00> : vector<8x128xf32>
    %773 = tpu.matmul %771, %772, %cst_238 {dimension_numbers = #tpu.dot_dimension_numbers<[1], [0], [0], [1], [0, 0, 1, 1], [], []>} : vector<8x64xbf16>, vector<64x128xbf16>, vector<8x128xf32> -> vector<8x128xf32>
    %c0_239 = arith.constant 0 : index
    %c0_240 = arith.constant 0 : index
    %774 = vector.load %arg11[%c0_239, %c0_240] : memref<1x128xf32, #tpu.memory_space<vmem>>, vector<1x128xf32>
    %775 = vector.broadcast %774 : vector<1x128xf32> to vector<8x128xf32>
    %776 = arith.addf %773, %775 : vector<8x128xf32>
    %777 = vector.extract_strided_slice %776 {offsets = [0, 0], sizes = [8, 32], strides = [1, 1]} : vector<8x128xf32> to vector<8x32xf32>
    %778 = arith.negf %777 : vector<8x32xf32>
    %779 = math.exp %778 : vector<8x32xf32>
    %cst_241 = arith.constant 1.000000e+00 : f32
    %780 = vector.broadcast %cst_241 : f32 to vector<8x32xf32>
    %781 = arith.addf %780, %779 : vector<8x32xf32>
    %782 = arith.divf %780, %781 : vector<8x32xf32>
    %783 = vector.extract_strided_slice %776 {offsets = [0, 32], sizes = [8, 32], strides = [1, 1]} : vector<8x128xf32> to vector<8x32xf32>
    %784 = arith.negf %783 : vector<8x32xf32>
    %785 = math.exp %784 : vector<8x32xf32>
    %cst_242 = arith.constant 1.000000e+00 : f32
    %786 = vector.broadcast %cst_242 : f32 to vector<8x32xf32>
    %787 = arith.addf %786, %785 : vector<8x32xf32>
    %788 = arith.divf %786, %787 : vector<8x32xf32>
    %789 = vector.extract_strided_slice %776 {offsets = [0, 64], sizes = [8, 32], strides = [1, 1]} : vector<8x128xf32> to vector<8x32xf32>
    %790 = vector.extract_strided_slice %776 {offsets = [0, 96], sizes = [8, 32], strides = [1, 1]} : vector<8x128xf32> to vector<8x32xf32>
    %791 = arith.mulf %782, %790 : vector<8x32xf32>
    %792 = arith.addf %789, %791 : vector<8x32xf32>
    %793 = math.tanh %792 : vector<8x32xf32>
    %cst_243 = arith.constant 1.000000e+00 : f32
    %794 = vector.broadcast %cst_243 : f32 to vector<8x32xf32>
    %795 = arith.subf %794, %788 : vector<8x32xf32>
    %796 = arith.mulf %795, %793 : vector<8x32xf32>
    %797 = arith.mulf %788, %739 : vector<8x32xf32>
    %798 = arith.addf %796, %797 : vector<8x32xf32>
    %c32_244 = arith.constant 32 : index
    %c0_245 = arith.constant 0 : index
    %799 = vector.load %arg17[%c32_244, %c0_245] : memref<64x32xf32, #tpu.memory_space<vmem>>, vector<8x32xf32>
    tpu.vector_store %arg17[%c32_244, %c0_245], %798 {strides = array<i32>} : memref<64x32xf32, #tpu.memory_space<vmem>>, vector<8x32xf32>,
    %800 = arith.truncf %769 : vector<8x32xf32> to vector<8x32xbf16>
    %c0_246 = arith.constant 0 : index
    %c0_247 = arith.constant 0 : index
    %801 = vector.load %arg7[%c0_246, %c0_247] : memref<32x128xbf16, #tpu.memory_space<vmem>>, vector<32x128xbf16>
    %cst_248 = arith.constant dense<0.000000e+00> : vector<8x128xf32>
    %802 = tpu.matmul %800, %801, %cst_248 {dimension_numbers = #tpu.dot_dimension_numbers<[1], [0], [0], [1], [0, 0, 1, 1], [], []>} : vector<8x32xbf16>, vector<32x128xbf16>, vector<8x128xf32> -> vector<8x128xf32>
    %c0_249 = arith.constant 0 : index
    %c0_250 = arith.constant 0 : index
    %803 = vector.load %arg8[%c0_249, %c0_250] : memref<1x128xf32, #tpu.memory_space<vmem>>, vector<1x128xf32>
    %804 = vector.broadcast %803 : vector<1x128xf32> to vector<8x128xf32>
    %805 = arith.addf %802, %804 : vector<8x128xf32>
    %806 = vector.extract_strided_slice %805 {offsets = [0, 0], sizes = [8, 32], strides = [1, 1]} : vector<8x128xf32> to vector<8x32xf32>
    %807 = arith.negf %806 : vector<8x32xf32>
    %808 = math.exp %807 : vector<8x32xf32>
    %cst_251 = arith.constant 1.000000e+00 : f32
    %809 = vector.broadcast %cst_251 : f32 to vector<8x32xf32>
    %810 = arith.addf %809, %808 : vector<8x32xf32>
    %811 = arith.divf %809, %810 : vector<8x32xf32>
    %812 = vector.extract_strided_slice %805 {offsets = [0, 32], sizes = [8, 32], strides = [1, 1]} : vector<8x128xf32> to vector<8x32xf32>
    %813 = arith.negf %812 : vector<8x32xf32>
    %814 = math.exp %813 : vector<8x32xf32>
    %cst_252 = arith.constant 1.000000e+00 : f32
    %815 = vector.broadcast %cst_252 : f32 to vector<8x32xf32>
    %816 = arith.addf %815, %814 : vector<8x32xf32>
    %817 = arith.divf %815, %816 : vector<8x32xf32>
    %c0_253 = arith.constant 0 : index
    %c0_254 = arith.constant 0 : index
    %818 = vector.load %arg9[%c0_253, %c0_254] : memref<1x32xf32, #tpu.memory_space<vmem>>, vector<1x32xf32>
    %819 = vector.extract_strided_slice %805 {offsets = [0, 64], sizes = [8, 32], strides = [1, 1]} : vector<8x128xf32> to vector<8x32xf32>
    %820 = arith.mulf %811, %819 : vector<8x32xf32>
    %821 = vector.broadcast %818 : vector<1x32xf32> to vector<8x32xf32>
    %822 = arith.addf %821, %820 : vector<8x32xf32>
    %823 = math.tanh %822 : vector<8x32xf32>
    %cst_255 = arith.constant 1.000000e+00 : f32
    %824 = vector.broadcast %cst_255 : f32 to vector<8x32xf32>
    %825 = arith.subf %824, %817 : vector<8x32xf32>
    %826 = arith.mulf %825, %823 : vector<8x32xf32>
    %827 = arith.mulf %817, %769 : vector<8x32xf32>
    %828 = arith.addf %826, %827 : vector<8x32xf32>
    %829 = tpu.concatenate %828, %798 in 1 : vector<8x32xf32>, vector<8x32xf32> -> vector<8x64xf32>
    %830 = arith.truncf %829 : vector<8x64xf32> to vector<8x64xbf16>
    %c0_256 = arith.constant 0 : index
    %c0_257 = arith.constant 0 : index
    %831 = vector.load %arg10[%c0_256, %c0_257] : memref<64x128xbf16, #tpu.memory_space<vmem>>, vector<64x128xbf16>
    %cst_258 = arith.constant dense<0.000000e+00> : vector<8x128xf32>
    %832 = tpu.matmul %830, %831, %cst_258 {dimension_numbers = #tpu.dot_dimension_numbers<[1], [0], [0], [1], [0, 0, 1, 1], [], []>} : vector<8x64xbf16>, vector<64x128xbf16>, vector<8x128xf32> -> vector<8x128xf32>
    %c0_259 = arith.constant 0 : index
    %c0_260 = arith.constant 0 : index
    %833 = vector.load %arg11[%c0_259, %c0_260] : memref<1x128xf32, #tpu.memory_space<vmem>>, vector<1x128xf32>
    %834 = vector.broadcast %833 : vector<1x128xf32> to vector<8x128xf32>
    %835 = arith.addf %832, %834 : vector<8x128xf32>
    %836 = vector.extract_strided_slice %835 {offsets = [0, 0], sizes = [8, 32], strides = [1, 1]} : vector<8x128xf32> to vector<8x32xf32>
    %837 = arith.negf %836 : vector<8x32xf32>
    %838 = math.exp %837 : vector<8x32xf32>
    %cst_261 = arith.constant 1.000000e+00 : f32
    %839 = vector.broadcast %cst_261 : f32 to vector<8x32xf32>
    %840 = arith.addf %839, %838 : vector<8x32xf32>
    %841 = arith.divf %839, %840 : vector<8x32xf32>
    %842 = vector.extract_strided_slice %835 {offsets = [0, 32], sizes = [8, 32], strides = [1, 1]} : vector<8x128xf32> to vector<8x32xf32>
    %843 = arith.negf %842 : vector<8x32xf32>
    %844 = math.exp %843 : vector<8x32xf32>
    %cst_262 = arith.constant 1.000000e+00 : f32
    %845 = vector.broadcast %cst_262 : f32 to vector<8x32xf32>
    %846 = arith.addf %845, %844 : vector<8x32xf32>
    %847 = arith.divf %845, %846 : vector<8x32xf32>
    %848 = vector.extract_strided_slice %835 {offsets = [0, 64], sizes = [8, 32], strides = [1, 1]} : vector<8x128xf32> to vector<8x32xf32>
    %849 = vector.extract_strided_slice %835 {offsets = [0, 96], sizes = [8, 32], strides = [1, 1]} : vector<8x128xf32> to vector<8x32xf32>
    %850 = arith.mulf %841, %849 : vector<8x32xf32>
    %851 = arith.addf %848, %850 : vector<8x32xf32>
    %852 = math.tanh %851 : vector<8x32xf32>
    %cst_263 = arith.constant 1.000000e+00 : f32
    %853 = vector.broadcast %cst_263 : f32 to vector<8x32xf32>
    %854 = arith.subf %853, %847 : vector<8x32xf32>
    %855 = arith.mulf %854, %852 : vector<8x32xf32>
    %856 = arith.mulf %847, %798 : vector<8x32xf32>
    %857 = arith.addf %855, %856 : vector<8x32xf32>
    %c40_264 = arith.constant 40 : index
    %c0_265 = arith.constant 0 : index
    %858 = vector.load %arg17[%c40_264, %c0_265] : memref<64x32xf32, #tpu.memory_space<vmem>>, vector<8x32xf32>
    tpu.vector_store %arg17[%c40_264, %c0_265], %857 {strides = array<i32>} : memref<64x32xf32, #tpu.memory_space<vmem>>, vector<8x32xf32>,
    %859 = arith.truncf %828 : vector<8x32xf32> to vector<8x32xbf16>
    %c0_266 = arith.constant 0 : index
    %c0_267 = arith.constant 0 : index
    %860 = vector.load %arg7[%c0_266, %c0_267] : memref<32x128xbf16, #tpu.memory_space<vmem>>, vector<32x128xbf16>
    %cst_268 = arith.constant dense<0.000000e+00> : vector<8x128xf32>
    %861 = tpu.matmul %859, %860, %cst_268 {dimension_numbers = #tpu.dot_dimension_numbers<[1], [0], [0], [1], [0, 0, 1, 1], [], []>} : vector<8x32xbf16>, vector<32x128xbf16>, vector<8x128xf32> -> vector<8x128xf32>
    %c0_269 = arith.constant 0 : index
    %c0_270 = arith.constant 0 : index
    %862 = vector.load %arg8[%c0_269, %c0_270] : memref<1x128xf32, #tpu.memory_space<vmem>>, vector<1x128xf32>
    %863 = vector.broadcast %862 : vector<1x128xf32> to vector<8x128xf32>
    %864 = arith.addf %861, %863 : vector<8x128xf32>
    %865 = vector.extract_strided_slice %864 {offsets = [0, 0], sizes = [8, 32], strides = [1, 1]} : vector<8x128xf32> to vector<8x32xf32>
    %866 = arith.negf %865 : vector<8x32xf32>
    %867 = math.exp %866 : vector<8x32xf32>
    %cst_271 = arith.constant 1.000000e+00 : f32
    %868 = vector.broadcast %cst_271 : f32 to vector<8x32xf32>
    %869 = arith.addf %868, %867 : vector<8x32xf32>
    %870 = arith.divf %868, %869 : vector<8x32xf32>
    %871 = vector.extract_strided_slice %864 {offsets = [0, 32], sizes = [8, 32], strides = [1, 1]} : vector<8x128xf32> to vector<8x32xf32>
    %872 = arith.negf %871 : vector<8x32xf32>
    %873 = math.exp %872 : vector<8x32xf32>
    %cst_272 = arith.constant 1.000000e+00 : f32
    %874 = vector.broadcast %cst_272 : f32 to vector<8x32xf32>
    %875 = arith.addf %874, %873 : vector<8x32xf32>
    %876 = arith.divf %874, %875 : vector<8x32xf32>
    %c0_273 = arith.constant 0 : index
    %c0_274 = arith.constant 0 : index
    %877 = vector.load %arg9[%c0_273, %c0_274] : memref<1x32xf32, #tpu.memory_space<vmem>>, vector<1x32xf32>
    %878 = vector.extract_strided_slice %864 {offsets = [0, 64], sizes = [8, 32], strides = [1, 1]} : vector<8x128xf32> to vector<8x32xf32>
    %879 = arith.mulf %870, %878 : vector<8x32xf32>
    %880 = vector.broadcast %877 : vector<1x32xf32> to vector<8x32xf32>
    %881 = arith.addf %880, %879 : vector<8x32xf32>
    %882 = math.tanh %881 : vector<8x32xf32>
    %cst_275 = arith.constant 1.000000e+00 : f32
    %883 = vector.broadcast %cst_275 : f32 to vector<8x32xf32>
    %884 = arith.subf %883, %876 : vector<8x32xf32>
    %885 = arith.mulf %884, %882 : vector<8x32xf32>
    %886 = arith.mulf %876, %828 : vector<8x32xf32>
    %887 = arith.addf %885, %886 : vector<8x32xf32>
    %888 = tpu.concatenate %887, %857 in 1 : vector<8x32xf32>, vector<8x32xf32> -> vector<8x64xf32>
    %889 = arith.truncf %888 : vector<8x64xf32> to vector<8x64xbf16>
    %c0_276 = arith.constant 0 : index
    %c0_277 = arith.constant 0 : index
    %890 = vector.load %arg10[%c0_276, %c0_277] : memref<64x128xbf16, #tpu.memory_space<vmem>>, vector<64x128xbf16>
    %cst_278 = arith.constant dense<0.000000e+00> : vector<8x128xf32>
    %891 = tpu.matmul %889, %890, %cst_278 {dimension_numbers = #tpu.dot_dimension_numbers<[1], [0], [0], [1], [0, 0, 1, 1], [], []>} : vector<8x64xbf16>, vector<64x128xbf16>, vector<8x128xf32> -> vector<8x128xf32>
    %c0_279 = arith.constant 0 : index
    %c0_280 = arith.constant 0 : index
    %892 = vector.load %arg11[%c0_279, %c0_280] : memref<1x128xf32, #tpu.memory_space<vmem>>, vector<1x128xf32>
    %893 = vector.broadcast %892 : vector<1x128xf32> to vector<8x128xf32>
    %894 = arith.addf %891, %893 : vector<8x128xf32>
    %895 = vector.extract_strided_slice %894 {offsets = [0, 0], sizes = [8, 32], strides = [1, 1]} : vector<8x128xf32> to vector<8x32xf32>
    %896 = arith.negf %895 : vector<8x32xf32>
    %897 = math.exp %896 : vector<8x32xf32>
    %cst_281 = arith.constant 1.000000e+00 : f32
    %898 = vector.broadcast %cst_281 : f32 to vector<8x32xf32>
    %899 = arith.addf %898, %897 : vector<8x32xf32>
    %900 = arith.divf %898, %899 : vector<8x32xf32>
    %901 = vector.extract_strided_slice %894 {offsets = [0, 32], sizes = [8, 32], strides = [1, 1]} : vector<8x128xf32> to vector<8x32xf32>
    %902 = arith.negf %901 : vector<8x32xf32>
    %903 = math.exp %902 : vector<8x32xf32>
    %cst_282 = arith.constant 1.000000e+00 : f32
    %904 = vector.broadcast %cst_282 : f32 to vector<8x32xf32>
    %905 = arith.addf %904, %903 : vector<8x32xf32>
    %906 = arith.divf %904, %905 : vector<8x32xf32>
    %907 = vector.extract_strided_slice %894 {offsets = [0, 64], sizes = [8, 32], strides = [1, 1]} : vector<8x128xf32> to vector<8x32xf32>
    %908 = vector.extract_strided_slice %894 {offsets = [0, 96], sizes = [8, 32], strides = [1, 1]} : vector<8x128xf32> to vector<8x32xf32>
    %909 = arith.mulf %900, %908 : vector<8x32xf32>
    %910 = arith.addf %907, %909 : vector<8x32xf32>
    %911 = math.tanh %910 : vector<8x32xf32>
    %cst_283 = arith.constant 1.000000e+00 : f32
    %912 = vector.broadcast %cst_283 : f32 to vector<8x32xf32>
    %913 = arith.subf %912, %906 : vector<8x32xf32>
    %914 = arith.mulf %913, %911 : vector<8x32xf32>
    %915 = arith.mulf %906, %857 : vector<8x32xf32>
    %916 = arith.addf %914, %915 : vector<8x32xf32>
    %c48_284 = arith.constant 48 : index
    %c0_285 = arith.constant 0 : index
    %917 = vector.load %arg17[%c48_284, %c0_285] : memref<64x32xf32, #tpu.memory_space<vmem>>, vector<8x32xf32>
    tpu.vector_store %arg17[%c48_284, %c0_285], %916 {strides = array<i32>} : memref<64x32xf32, #tpu.memory_space<vmem>>, vector<8x32xf32>,
    %918 = arith.truncf %887 : vector<8x32xf32> to vector<8x32xbf16>
    %c0_286 = arith.constant 0 : index
    %c0_287 = arith.constant 0 : index
    %919 = vector.load %arg7[%c0_286, %c0_287] : memref<32x128xbf16, #tpu.memory_space<vmem>>, vector<32x128xbf16>
    %cst_288 = arith.constant dense<0.000000e+00> : vector<8x128xf32>
    %920 = tpu.matmul %918, %919, %cst_288 {dimension_numbers = #tpu.dot_dimension_numbers<[1], [0], [0], [1], [0, 0, 1, 1], [], []>} : vector<8x32xbf16>, vector<32x128xbf16>, vector<8x128xf32> -> vector<8x128xf32>
    %c0_289 = arith.constant 0 : index
    %c0_290 = arith.constant 0 : index
    %921 = vector.load %arg8[%c0_289, %c0_290] : memref<1x128xf32, #tpu.memory_space<vmem>>, vector<1x128xf32>
    %922 = vector.broadcast %921 : vector<1x128xf32> to vector<8x128xf32>
    %923 = arith.addf %920, %922 : vector<8x128xf32>
    %924 = vector.extract_strided_slice %923 {offsets = [0, 0], sizes = [8, 32], strides = [1, 1]} : vector<8x128xf32> to vector<8x32xf32>
    %925 = arith.negf %924 : vector<8x32xf32>
    %926 = math.exp %925 : vector<8x32xf32>
    %cst_291 = arith.constant 1.000000e+00 : f32
    %927 = vector.broadcast %cst_291 : f32 to vector<8x32xf32>
    %928 = arith.addf %927, %926 : vector<8x32xf32>
    %929 = arith.divf %927, %928 : vector<8x32xf32>
    %930 = vector.extract_strided_slice %923 {offsets = [0, 32], sizes = [8, 32], strides = [1, 1]} : vector<8x128xf32> to vector<8x32xf32>
    %931 = arith.negf %930 : vector<8x32xf32>
    %932 = math.exp %931 : vector<8x32xf32>
    %cst_292 = arith.constant 1.000000e+00 : f32
    %933 = vector.broadcast %cst_292 : f32 to vector<8x32xf32>
    %934 = arith.addf %933, %932 : vector<8x32xf32>
    %935 = arith.divf %933, %934 : vector<8x32xf32>
    %c0_293 = arith.constant 0 : index
    %c0_294 = arith.constant 0 : index
    %936 = vector.load %arg9[%c0_293, %c0_294] : memref<1x32xf32, #tpu.memory_space<vmem>>, vector<1x32xf32>
    %937 = vector.extract_strided_slice %923 {offsets = [0, 64], sizes = [8, 32], strides = [1, 1]} : vector<8x128xf32> to vector<8x32xf32>
    %938 = arith.mulf %929, %937 : vector<8x32xf32>
    %939 = vector.broadcast %936 : vector<1x32xf32> to vector<8x32xf32>
    %940 = arith.addf %939, %938 : vector<8x32xf32>
    %941 = math.tanh %940 : vector<8x32xf32>
    %cst_295 = arith.constant 1.000000e+00 : f32
    %942 = vector.broadcast %cst_295 : f32 to vector<8x32xf32>
    %943 = arith.subf %942, %935 : vector<8x32xf32>
    %944 = arith.mulf %943, %941 : vector<8x32xf32>
    %945 = arith.mulf %935, %887 : vector<8x32xf32>
    %946 = arith.addf %944, %945 : vector<8x32xf32>
    %947 = tpu.concatenate %946, %916 in 1 : vector<8x32xf32>, vector<8x32xf32> -> vector<8x64xf32>
    %948 = arith.truncf %947 : vector<8x64xf32> to vector<8x64xbf16>
    %c0_296 = arith.constant 0 : index
    %c0_297 = arith.constant 0 : index
    %949 = vector.load %arg10[%c0_296, %c0_297] : memref<64x128xbf16, #tpu.memory_space<vmem>>, vector<64x128xbf16>
    %cst_298 = arith.constant dense<0.000000e+00> : vector<8x128xf32>
    %950 = tpu.matmul %948, %949, %cst_298 {dimension_numbers = #tpu.dot_dimension_numbers<[1], [0], [0], [1], [0, 0, 1, 1], [], []>} : vector<8x64xbf16>, vector<64x128xbf16>, vector<8x128xf32> -> vector<8x128xf32>
    %c0_299 = arith.constant 0 : index
    %c0_300 = arith.constant 0 : index
    %951 = vector.load %arg11[%c0_299, %c0_300] : memref<1x128xf32, #tpu.memory_space<vmem>>, vector<1x128xf32>
    %952 = vector.broadcast %951 : vector<1x128xf32> to vector<8x128xf32>
    %953 = arith.addf %950, %952 : vector<8x128xf32>
    %954 = vector.extract_strided_slice %953 {offsets = [0, 0], sizes = [8, 32], strides = [1, 1]} : vector<8x128xf32> to vector<8x32xf32>
    %955 = arith.negf %954 : vector<8x32xf32>
    %956 = math.exp %955 : vector<8x32xf32>
    %cst_301 = arith.constant 1.000000e+00 : f32
    %957 = vector.broadcast %cst_301 : f32 to vector<8x32xf32>
    %958 = arith.addf %957, %956 : vector<8x32xf32>
    %959 = arith.divf %957, %958 : vector<8x32xf32>
    %960 = vector.extract_strided_slice %953 {offsets = [0, 32], sizes = [8, 32], strides = [1, 1]} : vector<8x128xf32> to vector<8x32xf32>
    %961 = arith.negf %960 : vector<8x32xf32>
    %962 = math.exp %961 : vector<8x32xf32>
    %cst_302 = arith.constant 1.000000e+00 : f32
    %963 = vector.broadcast %cst_302 : f32 to vector<8x32xf32>
    %964 = arith.addf %963, %962 : vector<8x32xf32>
    %965 = arith.divf %963, %964 : vector<8x32xf32>
    %966 = vector.extract_strided_slice %953 {offsets = [0, 64], sizes = [8, 32], strides = [1, 1]} : vector<8x128xf32> to vector<8x32xf32>
    %967 = vector.extract_strided_slice %953 {offsets = [0, 96], sizes = [8, 32], strides = [1, 1]} : vector<8x128xf32> to vector<8x32xf32>
    %968 = arith.mulf %959, %967 : vector<8x32xf32>
    %969 = arith.addf %966, %968 : vector<8x32xf32>
    %970 = math.tanh %969 : vector<8x32xf32>
    %cst_303 = arith.constant 1.000000e+00 : f32
    %971 = vector.broadcast %cst_303 : f32 to vector<8x32xf32>
    %972 = arith.subf %971, %965 : vector<8x32xf32>
    %973 = arith.mulf %972, %970 : vector<8x32xf32>
    %974 = arith.mulf %965, %916 : vector<8x32xf32>
    %975 = arith.addf %973, %974 : vector<8x32xf32>
    %c56_304 = arith.constant 56 : index
    %c0_305 = arith.constant 0 : index
    %976 = vector.load %arg17[%c56_304, %c0_305] : memref<64x32xf32, #tpu.memory_space<vmem>>, vector<8x32xf32>
    tpu.vector_store %arg17[%c56_304, %c0_305], %975 {strides = array<i32>} : memref<64x32xf32, #tpu.memory_space<vmem>>, vector<8x32xf32>,
    %c0_306 = arith.constant 0 : index
    %c0_307 = arith.constant 0 : index
    %977 = vector.load %arg17[%c0_306, %c0_307] : memref<64x32xf32, #tpu.memory_space<vmem>>, vector<64x32xf32>
    %978 = arith.truncf %977 : vector<64x32xf32> to vector<64x32xbf16>
    %c0_308 = arith.constant 0 : index
    %c0_309 = arith.constant 0 : index
    %979 = vector.load %arg12[%c0_308, %c0_309] : memref<32x128xbf16, #tpu.memory_space<vmem>>, vector<32x128xbf16>
    %cst_310 = arith.constant dense<0.000000e+00> : vector<64x128xf32>
    %980 = tpu.matmul %978, %979, %cst_310 {dimension_numbers = #tpu.dot_dimension_numbers<[1], [0], [0], [1], [0, 0, 1, 1], [], []>} : vector<64x32xbf16>, vector<32x128xbf16>, vector<64x128xf32> -> vector<64x128xf32>
    %c0_311 = arith.constant 0 : index
    %c0_312 = arith.constant 0 : index
    %981 = vector.load %arg13[%c0_311, %c0_312] : memref<1x128xf32, #tpu.memory_space<vmem>>, vector<1x128xf32>
    %982 = vector.broadcast %981 : vector<1x128xf32> to vector<64x128xf32>
    %983 = arith.addf %980, %982 : vector<64x128xf32>
    %c0_313 = arith.constant 0 : index
    %c0_314 = arith.constant 0 : index
    %984 = vector.load %arg14[%c0_313, %c0_314] : memref<64x128xf32, #tpu.memory_space<vmem>>, vector<64x128xf32>
    tpu.vector_store %arg14[%c0_313, %c0_314], %983 {strides = array<i32>} : memref<64x128xf32, #tpu.memory_space<vmem>>, vector<64x128xf32>,
    %c0_315 = arith.constant 0 : index
    %c0_316 = arith.constant 0 : index
    %c0_317 = arith.constant 0 : index
    %985 = vector.load %arg15[%c0_315, %c0_316, %c0_317] : memref<2x8x32xf32, #tpu.memory_space<vmem>>, vector<1x8x32xf32>
    %986 = vector.shape_cast %985 : vector<1x8x32xf32> to vector<8x32xf32>
    %987 = vector.shape_cast %946 : vector<8x32xf32> to vector<1x8x32xf32>
    tpu.vector_store %arg15[%c0_315, %c0_316, %c0_317], %987 {strides = array<i32>} : memref<2x8x32xf32, #tpu.memory_space<vmem>>, vector<1x8x32xf32>,
    %c1 = arith.constant 1 : index
    %c0_318 = arith.constant 0 : index
    %c0_319 = arith.constant 0 : index
    %988 = vector.load %arg15[%c1, %c0_318, %c0_319] : memref<2x8x32xf32, #tpu.memory_space<vmem>>, vector<1x8x32xf32>
    %989 = vector.shape_cast %988 : vector<1x8x32xf32> to vector<8x32xf32>
    %990 = vector.shape_cast %975 : vector<8x32xf32> to vector<1x8x32xf32>
    tpu.vector_store %arg15[%c1, %c0_318, %c0_319], %990 {strides = array<i32>} : memref<2x8x32xf32, #tpu.memory_space<vmem>>, vector<1x8x32xf32>,
    return
  }
}

</mosaic_0001>

<bundles_post_ra>
// kernel: tpu_custom_call.1
= control target key start
LH: loop header
LB: loop body
LE: loop exit
PB: predicated region body
PF: predicated region fallthrough
CT: control target
= control target key end

     0   :  { %s5585_s0 = inlined_call_operand.vmem [shape: bf16[64,4], index: 0, kind: input, shape index: {}]   ;;  %s5586_s1 = inlined_call_operand.hbm [shape: bf16[4,128], index: 1, kind: input, shape index: {}]   ;;  %s5587_s2 = inlined_call_operand.hbm [shape: bf16[32,128], index: 2, kind: input, shape index: {}]   ;;  %s5588_s3 = inlined_call_operand.hbm [shape: f32[1,128], index: 3, kind: input, shape index: {}]   ;;  %s5589_s4 = inlined_call_operand.hbm [shape: f32[1,32], index: 4, kind: input, shape index: {}]   ;;  %s5590_s5 = inlined_call_operand.vmem [shape: bf16[64,128], index: 5, kind: input, shape index: {}]   ;;  %s5591_s6 = inlined_call_operand.hbm [shape: f32[1,128], index: 6, kind: input, shape index: {}]   ;;  %s5592_s7 = inlined_call_operand.hbm [shape: bf16[32,128], index: 7, kind: input, shape index: {}]   ;;  %s5593_s8 = inlined_call_operand.hbm [shape: f32[1,128], index: 8, kind: input, shape index: {}]   ;;  %s5594_s9 = inlined_call_operand.vmem [shape: f32[1,32], index: 9, kind: input, shape index: {}]   ;;  %s5595_s10 = inlined_call_operand.vmem [shape: bf16[64,128], index: 10, kind: input, shape index: {}]   ;;  %s5596_s11 = inlined_call_operand.vmem [shape: f32[1,128], index: 11, kind: input, shape index: {}]   ;;  %s5597_s12 = inlined_call_operand.hbm [shape: bf16[32,128], index: 12, kind: input, shape index: {}]   ;;  %s5598_s13 = inlined_call_operand.vmem [shape: f32[1,128], index: 13, kind: input, shape index: {}]   ;;  %s5599_s14 = inlined_call_operand.hbm [shape: f32[64,128], index: 14, kind: output, shape index: {0}]   ;;  %s5600_s15 = inlined_call_operand.hbm [shape: f32[2,8,32], index: 15, kind: output, shape index: {1}]  }
   0x1   :  { %5602 = sst [smem:[#allocation28_spill]] %s5599_s14 }
   0x2   :  { %21 = vsyncpa [#allocation5], 0 }
   0x3   :  { %22 = vsyncpa [#allocation8], 0 }
   0x4   :  { %23 = vsyncpa [#allocation11], 0 }
   0x5   :  { %24 = vsyncpa [#allocation14], 0 }
   0x6   :  { %25 = vsyncpa [#allocation17], 0 }
   0x7   :  { %26 = vsyncpa [#allocation6], 0 }
   0x8   :  { %27 = vsyncpa [#allocation20], 0  ;;  %s4568_s18 = smov [#allocation7]   ;;  %s4334_s22 = scalar_lea.hbm %s5587_s2, 256 }
   0x9   :  { %s45_s19 = sshll.u32 %s4568_s18, 4  ;;  %p4335_p0 = scmp.ne.s32.totalorder %s5587_s2, %s4334_s22  ;;  %s46_s19 = int_to_ptr.vmem [resolvable:$true] %s45_s19 }
   0xa   :  { %p4338_p1 = scmp.lt.u32.totalorder %s4334_s22, %s5587_s2 }
   0xc   :  { %p4340_p2 = pnand %p4338_p1, %p4335_p0 }
   0xe   :  { %4343 = shalt.err (!%p4340_p2)
}
   0xf   :  { %s4344_s27 = scalar_lea.vmem %s46_s19, 256  ;;  %p4349_p4 = scmp.lt.s32.totalorder %s46_s19, %s46_s19 }
  0x10   :  { %p4345_p3 = scmp.ne.s32.totalorder %s46_s19, %s4344_s27  ;;  %p4350_p5 = scmp.lt.s32.totalorder %s4344_s27, %s4344_s27 }
  0x12   :  { %p4351_p6 = por %p4350_p5, %p4349_p4 }
  0x14   :  { %p4352_p7 = pnand %p4351_p6, %p4345_p3 }
  0x16   :  { %4355 = shalt.err (!%p4352_p7)
}
  0x17   :  { %s4569_s28 = smov 64   ;;  %s4570_s29 = smov 4  }
  0x18   :  { %51 = dma.hbm_to_vmem [thread:$0]  %s5587_s2, 256, %s46_s19, [#allocation8], %s4569_s28, %s4569_s28, %s4570_s29  }
  0x19   :  { %s4571_s17 = smov [#allocation10]   ;;  %s4572_s20 = smov [#allocation13]  }
  0x1a   :  { %s68_s18 = sshll.u32 %s4571_s17, 4  ;;  %s89_s21 = sshll.u32 %s4572_s20, 4  ;;  %s69_s18 = int_to_ptr.vmem [resolvable:$true] %s68_s18  ;;  %s90_s21 = int_to_ptr.vmem [resolvable:$true] %s89_s21 }
  0x1b   :  { %s4356_s24 = scalar_lea.hbm %s5589_s4, 16 }
  0x1c   :  { %p4357_p8 = scmp.ne.s32.totalorder %s5589_s4, %s4356_s24  ;;  %p4360_p9 = scmp.lt.u32.totalorder %s4356_s24, %s5589_s4 }
  0x1e   :  { %p4362_p10 = pnand %p4360_p9, %p4357_p8 }
  0x20   :  { %4365 = shalt.err (!%p4362_p10)
}
  0x21   :  { %s4366_s2 = scalar_lea.vmem %s69_s18, 16  ;;  %s4370_s19 = scalar_lea.vmem %s69_s18, 32 }
  0x22   :  { %p4367_p11 = scmp.ne.s32.totalorder %s69_s18, %s4366_s2  ;;  %p4371_p12 = scmp.lt.s32.totalorder %s69_s18, %s69_s18 }
  0x23   :  { %p4372_p13 = scmp.lt.s32.totalorder %s4370_s19, %s4366_s2 }
  0x25   :  { %p4373_p0 = por %p4372_p13, %p4371_p12 }
  0x27   :  { %p4374_p1 = pnand %p4373_p0, %p4367_p11 }
  0x29   :  { %4377 = shalt.err (!%p4374_p1)
}
  0x2a   :  { %71 = dma.hbm_to_vmem [thread:$0]  %s5589_s4, 16, %s69_s18, [#allocation11]  }
  0x2b   :  { %s4378_s14 = scalar_lea.hbm %s5592_s7, 256 }
  0x2c   :  { %p4379_p2 = scmp.ne.s32.totalorder %s5592_s7, %s4378_s14  ;;  %p4382_p3 = scmp.lt.u32.totalorder %s4378_s14, %s5592_s7 }
  0x2e   :  { %p4384_p4 = pnand %p4382_p3, %p4379_p2 }
  0x30   :  { %4387 = shalt.err (!%p4384_p4)
}
  0x31   :  { %s4388_s26 = scalar_lea.vmem %s90_s21, 256  ;;  %p4393_p6 = scmp.lt.s32.totalorder %s90_s21, %s90_s21 }
  0x32   :  { %p4389_p5 = scmp.ne.s32.totalorder %s90_s21, %s4388_s26  ;;  %p4394_p7 = scmp.lt.s32.totalorder %s4388_s26, %s4388_s26 }
  0x34   :  { %p4395_p8 = por %p4394_p7, %p4393_p6 }
  0x36   :  { %p4396_p9 = pnand %p4395_p8, %p4389_p5 }
  0x38   :  { %4399 = shalt.err (!%p4396_p9)
}
  0x39   :  { %95 = dma.hbm_to_vmem [thread:$0]  %s5592_s7, 256, %s90_s21, [#allocation14], %s4569_s28, %s4569_s28, %s4570_s29  }
  0x3a   :  { %s4573_s27 = smov [#allocation4]   ;;  %s4574_s19 = smov [#allocation9]  }
  0x3b   :  { %s36_s2 = sshll.u32 %s4573_s27, 4  ;;  %s58_s30 = sshll.u32 %s4574_s19, 4  ;;  %s37_s2 = int_to_ptr.vmem [resolvable:$true] %s36_s2  ;;  %s59_s30 = int_to_ptr.vmem [resolvable:$true] %s58_s30 }
  0x3c   :  { %s4400_s20 = scalar_lea.hbm %s5586_s1, 32 }
  0x3d   :  { %p4401_p10 = scmp.ne.s32.totalorder %s5586_s1, %s4400_s20  ;;  %p4404_p11 = scmp.lt.u32.totalorder %s4400_s20, %s5586_s1 }
  0x3f   :  { %p4406_p12 = pnand %p4404_p11, %p4401_p10 }
  0x41   :  { %4409 = shalt.err (!%p4406_p12)
}
  0x42   :  { %s4410_s7 = scalar_lea.vmem %s37_s2, 32  ;;  %p4415_p0 = scmp.lt.s32.totalorder %s37_s2, %s37_s2 }
  0x43   :  { %p4411_p13 = scmp.ne.s32.totalorder %s37_s2, %s4410_s7  ;;  %p4416_p1 = scmp.lt.s32.totalorder %s4410_s7, %s4410_s7 }
  0x45   :  { %p4417_p2 = por %p4416_p1, %p4415_p0 }
  0x47   :  { %p4418_p3 = pnand %p4417_p2, %p4411_p13 }
  0x49   :  { %4421 = shalt.err (!%p4418_p3)
}
  0x4a   :  { %39 = dma.hbm_to_vmem [thread:$0]  %s5586_s1, 32, %s37_s2, [#allocation5]  }
  0x4b   :  { %s4422_s18 = scalar_lea.hbm %s5588_s3, 16 }
  0x4c   :  { %p4423_p4 = scmp.ne.s32.totalorder %s5588_s3, %s4422_s18  ;;  %p4426_p5 = scmp.lt.u32.totalorder %s4422_s18, %s5588_s3 }
  0x4e   :  { %p4428_p6 = pnand %p4426_p5, %p4423_p4 }
  0x50   :  { %4431 = shalt.err (!%p4428_p6)
}
  0x51   :  { %s4432_s20 = scalar_lea.vmem %s59_s30, 16  ;;  %s4436_s14 = scalar_lea.vmem %s59_s30, 32 }
  0x52   :  { %p4433_p7 = scmp.ne.s32.totalorder %s59_s30, %s4432_s20  ;;  %p4437_p8 = scmp.lt.s32.totalorder %s59_s30, %s59_s30 }
  0x53   :  { %p4438_p9 = scmp.lt.s32.totalorder %s4436_s14, %s4432_s20 }
  0x55   :  { %p4439_p10 = por %p4438_p9, %p4437_p8 }
  0x57   :  { %p4440_p11 = pnand %p4439_p10, %p4433_p7 }
  0x59   :  { %4443 = shalt.err (!%p4440_p11)
}
  0x5a   :  { %61 = dma.hbm_to_vmem [thread:$0]  %s5588_s3, 16, %s59_s30, [#allocation8]  }
  0x5b   :  { %s4575_s22 = smov [#allocation12]   ;;  %s4576_s24 = smov [#allocation15]  }
  0x5c   :  { %s80_s23 = sshll.u32 %s4575_s22, 4  ;;  %s102_s7 = sshll.u32 %s4576_s24, 4  ;;  %s81_s23 = int_to_ptr.vmem [resolvable:$true] %s80_s23  ;;  %s103_s7 = int_to_ptr.vmem [resolvable:$true] %s102_s7 }
  0x5d   :  { %s4444_s26 = scalar_lea.hbm %s5591_s6, 16 }
  0x5e   :  { %p4445_p12 = scmp.ne.s32.totalorder %s5591_s6, %s4444_s26  ;;  %p4448_p13 = scmp.lt.u32.totalorder %s4444_s26, %s5591_s6 }
  0x60   :  { %p4450_p0 = pnand %p4448_p13, %p4445_p12 }
  0x62   :  { %4453 = shalt.err (!%p4450_p0)
}
  0x63   :  { %s4454_s3 = scalar_lea.vmem %s81_s23, 16  ;;  %s4458_s30 = scalar_lea.vmem %s81_s23, 32 }
  0x64   :  { %p4455_p1 = scmp.ne.s32.totalorder %s81_s23, %s4454_s3  ;;  %p4459_p2 = scmp.lt.s32.totalorder %s81_s23, %s81_s23 }
  0x65   :  { %p4460_p3 = scmp.lt.s32.totalorder %s4458_s30, %s4454_s3 }
  0x67   :  { %p4461_p4 = por %p4460_p3, %p4459_p2 }
  0x69   :  { %p4462_p5 = pnand %p4461_p4, %p4455_p1 }
  0x6b   :  { %4465 = shalt.err (!%p4462_p5)
}
  0x6c   :  { %83 = dma.hbm_to_vmem [thread:$0]  %s5591_s6, 16, %s81_s23, [#allocation11]  }
  0x6d   :  { %s4466_s1 = scalar_lea.hbm %s5593_s8, 16 }
  0x6e   :  { %p4467_p6 = scmp.ne.s32.totalorder %s5593_s8, %s4466_s1  ;;  %p4470_p7 = scmp.lt.u32.totalorder %s4466_s1, %s5593_s8 }
  0x70   :  { %p4472_p8 = pnand %p4470_p7, %p4467_p6 }
  0x72   :  { %4475 = shalt.err (!%p4472_p8)
}
  0x73   :  { %s4476_s25 = scalar_lea.vmem %s103_s7, 16  ;;  %s4480_s26 = scalar_lea.vmem %s103_s7, 32 }
  0x74   :  { %p4477_p9 = scmp.ne.s32.totalorder %s103_s7, %s4476_s25  ;;  %p4481_p10 = scmp.lt.s32.totalorder %s103_s7, %s103_s7 }
  0x75   :  { %p4482_p11 = scmp.lt.s32.totalorder %s4480_s26, %s4476_s25 }
  0x77   :  { %p4483_p12 = por %p4482_p11, %p4481_p10 }
  0x79   :  { %p4484_p13 = pnand %p4483_p12, %p4477_p9 }
  0x7b   :  { %4487 = shalt.err (!%p4484_p13)
}
  0x7c   :  { %105 = dma.hbm_to_vmem [thread:$0]  %s5593_s8, 16, %s103_s7, [#allocation14]  }
  0x7d   :  { %s4577_s4 = smov [#allocation16]   ;;  %s4488_s3 = scalar_lea.hbm %s5597_s12, 256 }
  0x7e   :  { %s117_s18 = sshll.u32 %s4577_s4, 4  ;;  %p4489_p0 = scmp.ne.s32.totalorder %s5597_s12, %s4488_s3  ;;  %s118_s18 = int_to_ptr.vmem [resolvable:$true] %s117_s18 }
  0x7f   :  { %p4492_p1 = scmp.lt.u32.totalorder %s4488_s3, %s5597_s12 }
  0x81   :  { %p4494_p2 = pnand %p4492_p1, %p4489_p0 }
  0x83   :  { %4497 = shalt.err (!%p4494_p2)
}
  0x84   :  { %s4498_s14 = scalar_lea.vmem %s118_s18, 256  ;;  %p4503_p4 = scmp.lt.s32.totalorder %s118_s18, %s118_s18 }
  0x85   :  { %p4499_p3 = scmp.ne.s32.totalorder %s118_s18, %s4498_s14  ;;  %p4504_p5 = scmp.lt.s32.totalorder %s4498_s14, %s4498_s14 }
  0x87   :  { %p4505_p6 = por %p4504_p5, %p4503_p4 }
  0x89   :  { %p4506_p7 = pnand %p4505_p6, %p4499_p3 }
  0x8b   :  { %4509 = shalt.err (!%p4506_p7)
}
  0x8c   :  { %123 = dma.hbm_to_vmem [thread:$0]  %s5597_s12, 256, %s118_s18, [#allocation17], %s4569_s28, %s4569_s28, %s4570_s29  }
  0x8d   :  { %4554 = dma.done.wait [#allocation5], 32  }
  0x8e   :  { %4555 = vsyncadd [#allocation5], 4294967264 }
  0x8f   :  { %4556 = dma.done.wait [#allocation8], 272  }
  0x90   :  { %4557 = vsyncadd [#allocation8], 4294967024 }
  0x91   :  { %4558 = dma.done.wait [#allocation11], 32  }
  0x92   :  { %4559 = vsyncadd [#allocation11], 4294967264 }
  0x93   :  { %4560 = dma.done.wait [#allocation14], 272  }
  0x94   :  { %4561 = vsyncadd [#allocation14], 4294967024 }
  0x95   :  { %4562 = dma.done.wait [#allocation17], 256  }
  0x96   :  { %4563 = vsyncadd [#allocation17], 4294967040  ;;  %v4578_v0 = vmov 0.0   ;;  %vm4579_vm0 = vmmov 0   ;;  %vm200_vm1 = vcmask 1041408   ;;  %vm187_vm2 = vcmask 31744  }
  0x97   :  { %3727 = vmatprep.subr.bf16.mxu1 %v4578_v0  ;;  %3731 = vmatprep.mubr.msk.bf16.mxu1 %vm4579_vm0, %v4578_v0  ;;  %v159_v1 = vld [vmem:[#allocation4] sm:$0x3]  ;;  %v4775_v2 = vld [vmem:[#allocation7] sm:$0xff]   ;;  %v4787_v6 = vld [vmem:[#allocation7 + $0x8] sm:$0xff]   ;;  %v4580_v8 = vmov 0   ;;  %s4581_s22 = smov 96  }
  0x98   :  { %4059 = vmatprep.subr.msk.bf16.mxu0 %vm200_vm1, %v159_v1  ;;  %v202_v3 = vsel %vm200_vm1, %v159_v1, 0  ;;  %v4080_v4 = vld [vmem:[%s5585_s0] sm:$0xff]   ;;  %3728 = vmatpush3.bf16.msra.mxu1 %v4775_v2  ;;  %v4081_v5 = vld [vmem:[%s5585_s0 + $0x8] sm:$0xff]   ;;  %v3431_v7 = vld [vmem:[#allocation10] ss:$0 sm:$0xff]  ;;  %vm294_vm3 = vcmask 261120  }
  0x99   :  { %3718 = vmatpush3.bf16.msra.mxu0 %v202_v3  ;;  %3719 = vmatprep.mubr.msk.bf16.mxu0 %vm187_vm2, %v4080_v4  ;;  %v4809_v19 = vld [vmem:[#allocation9] ss:$0 sm:$0xff]  ;;  %v4825_v38 = vld [vmem:[%s5590_s5] sm:$0xff]   ;;  %v4086_v40 = vld [vmem:[%s5585_s0 + $0x18] sm:$0xff]   ;;  %vm419_vm4 = vcmask 523264  }
  0x9a   :  { %3735 = vmatprep.subr.bf16.mxu0 %v4578_v0  ;;  %3729 = vmatprep.subr.bf16.mxu1 %v4578_v0  ;;  %v4085_v39 = vld [vmem:[%s5585_s0 + $0x10] sm:$0xff]   ;;  %v4837_v41 = vld [vmem:[%s5590_s5 + $0x8] sm:$0xff]   ;;  %v4862_v43 = vld [vmem:[%s5590_s5 + $0x18] sm:$0xff]  }
  0x9b   :  { %351 = vrot.lane.b32.xlu0 %v3431_v7, %s4569_s28  ;;  %v4853_v42 = vld [vmem:[%s5590_s5 + $0x10] sm:$0xff]   ;;  %s4582_s5 = smov 32  }
  0x9c   :  { %3720 = vmatmul.mubr.msk.bf16.vlgmr.msra.gmra.mrb[0].mxu0 %vm187_vm2, %v4081_v5  ;;  %3730 = vmatpush3.bf16.msra.mxu1 %v4787_v6  ;;  %v4892_v5 = vld [vmem:[#allocation12] ss:$0 sm:$0xff] }
  0x9d   :  { %3747 = vmatprep.subr.bf16.mxu1 %v4578_v0  ;;  %3736 = vmatpush3.bf16.msra.mxu0 %v4825_v38 }
  0x9e   :  { %3723 = vmatprep.mubr.msk.bf16.mxu0 %vm187_vm2, %v4085_v39  ;;  %3737 = vmatprep.subr.bf16.mxu0 %v4578_v0 }
  0x9f   :  { %3732 = vmatmul.mubr.bf16.vlgmr.msra.gmra.mrb[0].mxu1 %v4580_v8 }
  0xa0   :  { %3748 = vmatpush3.bf16.msra.mxu1 %v4775_v2  ;;  %3751 = vmatprep.mubr.msk.bf16.mxu1 %vm4579_vm0, %v4578_v0 }
  0xa1   :  { %3749 = vmatprep.subr.bf16.mxu1 %v4578_v0  ;;  %3738 = vmatpush3.bf16.msra.mxu0 %v4837_v41 }
  0xa2   :  { %3739 = vmatprep.subr.bf16.mxu0 %v4578_v0 }
  0xa4   :  { %3750 = vmatpush3.bf16.msra.mxu1 %v4787_v6  ;;  %3724 = vmatmul.mubr.msk.bf16.gmra.mrb[4].mxu0 %vm187_vm2, %v4086_v40 }
  0xa5   :  { %3755 = vmatprep.subr.bf16.mxu1 %v4578_v0  ;;  %3743 = vmatprep.mubr.msk.bf16.mxu0 %vm4579_vm0, %v4578_v0 }
  0xa6   :  { %3740 = vmatpush3.bf16.msra.mxu0 %v4853_v42 }
  0xa7   :  { %3741 = vmatprep.subr.bf16.mxu0 %v4578_v0 }
  0xaa   :  { %3742 = vmatpush3.bf16.msra.mxu0 %v4862_v43 }
  0xab   :  { %3767 = vmatprep.subr.bf16.mxu0 %v4578_v0 }
 0x10d   :  { %v4803_v12 = vpop.permute.xlu0 %351 }
 0x16f   :  { %v4799_v9 = vpop.f32.mrb[0].mxu0 }
 0x170   :  { %v238_v10 = vpop.f32.mrb[1].mxu0 }
 0x171   :  { %v4801_v11 = vpop.f32.mrb[2].mxu0  ;;  %v239_v20 = vadd.f32 %v4809_v19, %v238_v10 }
 0x172   :  { %v4805_v13 = vpop.f32.mrb[3].mxu0  ;;  %v332_v14 = vpop.f32.mrb[0].mxu1 }
 0x173   :  { %v3733_v15 = vpop.f32.mrb[1].mxu1  ;;  %v354_v16 = vadd.f32 %v4803_v12, %v332_v14  ;;  %v339_v21 = vadd.f32 %v332_v14, %v239_v20  ;;  %v242_v49 = vadd.f32 %v4809_v19, %v4805_v13 }
 0x174   :  { %v335_v17 = vpop.f32.mrb[2].mxu1 }
 0x175   :  { %356 = vrot.lane.b32.xlu0 %v354_v16, %s4569_s28  ;;  %v3734_v18 = vpop.f32.mrb[3].mxu1  ;;  %v3430_v22 = vmul.f32 -1.442695, %v339_v21 }
 0x177   :  { %4139 = vpow2.f32 %v3430_v22  ;;  %v4875_v57 = vpop.f32.mrb[4].mxu0 }
 0x178   :  { %v4877_v59 = vpop.f32.mrb[5].mxu0 }
 0x179   :  { %v4880_v61 = vpop.f32.mrb[6].mxu0 }
 0x17a   :  { %v4882_v63 = vpop.f32.mrb[7].mxu0 }
 0x181   :  { %v4140_v23 = vpop.eup %4139 }
 0x182   :  { %v343_v24 = vadd.f32 1.0, %v4140_v23 }
 0x184   :  { %4141 = vrcp.f32 %v343_v24 }
 0x18e   :  { %v4142_v25 = vpop.eup %4141 }
 0x18f   :  { %v366_v31 = vsub.f32 1.0, %v4142_v25  ;;  %v372_v33 = vmul.f32 0.0, %v4142_v25 }
 0x1e7   :  { %v357_v26 = vpop.permute.xlu0 %356 }
 0x1e8   :  { %v359_v27 = vmul.f32 %v4142_v25, %v357_v26 }
 0x1ea   :  { %361 = vrot.lane.b32.xlu1 %v359_v27, %s4569_s28 }
 0x25c   :  { %v362_v28 = vpop.permute.xlu1 %361 }
 0x25d   :  { %v364_v29 = vadd.f32 %v362_v28, %v239_v20 }
 0x25f   :  { %4143 = vtanh.f32 %v364_v29 }
 0x269   :  { %v4144_v30 = vpop.eup %4143 }
 0x26a   :  { %368 = vrot.lane.b32.xlu1 %v4144_v30, %s4581_s22 }
 0x2dc   :  { %v369_v32 = vpop.permute.xlu1 %368 }
 0x2dd   :  { %v371_v34 = vmul.f32 %v369_v32, %v366_v31 }
 0x2df   :  { %v4814_v35 = vadd.f32 %v372_v33, %v371_v34 }
 0x2e1   :  { %v489_v36 = vpack.c.bf16 %v4814_v35, %v4814_v35 }
 0x2e3   :  { %491 = vrot.lane.b32.xlu0 %v489_v36, %s4581_s22 }
 0x355   :  { %v492_v37 = vpop.permute.xlu0 %491 }
 0x356   :  { %3752 = vmatmul.mubr.msk.bf16.vlgmr.msra.gmra.mrb[4].mxu1 %vm294_vm3, %v492_v37  ;;  %v247_v37 = vadd.f32 %v4799_v9, %v4809_v19 }
 0x357   :  { %3763 = vmatprep.mubr.msk.bf16.mxu1 %vm4579_vm0, %v4578_v0  ;;  %3756 = vmatpush3.bf16.msra.mxu1 %v4825_v38 }
 0x358   :  { %3757 = vmatprep.subr.bf16.mxu1 %v4578_v0 }
 0x35b   :  { %3758 = vmatpush3.bf16.msra.mxu1 %v4837_v41 }
 0x35c   :  { %3759 = vmatprep.subr.bf16.mxu1 %v4578_v0 }
 0x35f   :  { %3760 = vmatpush3.bf16.msra.mxu1 %v4853_v42 }
 0x360   :  { %3761 = vmatprep.subr.bf16.mxu1 %v4578_v0 }
 0x363   :  { %3762 = vmatpush3.bf16.msra.mxu1 %v4862_v43 }
 0x364   :  { %3787 = vmatprep.subr.bf16.mxu1 %v4578_v0 }
 0x429   :  { %v530_v44 = vpop.f32.mrb[4].mxu1 }
 0x42a   :  { %v3753_v45 = vpop.f32.mrb[5].mxu1  ;;  %v543_v46 = vadd.f32 %v530_v44, %v4803_v12  ;;  %v536_v50 = vadd.f32 %v530_v44, %v242_v49 }
 0x42b   :  { %v533_v47 = vpop.f32.mrb[6].mxu1 }
 0x42c   :  { %545 = vrot.lane.b32.xlu1 %v543_v46, %s4569_s28  ;;  %v3754_v48 = vpop.f32.mrb[7].mxu1  ;;  %v3440_v51 = vmul.f32 -1.442695, %v536_v50 }
 0x42e   :  { %4145 = vpow2.f32 %v3440_v51 }
 0x430   :  { %375 = vrot.lane.b32.xlu1 %v4814_v35, %s4581_s22 }
 0x438   :  { %v4146_v52 = vpop.eup %4145 }
 0x439   :  { %v540_v53 = vadd.f32 1.0, %v4146_v52 }
 0x43b   :  { %4147 = vrcp.f32 %v540_v53 }
 0x445   :  { %v4148_v54 = vpop.eup %4147 }
 0x446   :  { %v555_v15 = vsub.f32 1.0, %v4148_v54  ;;  %v561_v17 = vmul.f32 %v4148_v54, %v4814_v35 }
 0x49e   :  { %v546_v55 = vpop.permute.xlu1 %545 }
 0x49f   :  { %v548_v56 = vmul.f32 %v4148_v54, %v546_v55 }
 0x4a1   :  { %550 = vrot.lane.b32.xlu0 %v548_v56, %s4569_s28 }
 0x4a2   :  { %v376_v58 = vpop.permute.xlu1 %375 }
 0x4a3   :  { %v378_v60 = vsel %vm294_vm3, %v376_v58, 0.0 }
 0x4a4   :  { %v379_v62 = vpack.c.bf16 %v378_v60, %v378_v60 }
 0x4a6   :  { %3744 = vmatmul.mubr.msk.bf16.vlgmr.msra.gmra.mrb[8].mxu0 %vm419_vm4, %v379_v62 }
 0x4a7   :  { %3768 = vmatpush3.bf16.msra.mxu0 %v4775_v2  ;;  %3771 = vmatprep.mubr.msk.bf16.mxu0 %vm4579_vm0, %v4578_v0 }
 0x4a8   :  { %3769 = vmatprep.subr.bf16.mxu0 %v4578_v0 }
 0x4ab   :  { %3770 = vmatpush3.bf16.msra.mxu0 %v4787_v6 }
 0x4ac   :  { %3775 = vmatprep.subr.bf16.mxu0 %v4578_v0 }
 0x513   :  { %v551_v1 = vpop.permute.xlu0 %550 }
 0x514   :  { %v553_v3 = vadd.f32 %v551_v1, %v242_v49 }
 0x516   :  { %4149 = vtanh.f32 %v553_v3 }
 0x520   :  { %v4150_v4 = vpop.eup %4149 }
 0x521   :  { %557 = vrot.lane.b32.xlu0 %v4150_v4, %s4581_s22 }
 0x579   :  { %v457_v7 = vpop.f32.mrb[8].mxu0 }
 0x57a   :  { %v458_v8 = vadd.f32 %v4892_v5, %v457_v7  ;;  %v3745_v10 = vpop.f32.mrb[9].mxu0 }
 0x57b   :  { %v460_v13 = vpop.f32.mrb[10].mxu0 }
 0x57c   :  { %v3746_v14 = vpop.f32.mrb[11].mxu0  ;;  %470 = vrot.lane.b32.xlu0 %v458_v8, %s4582_s5  ;;  %v3438_v22 = vmul.f32 -1.442695, %v458_v8 }
 0x57e   :  { %4151 = vpow2.f32 %v3438_v22 }
 0x588   :  { %v4152_v23 = vpop.eup %4151 }
 0x589   :  { %v466_v24 = vadd.f32 1.0, %v4152_v23 }
 0x58b   :  { %4153 = vrcp.f32 %v466_v24 }
 0x593   :  { %v558_v16 = vpop.permute.xlu0 %557 }
 0x594   :  { %v560_v18 = vmul.f32 %v558_v16, %v555_v15 }
 0x595   :  { %v4154_v25 = vpop.eup %4153 }
 0x596   :  { %v4897_v20 = vadd.f32 %v561_v17, %v560_v18  ;;  %v480_v50 = vsub.f32 1.0, %v4154_v25  ;;  %v486_v53 = vmul.f32 0.0, %v4154_v25 }
 0x598   :  { %v638_v21 = vpack.c.bf16 %v4897_v20, %v4897_v20 }
 0x59a   :  { %640 = vrot.lane.b32.xlu1 %v638_v21, %s4581_s22 }
 0x5ee   :  { %v471_v26 = vpop.permute.xlu0 %470 }
 0x5ef   :  { %v473_v27 = vmul.f32 %v4154_v25, %v471_v26 }
 0x5f1   :  { %475 = vrot.lane.b32.xlu1 %v473_v27, %s4569_s28 }
 0x60c   :  { %v641_v28 = vpop.permute.xlu1 %640 }
 0x60d   :  { %3772 = vmatmul.mubr.msk.bf16.vlgmr.msra.gmra.mrb[12].mxu0 %vm294_vm3, %v641_v28 }
 0x60e   :  { %3776 = vmatpush3.bf16.msra.mxu0 %v4825_v38  ;;  %3783 = vmatprep.mubr.msk.bf16.mxu0 %vm4579_vm0, %v4578_v0 }
 0x60f   :  { %3777 = vmatprep.subr.bf16.mxu0 %v4578_v0 }
 0x612   :  { %3778 = vmatpush3.bf16.msra.mxu0 %v4837_v41 }
 0x613   :  { %3779 = vmatprep.subr.bf16.mxu0 %v4578_v0 }
 0x616   :  { %3780 = vmatpush3.bf16.msra.mxu0 %v4853_v42 }
 0x617   :  { %3781 = vmatprep.subr.bf16.mxu0 %v4578_v0 }
 0x61a   :  { %3782 = vmatpush3.bf16.msra.mxu0 %v4862_v43 }
 0x61b   :  { %3807 = vmatprep.subr.bf16.mxu0 %v4578_v0 }
 0x663   :  { %v476_v29 = vpop.permute.xlu1 %475 }
 0x664   :  { %v478_v30 = vadd.f32 %v476_v29, %v458_v8 }
 0x666   :  { %4155 = vtanh.f32 %v478_v30 }
 0x670   :  { %v4156_v36 = vpop.eup %4155 }
 0x6e0   :  { %v679_v31 = vpop.f32.mrb[12].mxu0 }
 0x6e1   :  { %v3773_v32 = vpop.f32.mrb[13].mxu0  ;;  %v692_v33 = vadd.f32 %v679_v31, %v4803_v12  ;;  %v685_v39 = vadd.f32 %v679_v31, %v247_v37 }
 0x6e2   :  { %v682_v34 = vpop.f32.mrb[14].mxu0 }
 0x6e3   :  { %694 = vrot.lane.b32.xlu0 %v692_v33, %s4569_s28  ;;  %v3774_v35 = vpop.f32.mrb[15].mxu0  ;;  %v3444_v40 = vmul.f32 -1.442695, %v685_v39  ;;  %v250_v33 = vadd.f32 %v4801_v11, %v4809_v19 }
 0x6e5   :  { %4157 = vpow2.f32 %v3444_v40 }
 0x6e7   :  { %482 = vrot.lane.b32.xlu0 %v4156_v36, %s4581_s22 }
 0x6ef   :  { %v4158_v44 = vpop.eup %4157 }
 0x6f0   :  { %v689_v45 = vadd.f32 1.0, %v4158_v44 }
 0x6f2   :  { %4159 = vrcp.f32 %v689_v45 }
 0x6fc   :  { %v4160_v46 = vpop.eup %4159 }
 0x6fd   :  { %v704_v62 = vsub.f32 1.0, %v4160_v46  ;;  %v710_v3 = vmul.f32 %v4160_v46, %v4897_v20 }
 0x755   :  { %v695_v47 = vpop.permute.xlu0 %694 }
 0x756   :  { %v697_v48 = vmul.f32 %v4160_v46, %v695_v47 }
 0x758   :  { %699 = vrot.lane.b32.xlu1 %v697_v48, %s4569_s28 }
 0x759   :  { %v483_v49 = vpop.permute.xlu0 %482 }
 0x75a   :  { %v485_v51 = vmul.f32 %v483_v49, %v480_v50 }
 0x75c   :  { %564 = vrot.lane.b32.xlu1 %v4897_v20, %s4581_s22  ;;  %v4922_v54 = vadd.f32 %v486_v53, %v485_v51 }
 0x7ca   :  { %v700_v52 = vpop.permute.xlu1 %699 }
 0x7cb   :  { %v702_v9 = vadd.f32 %v700_v52, %v247_v37 }
 0x7cd   :  { %4161 = vtanh.f32 %v702_v9 }
 0x7ce   :  { %v565_v55 = vpop.permute.xlu1 %564 }
 0x7cf   :  { %v567_v56 = vsel %vm294_vm3, %v565_v55, %v4922_v54 }
 0x7d0   :  { %v568_v58 = vpack.c.bf16 %v567_v56, %v567_v56 }
 0x7d2   :  { %3764 = vmatmul.mubr.msk.bf16.vlgmr.msra.gmra.mrb[8].mxu1 %vm419_vm4, %v568_v58 }
 0x7d3   :  { %3788 = vmatpush3.bf16.msra.mxu1 %v4775_v2  ;;  %3791 = vmatprep.mubr.msk.bf16.mxu1 %vm4579_vm0, %v4578_v0 }
 0x7d4   :  { %3789 = vmatprep.subr.bf16.mxu1 %v4578_v0 }
 0x7d7   :  { %v4162_v60 = vpop.eup %4161  ;;  %3790 = vmatpush3.bf16.msra.mxu1 %v4787_v6 }
 0x7d8   :  { %706 = vrot.lane.b32.xlu0 %v4162_v60, %s4581_s22  ;;  %3795 = vmatprep.subr.bf16.mxu1 %v4578_v0 }
 0x84a   :  { %v707_v1 = vpop.permute.xlu0 %706 }
 0x84b   :  { %v709_v4 = vmul.f32 %v707_v1, %v704_v62 }
 0x84d   :  { %v4935_v7 = vadd.f32 %v710_v3, %v709_v4 }
 0x84f   :  { %v787_v8 = vpack.c.bf16 %v4935_v7, %v4935_v7 }
 0x851   :  { %789 = vrot.lane.b32.xlu1 %v787_v8, %s4581_s22 }
 0x8a5   :  { %v606_v10 = vpop.f32.mrb[8].mxu1 }
 0x8a6   :  { %v607_v13 = vadd.f32 %v4892_v5, %v606_v10  ;;  %v3765_v14 = vpop.f32.mrb[9].mxu1 }
 0x8a7   :  { %v609_v15 = vpop.f32.mrb[10].mxu1 }
 0x8a8   :  { %619 = vrot.lane.b32.xlu0 %v607_v13, %s4582_s5  ;;  %v3766_v16 = vpop.f32.mrb[11].mxu1  ;;  %v3442_v18 = vmul.f32 -1.442695, %v607_v13 }
 0x8aa   :  { %4163 = vpow2.f32 %v3442_v18 }
 0x8b4   :  { %v4164_v20 = vpop.eup %4163 }
 0x8b5   :  { %v615_v21 = vadd.f32 1.0, %v4164_v20 }
 0x8b7   :  { %4165 = vrcp.f32 %v615_v21 }
 0x8c1   :  { %v4166_v22 = vpop.eup %4165 }
 0x8c2   :  { %v629_v45 = vsub.f32 1.0, %v4166_v22  ;;  %v635_v47 = vmul.f32 %v4166_v22, %v4922_v54 }
 0x8c3   :  { %v790_v17 = vpop.permute.xlu1 %789 }
 0x8c4   :  { %3792 = vmatmul.mubr.msk.bf16.vlgmr.msra.gmra.mrb[12].mxu1 %vm294_vm3, %v790_v17 }
 0x8c5   :  { %3796 = vmatpush3.bf16.msra.mxu1 %v4825_v38  ;;  %3803 = vmatprep.mubr.msk.bf16.mxu1 %vm4579_vm0, %v4578_v0 }
 0x8c6   :  { %3797 = vmatprep.subr.bf16.mxu1 %v4578_v0 }
 0x8c9   :  { %3798 = vmatpush3.bf16.msra.mxu1 %v4837_v41 }
 0x8ca   :  { %3799 = vmatprep.subr.bf16.mxu1 %v4578_v0 }
 0x8cd   :  { %3800 = vmatpush3.bf16.msra.mxu1 %v4853_v42 }
 0x8ce   :  { %3801 = vmatprep.subr.bf16.mxu1 %v4578_v0 }
 0x8d1   :  { %3802 = vmatpush3.bf16.msra.mxu1 %v4862_v43 }
 0x8d2   :  { %3827 = vmatprep.subr.bf16.mxu1 %v4578_v0 }
 0x91a   :  { %v620_v23 = vpop.permute.xlu0 %619 }
 0x91b   :  { %v622_v24 = vmul.f32 %v4166_v22, %v620_v23 }
 0x91d   :  { %624 = vrot.lane.b32.xlu1 %v622_v24, %s4569_s28 }
 0x98f   :  { %v625_v25 = vpop.permute.xlu1 %624 }
 0x990   :  { %v627_v26 = vadd.f32 %v625_v25, %v607_v13 }
 0x992   :  { %4167 = vtanh.f32 %v627_v26 }
 0x997   :  { %v828_v27 = vpop.f32.mrb[12].mxu1 }
 0x998   :  { %v3793_v28 = vpop.f32.mrb[13].mxu1  ;;  %v841_v29 = vadd.f32 %v828_v27, %v4803_v12  ;;  %v834_v34 = vadd.f32 %v828_v27, %v250_v33 }
 0x999   :  { %v831_v30 = vpop.f32.mrb[14].mxu1 }
 0x99a   :  { %843 = vrot.lane.b32.xlu0 %v841_v29, %s4569_s28  ;;  %v3794_v31 = vpop.f32.mrb[15].mxu1  ;;  %v3448_v35 = vmul.f32 -1.442695, %v834_v34 }
 0x99c   :  { %v4168_v32 = vpop.eup %4167  ;;  %4169 = vpow2.f32 %v3448_v35 }
 0x99d   :  { %631 = vrot.lane.b32.xlu1 %v4168_v32, %s4581_s22 }
 0x99e   :  { %713 = vrot.lane.b32.xlu0 %v4935_v7, %s4581_s22 }
 0x9a6   :  { %v4170_v36 = vpop.eup %4169 }
 0x9a7   :  { %v838_v37 = vadd.f32 1.0, %v4170_v36  ;;  %v255_v36 = vadd.f32 %v4809_v19, %v4877_v59 }
 0x9a9   :  { %4171 = vrcp.f32 %v838_v37 }
 0x9b3   :  { %v4172_v39 = vpop.eup %4171 }
 0x9b4   :  { %v853_v62 = vsub.f32 1.0, %v4172_v39  ;;  %v859_v3 = vmul.f32 %v4172_v39, %v4935_v7 }
 0xa0c   :  { %v844_v40 = vpop.permute.xlu0 %843 }
 0xa0d   :  { %v846_v44 = vmul.f32 %v4172_v39, %v844_v40 }
 0xa0f   :  { %v632_v46 = vpop.permute.xlu1 %631  ;;  %848 = vrot.lane.b32.xlu1 %v846_v44, %s4569_s28 }
 0xa10   :  { %v634_v48 = vmul.f32 %v632_v46, %v629_v45  ;;  %v714_v50 = vpop.permute.xlu0 %713 }
 0xa12   :  { %v636_v49 = vadd.f32 %v635_v47, %v634_v48 }
 0xa14   :  { %v716_v11 = vsel %vm294_vm3, %v714_v50, %v636_v49 }
 0xa15   :  { %v717_v51 = vpack.c.bf16 %v716_v11, %v716_v11 }
 0xa17   :  { %3784 = vmatmul.mubr.msk.bf16.vlgmr.msra.gmra.mrb[16].mxu0 %vm419_vm4, %v717_v51 }
 0xa18   :  { %3808 = vmatpush3.bf16.msra.mxu0 %v4775_v2  ;;  %3811 = vmatprep.mubr.msk.bf16.mxu0 %vm4579_vm0, %v4578_v0 }
 0xa19   :  { %3809 = vmatprep.subr.bf16.mxu0 %v4578_v0 }
 0xa1c   :  { %3810 = vmatpush3.bf16.msra.mxu0 %v4787_v6 }
 0xa1d   :  { %3815 = vmatprep.subr.bf16.mxu0 %v4578_v0 }
 0xa81   :  { %v849_v52 = vpop.permute.xlu1 %848 }
 0xa82   :  { %v851_v53 = vadd.f32 %v849_v52, %v250_v33 }
 0xa84   :  { %4173 = vtanh.f32 %v851_v53 }
 0xa8e   :  { %v4174_v9 = vpop.eup %4173 }
 0xa8f   :  { %855 = vrot.lane.b32.xlu0 %v4174_v9, %s4581_s22 }
 0xaea   :  { %v755_v54 = vpop.f32.mrb[16].mxu0 }
 0xaeb   :  { %v756_v55 = vadd.f32 %v4892_v5, %v755_v54  ;;  %v3785_v56 = vpop.f32.mrb[17].mxu0 }
 0xaec   :  { %v758_v58 = vpop.f32.mrb[18].mxu0 }
 0xaed   :  { %v3786_v60 = vpop.f32.mrb[19].mxu0  ;;  %768 = vrot.lane.b32.xlu0 %v756_v55, %s4582_s5  ;;  %v3446_v13 = vmul.f32 -1.442695, %v756_v55 }
 0xaef   :  { %4175 = vpow2.f32 %v3446_v13 }
 0xaf9   :  { %v4176_v14 = vpop.eup %4175 }
 0xafa   :  { %v764_v15 = vadd.f32 1.0, %v4176_v14 }
 0xafc   :  { %4177 = vrcp.f32 %v764_v15 }
 0xb01   :  { %v856_v1 = vpop.permute.xlu0 %855 }
 0xb02   :  { %v858_v4 = vmul.f32 %v856_v1, %v853_v62 }
 0xb04   :  { %v4975_v8 = vadd.f32 %v859_v3, %v858_v4 }
 0xb06   :  { %v936_v10 = vpack.c.bf16 %v4975_v8, %v4975_v8  ;;  %v4178_v16 = vpop.eup %4177 }
 0xb07   :  { %v778_v28 = vsub.f32 1.0, %v4178_v16  ;;  %v784_v30 = vmul.f32 %v4178_v16, %v636_v49 }
 0xb08   :  { %938 = vrot.lane.b32.xlu1 %v936_v10, %s4581_s22 }
 0xb5f   :  { %v769_v17 = vpop.permute.xlu0 %768 }
 0xb60   :  { %v771_v18 = vmul.f32 %v4178_v16, %v769_v17 }
 0xb62   :  { %773 = vrot.lane.b32.xlu1 %v771_v18, %s4569_s28 }
 0xb66   :  { %862 = vrot.lane.b32.xlu1 %v4975_v8, %s4581_s22 }
 0xb7a   :  { %v939_v7 = vpop.permute.xlu1 %938 }
 0xb7b   :  { %3812 = vmatmul.mubr.msk.bf16.vlgmr.msra.gmra.mrb[20].mxu0 %vm294_vm3, %v939_v7 }
 0xb7c   :  { %3816 = vmatpush3.bf16.msra.mxu0 %v4825_v38  ;;  %3823 = vmatprep.mubr.msk.bf16.mxu0 %vm4579_vm0, %v4578_v0 }
 0xb7d   :  { %3817 = vmatprep.subr.bf16.mxu0 %v4578_v0 }
 0xb80   :  { %3818 = vmatpush3.bf16.msra.mxu0 %v4837_v41 }
 0xb81   :  { %3819 = vmatprep.subr.bf16.mxu0 %v4578_v0 }
 0xb84   :  { %3820 = vmatpush3.bf16.msra.mxu0 %v4853_v42 }
 0xb85   :  { %3821 = vmatprep.subr.bf16.mxu0 %v4578_v0 }
 0xb88   :  { %3822 = vmatpush3.bf16.msra.mxu0 %v4862_v43 }
 0xb89   :  { %3847 = vmatprep.subr.bf16.mxu0 %v4578_v0 }
 0xbd4   :  { %v774_v20 = vpop.permute.xlu1 %773 }
 0xbd5   :  { %v776_v21 = vadd.f32 %v774_v20, %v756_v55 }
 0xbd7   :  { %4179 = vtanh.f32 %v776_v21 }
 0xbd8   :  { %v863_v33 = vpop.permute.xlu1 %862 }
 0xbe1   :  { %v4180_v22 = vpop.eup %4179 }
 0xbe2   :  { %780 = vrot.lane.b32.xlu0 %v4180_v22, %s4581_s22 }
 0xc4e   :  { %v977_v23 = vpop.f32.mrb[20].mxu0 }
 0xc4f   :  { %v3813_v24 = vpop.f32.mrb[21].mxu0  ;;  %v990_v25 = vadd.f32 %v977_v23, %v4803_v12  ;;  %v983_v37 = vadd.f32 %v977_v23, %v255_v36 }
 0xc50   :  { %v980_v26 = vpop.f32.mrb[22].mxu0  ;;  %v5041_v24 = vld [vmem:[#allocation7] sm:$0xff]  }
 0xc51   :  { %v3814_v27 = vpop.f32.mrb[23].mxu0  ;;  %992 = vrot.lane.b32.xlu0 %v990_v25, %s4569_s28  ;;  %v3452_v39 = vmul.f32 -1.442695, %v983_v37 }
 0xc53   :  { %4181 = vpow2.f32 %v3452_v39 }
 0xc54   :  { %v781_v29 = vpop.permute.xlu0 %780 }
 0xc55   :  { %v783_v31 = vmul.f32 %v781_v29, %v778_v28 }
 0xc57   :  { %v4997_v32 = vadd.f32 %v784_v30, %v783_v31  ;;  %v258_v30 = vadd.f32 %v4809_v19, %v4882_v63 }
 0xc59   :  { %v865_v34 = vsel %vm294_vm3, %v863_v33, %v4997_v32 }
 0xc5a   :  { %v866_v35 = vpack.c.bf16 %v865_v34, %v865_v34 }
 0xc5c   :  { %3804 = vmatmul.mubr.msk.bf16.vlgmr.msra.gmra.mrb[16].mxu1 %vm419_vm4, %v866_v35 }
 0xc5d   :  { %3828 = vmatpush3.bf16.msra.mxu1 %v4775_v2  ;;  %3831 = vmatprep.mubr.msk.bf16.mxu1 %vm4579_vm0, %v4578_v0  ;;  %v4182_v40 = vpop.eup %4181 }
 0xc5e   :  { %3829 = vmatprep.subr.bf16.mxu1 %v4578_v0  ;;  %v987_v44 = vadd.f32 1.0, %v4182_v40 }
 0xc60   :  { %4183 = vrcp.f32 %v987_v44 }
 0xc61   :  { %3830 = vmatpush3.bf16.msra.mxu1 %v4787_v6 }
 0xc62   :  { %3835 = vmatprep.subr.bf16.mxu1 %v4578_v0 }
 0xc6a   :  { %v4184_v45 = vpop.eup %4183 }
 0xc6b   :  { %v1002_v55 = vsub.f32 1.0, %v4184_v45  ;;  %v1008_v58 = vmul.f32 %v4184_v45, %v4975_v8 }
 0xcc3   :  { %v993_v2 = vpop.permute.xlu0 %992 }
 0xcc4   :  { %v995_v46 = vmul.f32 %v4184_v45, %v993_v2 }
 0xcc6   :  { %997 = vrot.lane.b32.xlu1 %v995_v46, %s4569_s28 }
 0xd2f   :  { %v904_v47 = vpop.f32.mrb[16].mxu1 }
 0xd30   :  { %v3805_v48 = vpop.f32.mrb[17].mxu1  ;;  %v905_v59 = vadd.f32 %v4892_v5, %v904_v47 }
 0xd31   :  { %v907_v49 = vpop.f32.mrb[18].mxu1 }
 0xd32   :  { %v3806_v50 = vpop.f32.mrb[19].mxu1  ;;  %v3450_v53 = vmul.f32 -1.442695, %v905_v59 }
 0xd38   :  { %v998_v11 = vpop.permute.xlu1 %997 }
 0xd39   :  { %v1000_v51 = vadd.f32 %v998_v11, %v255_v36 }
 0xd3b   :  { %4185 = vtanh.f32 %v1000_v51 }
 0xd3c   :  { %4187 = vpow2.f32 %v3450_v53 }
 0xd45   :  { %v4186_v52 = vpop.eup %4185 }
 0xd46   :  { %1004 = vrot.lane.b32.xlu0 %v4186_v52, %s4581_s22  ;;  %v4188_v9 = vpop.eup %4187 }
 0xd47   :  { %v913_v54 = vadd.f32 1.0, %v4188_v9 }
 0xd49   :  { %4189 = vrcp.f32 %v913_v54 }
 0xd4a   :  { %917 = vrot.lane.b32.xlu0 %v905_v59, %s4582_s5 }
 0xd53   :  { %v4190_v4 = vpop.eup %4189 }
 0xd54   :  { %v927_v16 = vsub.f32 1.0, %v4190_v4  ;;  %v933_v18 = vmul.f32 %v4190_v4, %v4997_v32 }
 0xdb8   :  { %v1005_v56 = vpop.permute.xlu0 %1004 }
 0xdb9   :  { %v1007_v60 = vmul.f32 %v1005_v56, %v1002_v55 }
 0xdbb   :  { %v5015_v62 = vadd.f32 %v1008_v58, %v1007_v60 }
 0xdbc   :  { %v918_v3 = vpop.permute.xlu0 %917 }
 0xdbd   :  { %v1085_v1 = vpack.c.bf16 %v5015_v62, %v5015_v62  ;;  %v920_v10 = vmul.f32 %v4190_v4, %v918_v3 }
 0xdbf   :  { %1087 = vrot.lane.b32.xlu1 %v1085_v1, %s4581_s22 }
 0xdc3   :  { %922 = vrot.lane.b32.xlu1 %v920_v10, %s4569_s28 }
 0xdc7   :  { %1011 = vrot.lane.b32.xlu1 %v5015_v62, %s4581_s22 }
 0xe31   :  { %v1088_v13 = vpop.permute.xlu1 %1087 }
 0xe32   :  { %3832 = vmatmul.mubr.msk.bf16.vlgmr.msra.gmra.mrb[20].mxu1 %vm294_vm3, %v1088_v13 }
 0xe33   :  { %3836 = vmatpush3.bf16.msra.mxu1 %v4825_v38  ;;  %3843 = vmatprep.mubr.msk.bf16.mxu1 %vm4579_vm0, %v4578_v0 }
 0xe34   :  { %3837 = vmatprep.subr.bf16.mxu1 %v4578_v0 }
 0xe35   :  { %v923_v8 = vpop.permute.xlu1 %922 }
 0xe36   :  { %v925_v14 = vadd.f32 %v923_v8, %v905_v59 }
 0xe37   :  { %3838 = vmatpush3.bf16.msra.mxu1 %v4837_v41 }
 0xe38   :  { %4191 = vtanh.f32 %v925_v14  ;;  %3839 = vmatprep.subr.bf16.mxu1 %v4578_v0 }
 0xe39   :  { %v1012_v21 = vpop.permute.xlu1 %1011 }
 0xe3b   :  { %3840 = vmatpush3.bf16.msra.mxu1 %v4853_v42 }
 0xe3c   :  { %3841 = vmatprep.subr.bf16.mxu1 %v4578_v0 }
 0xe3f   :  { %3842 = vmatpush3.bf16.msra.mxu1 %v4862_v43 }
 0xe40   :  { %3867 = vmatprep.subr.bf16.mxu1 %v4578_v0 }
 0xe42   :  { %v4192_v15 = vpop.eup %4191 }
 0xe43   :  { %929 = vrot.lane.b32.xlu0 %v4192_v15, %s4581_s22 }
 0xeb5   :  { %v930_v17 = vpop.permute.xlu0 %929 }
 0xeb6   :  { %v932_v7 = vmul.f32 %v930_v17, %v927_v16  ;;  %v4332_v16 = vld [vmem:[#allocation7 + $0x8] sm:$0xff]  }
 0xeb8   :  { %v5036_v20 = vadd.f32 %v933_v18, %v932_v7 }
 0xeba   :  { %v1014_v22 = vsel %vm294_vm3, %v1012_v21, %v5036_v20 }
 0xebb   :  { %v1015_v23 = vpack.c.bf16 %v1014_v22, %v1014_v22 }
 0xebd   :  { %3824 = vmatmul.mubr.msk.bf16.vlgmr.msra.gmra.mrb[24].mxu0 %vm419_vm4, %v1015_v23 }
 0xebe   :  { %3848 = vmatpush3.bf16.msra.mxu0 %v5041_v24  ;;  %3851 = vmatprep.mubr.msk.bf16.mxu0 %vm4579_vm0, %v4578_v0 }
 0xebf   :  { %3849 = vmatprep.subr.bf16.mxu0 %v4578_v0 }
 0xec2   :  { %3850 = vmatpush3.bf16.msra.mxu0 %v4787_v6 }
 0xec3   :  { %3855 = vmatprep.subr.bf16.mxu0 %v4578_v0 }
 0xf05   :  { %v1126_v25 = vpop.f32.mrb[20].mxu1 }
 0xf06   :  { %v3833_v26 = vpop.f32.mrb[21].mxu1  ;;  %v1139_v27 = vadd.f32 %v1126_v25, %v4803_v12  ;;  %v1132_v31 = vadd.f32 %v1126_v25, %v258_v30 }
 0xf07   :  { %v1129_v28 = vpop.f32.mrb[22].mxu1 }
 0xf08   :  { %1141 = vrot.lane.b32.xlu0 %v1139_v27, %s4569_s28  ;;  %v3834_v29 = vpop.f32.mrb[23].mxu1  ;;  %v3456_v32 = vmul.f32 -1.442695, %v1132_v31  ;;  %v263_v27 = vadd.f32 %v4875_v57, %v4809_v19 }
 0xf0a   :  { %4193 = vpow2.f32 %v3456_v32 }
 0xf14   :  { %v4194_v33 = vpop.eup %4193 }
 0xf15   :  { %v1136_v34 = vadd.f32 1.0, %v4194_v33 }
 0xf17   :  { %4195 = vrcp.f32 %v1136_v34 }
 0xf21   :  { %v4196_v6 = vpop.eup %4195 }
 0xf22   :  { %v1151_v52 = vsub.f32 1.0, %v4196_v6  ;;  %v1157_v53 = vmul.f32 %v4196_v6, %v5015_v62 }
 0xf7a   :  { %v1142_v35 = vpop.permute.xlu0 %1141 }
 0xf7b   :  { %v1144_v36 = vmul.f32 %v4196_v6, %v1142_v35 }
 0xf7d   :  { %1146 = vrot.lane.b32.xlu1 %v1144_v36, %s4569_s28 }
 0xf90   :  { %v1053_v37 = vpop.f32.mrb[24].mxu0 }
 0xf91   :  { %v1054_v39 = vadd.f32 %v4892_v5, %v1053_v37  ;;  %v3825_v40 = vpop.f32.mrb[25].mxu0 }
 0xf92   :  { %v1056_v44 = vpop.f32.mrb[26].mxu0 }
 0xf93   :  { %v3826_v45 = vpop.f32.mrb[27].mxu0  ;;  %1066 = vrot.lane.b32.xlu1 %v1054_v39, %s4582_s5  ;;  %v3454_v63 = vmul.f32 -1.442695, %v1054_v39 }
 0xf95   :  { %4197 = vpow2.f32 %v3454_v63 }
 0xf9f   :  { %v4198_v47 = vpop.eup %4197 }
 0xfa0   :  { %v1062_v48 = vadd.f32 1.0, %v4198_v47 }
 0xfef   :  { %v1147_v2 = vpop.permute.xlu1 %1146 }
 0xff0   :  { %v1149_v46 = vadd.f32 %v1147_v2, %v258_v30 }
 0xff2   :  { %4199 = vtanh.f32 %v1149_v46 }
 0xff3   :  { %4201 = vrcp.f32 %v1062_v48 }
 0xffc   :  { %v4200_v49 = vpop.eup %4199 }
 0xffd   :  { %1153 = vrot.lane.b32.xlu0 %v4200_v49, %s4581_s22  ;;  %v4202_v50 = vpop.eup %4201 }
 0xffe   :  { %v1076_v62 = vsub.f32 1.0, %v4202_v50  ;;  %v1082_v4 = vmul.f32 %v4202_v50, %v5036_v20 }
0x1005   :  { %v1067_v11 = vpop.permute.xlu1 %1066 }
0x1006   :  { %v1069_v51 = vmul.f32 %v4202_v50, %v1067_v11 }
0x1008   :  { %1071 = vrot.lane.b32.xlu1 %v1069_v51, %s4569_s28 }
0x106f   :  { %v1154_v59 = vpop.permute.xlu0 %1153 }
0x1070   :  { %v1156_v9 = vmul.f32 %v1154_v59, %v1151_v52 }
0x1072   :  { %v5059_v54 = vadd.f32 %v1157_v53, %v1156_v9 }
0x1074   :  { %1160 = vrot.lane.b32.xlu1 %v5059_v54, %s4581_s22  ;;  %v1234_v55 = vpack.c.bf16 %v5059_v54, %v5059_v54 }
0x1076   :  { %1236 = vrot.lane.b32.xlu0 %v1234_v55, %s4581_s22 }
0x107a   :  { %v1072_v56 = vpop.permute.xlu1 %1071 }
0x107b   :  { %v1074_v58 = vadd.f32 %v1072_v56, %v1054_v39 }
0x107d   :  { %4203 = vtanh.f32 %v1074_v58 }
0x1087   :  { %v4204_v60 = vpop.eup %4203 }
0x1088   :  { %1078 = vrot.lane.b32.xlu0 %v4204_v60, %s4581_s22 }
0x10e6   :  { %v1161_v8 = vpop.permute.xlu1 %1160 }
0x10e8   :  { %v1237_v1 = vpop.permute.xlu0 %1236 }
0x10e9   :  { %3852 = vmatmul.mubr.msk.bf16.vlgmr.msra.gmra.mrb[28].mxu0 %vm294_vm3, %v1237_v1 }
0x10ea   :  { %3856 = vmatpush3.bf16.msra.mxu0 %v4825_v38  ;;  %3863 = vmatprep.mubr.msk.bf16.mxu0 %vm4579_vm0, %v4578_v0 }
0x10eb   :  { %3857 = vmatprep.subr.bf16.mxu0 %v4578_v0 }
0x10ee   :  { %3858 = vmatpush3.bf16.msra.mxu0 %v4837_v41 }
0x10ef   :  { %3859 = vmatprep.subr.bf16.mxu0 %v4578_v0 }
0x10f2   :  { %3860 = vmatpush3.bf16.msra.mxu0 %v4853_v42 }
0x10f3   :  { %3861 = vmatprep.subr.bf16.mxu0 %v4578_v0 }
0x10f6   :  { %3862 = vmatpush3.bf16.msra.mxu0 %v4862_v43 }
0x10f7   :  { %3887 = vmatprep.subr.bf16.mxu0 %v4578_v0 }
0x10fa   :  { %v1079_v3 = vpop.permute.xlu0 %1078 }
0x10fb   :  { %v1081_v10 = vmul.f32 %v1079_v3, %v1076_v62 }
0x10fd   :  { %v5079_v13 = vadd.f32 %v1082_v4, %v1081_v10 }
0x10ff   :  { %v1163_v14 = vsel %vm294_vm3, %v1161_v8, %v5079_v13  ;;  %v4333_v8 = vld [vmem:[#allocation9] ss:$0 sm:$0xff] }
0x1100   :  { %v1164_v15 = vpack.c.bf16 %v1163_v14, %v1163_v14 }
0x1102   :  { %3844 = vmatmul.mubr.msk.bf16.vlgmr.msra.gmra.mrb[24].mxu1 %vm419_vm4, %v1164_v15 }
0x1103   :  { %3868 = vmatpush3.bf16.msra.mxu1 %v5041_v24  ;;  %3871 = vmatprep.mubr.msk.bf16.mxu1 %vm4579_vm0, %v4578_v0 }
0x1104   :  { %3869 = vmatprep.subr.bf16.mxu1 %v4578_v0 }
0x1107   :  { %3870 = vmatpush3.bf16.msra.mxu1 %v4332_v16 }
0x1108   :  { %3875 = vmatprep.subr.bf16.mxu1 %v4578_v0 }
0x11bc   :  { %v1275_v17 = vpop.f32.mrb[28].mxu0 }
0x11bd   :  { %v3853_v18 = vpop.f32.mrb[29].mxu0  ;;  %v1288_v7 = vadd.f32 %v1275_v17, %v4803_v12  ;;  %v1281_v28 = vadd.f32 %v1275_v17, %v263_v27 }
0x11be   :  { %v1278_v20 = vpop.f32.mrb[30].mxu0 }
0x11bf   :  { %v3854_v21 = vpop.f32.mrb[31].mxu0  ;;  %1290 = vrot.lane.b32.xlu0 %v1288_v7, %s4569_s28  ;;  %v3460_v29 = vmul.f32 -1.442695, %v1281_v28 }
0x11c1   :  { %4205 = vpow2.f32 %v3460_v29  ;;  %v4089_v29 = vld [vmem:[#allocation13] sm:$0xff]  }
0x11cb   :  { %v4206_v30 = vpop.eup %4205 }
0x11cc   :  { %v1285_v31 = vadd.f32 1.0, %v4206_v30  ;;  %v4090_v30 = vld [vmem:[#allocation13 + $0x8] sm:$0xff]  }
0x11ce   :  { %4207 = vrcp.f32 %v1285_v31 }
0x11d5   :  { %v1202_v22 = vpop.f32.mrb[24].mxu1 }
0x11d6   :  { %v1203_v23 = vadd.f32 %v4892_v5, %v1202_v22  ;;  %v3845_v24 = vpop.f32.mrb[25].mxu1 }
0x11d7   :  { %v1205_v25 = vpop.f32.mrb[26].mxu1 }
0x11d8   :  { %1215 = vrot.lane.b32.xlu0 %v1203_v23, %s4582_s5  ;;  %v3846_v26 = vpop.f32.mrb[27].mxu1  ;;  %v3458_v32 = vmul.f32 -1.442695, %v1203_v23  ;;  %v4208_v33 = vpop.eup %4207 }
0x11d9   :  { %v1300_v46 = vsub.f32 1.0, %v4208_v33  ;;  %v1306_v48 = vmul.f32 %v4208_v33, %v5059_v54 }
0x11da   :  { %4209 = vpow2.f32 %v3458_v32 }
0x11e4   :  { %v4210_v35 = vpop.eup %4209 }
0x11e5   :  { %v1211_v36 = vadd.f32 1.0, %v4210_v35 }
0x11e7   :  { %4211 = vrcp.f32 %v1211_v36 }
0x11f1   :  { %v4212_v37 = vpop.eup %4211 }
0x11f2   :  { %v1225_v52 = vsub.f32 1.0, %v4212_v37  ;;  %v1231_v9 = vmul.f32 %v4212_v37, %v5079_v13 }
0x1231   :  { %v1291_v34 = vpop.permute.xlu0 %1290 }
0x1232   :  { %v1293_v6 = vmul.f32 %v4208_v33, %v1291_v34 }
0x1234   :  { %1295 = vrot.lane.b32.xlu1 %v1293_v6, %s4569_s28 }
0x124a   :  { %v1216_v39 = vpop.permute.xlu0 %1215 }
0x124b   :  { %v1218_v40 = vmul.f32 %v4212_v37, %v1216_v39 }
0x124d   :  { %1220 = vrot.lane.b32.xlu0 %v1218_v40, %s4569_s28 }
0x12a6   :  { %v1296_v19 = vpop.permute.xlu1 %1295 }
0x12a7   :  { %v1298_v57 = vadd.f32 %v1296_v19, %v263_v27 }
0x12a9   :  { %4213 = vtanh.f32 %v1298_v57 }
0x12b3   :  { %v4214_v44 = vpop.eup %4213 }
0x12b4   :  { %1302 = vrot.lane.b32.xlu1 %v4214_v44, %s4581_s22 }
0x12bf   :  { %v1221_v45 = vpop.permute.xlu0 %1220 }
0x12c0   :  { %v1223_v63 = vadd.f32 %v1221_v45, %v1203_v23 }
0x12c2   :  { %4215 = vtanh.f32 %v1223_v63 }
0x12cc   :  { %v4216_v2 = vpop.eup %4215 }
0x12cd   :  { %1227 = vrot.lane.b32.xlu0 %v4216_v2, %s4581_s22 }
0x1326   :  { %v1303_v47 = vpop.permute.xlu1 %1302 }
0x1327   :  { %v1305_v49 = vmul.f32 %v1303_v47, %v1300_v46  ;;  %v5156_v47 = vld [vmem:[#allocation15] ss:$0 sm:$0xff] }
0x1329   :  { %v5100_v50 = vadd.f32 %v1306_v48, %v1305_v49 }
0x132b   :  { %v1383_v11 = vpack.c.bf16 %v5100_v50, %v5100_v50 }
0x132d   :  { %1385 = vrot.lane.b32.xlu1 %v1383_v11, %s4581_s22 }
0x1331   :  { %1309 = vrot.lane.b32.xlu1 %v5100_v50, %s4581_s22 }
0x133f   :  { %v1228_v51 = vpop.permute.xlu0 %1227 }
0x1340   :  { %v1230_v59 = vmul.f32 %v1228_v51, %v1225_v52 }
0x1342   :  { %v5112_v54 = vadd.f32 %v1231_v9, %v1230_v59 }
0x139f   :  { %v1386_v53 = vpop.permute.xlu1 %1385 }
0x13a0   :  { %3872 = vmatmul.mubr.msk.bf16.vlgmr.msra.gmra.mrb[28].mxu1 %vm294_vm3, %v1386_v53 }
0x13a1   :  { %3876 = vmatpush3.bf16.msra.mxu1 %v4825_v38  ;;  %3883 = vmatprep.mubr.msk.bf16.mxu1 %vm4579_vm0, %v4578_v0 }
0x13a2   :  { %3877 = vmatprep.subr.bf16.mxu1 %v4578_v0 }
0x13a3   :  { %v1310_v55 = vpop.permute.xlu1 %1309 }
0x13a4   :  { %v1312_v56 = vsel %vm294_vm3, %v1310_v55, %v5112_v54 }
0x13a5   :  { %v1313_v58 = vpack.c.bf16 %v1312_v56, %v1312_v56  ;;  %3878 = vmatpush3.bf16.msra.mxu1 %v4837_v41 }
0x13a6   :  { %3879 = vmatprep.subr.bf16.mxu1 %v4578_v0 }
0x13a7   :  { %3864 = vmatmul.mubr.msk.bf16.vlgmr.msra.gmra.mrb[32].mxu0 %vm419_vm4, %v1313_v58 }
0x13a8   :  { %3891 = vmatprep.mubr.msk.bf16.mxu0 %vm4579_vm0, %v4578_v0  ;;  %3888 = vmatpush3.bf16.msra.mxu0 %v4089_v29 }
0x13a9   :  { %3880 = vmatpush3.bf16.msra.mxu1 %v4853_v42  ;;  %3889 = vmatprep.subr.bf16.mxu0 %v4578_v0 }
0x13aa   :  { %3881 = vmatprep.subr.bf16.mxu1 %v4578_v0 }
0x13ac   :  { %3890 = vmatpush3.bf16.msra.mxu0 %v4090_v30 }
0x13ad   :  { %3882 = vmatpush3.bf16.msra.mxu1 %v4862_v43  ;;  %v266_v43 = vadd.f32 %v4333_v8, %v4880_v61  ;;  %3895 = vmatprep.subr.bf16.mxu0 %v4578_v0  ;;  %v4091_v8 = vld [vmem:[%s5595_s10] sm:$0xff]  }
0x13ae   :  { %3907 = vmatprep.subr.bf16.mxu1 %v4578_v0 }
0x1473   :  { %v1424_v38 = vpop.f32.mrb[28].mxu1 }
0x1474   :  { %v3873_v60 = vpop.f32.mrb[29].mxu1  ;;  %v1437_v1 = vadd.f32 %v1424_v38, %v4803_v12  ;;  %v1430_v14 = vadd.f32 %v1424_v38, %v266_v43 }
0x1475   :  { %v1427_v41 = vpop.f32.mrb[30].mxu1 }
0x1476   :  { %1439 = vrot.lane.b32.xlu0 %v1437_v1, %s4569_s28  ;;  %v3874_v62 = vpop.f32.mrb[31].mxu1  ;;  %v3464_v15 = vmul.f32 -1.442695, %v1430_v14  ;;  %v5165_v41 = vld [vmem:[%s5594_s9] ss:$0 sm:$0xff]  ;;  %v4092_v14 = vld [vmem:[%s5595_s10 + $0x8] sm:$0xff]  }
0x1478   :  { %4217 = vpow2.f32 %v3464_v15 }
0x147a   :  { %v1351_v3 = vpop.f32.mrb[32].mxu0 }
0x147b   :  { %v1352_v4 = vadd.f32 %v4892_v5, %v1351_v3  ;;  %v3865_v10 = vpop.f32.mrb[33].mxu0 }
0x147c   :  { %v1354_v13 = vpop.f32.mrb[34].mxu0 }
0x147d   :  { %1364 = vrot.lane.b32.xlu1 %v1352_v4, %s4582_s5  ;;  %v3866_v42 = vpop.f32.mrb[35].mxu0  ;;  %v3462_v16 = vmul.f32 -1.442695, %v1352_v4 }
0x147f   :  { %4219 = vpow2.f32 %v3462_v16  ;;  %v4094_v16 = vld [vmem:[%s5595_s10 + $0x10] sm:$0xff]  }
0x1482   :  { %v4218_v12 = vpop.eup %4217 }
0x1483   :  { %v1434_v17 = vadd.f32 1.0, %v4218_v12 }
0x1485   :  { %4221 = vrcp.f32 %v1434_v17 }
0x1489   :  { %v4220_v18 = vpop.eup %4219 }
0x148a   :  { %v1360_v7 = vadd.f32 1.0, %v4220_v18  ;;  %v4095_v18 = vld [vmem:[#allocation13 + $0x8] sm:$0xff]  }
0x148c   :  { %4223 = vrcp.f32 %v1360_v7  ;;  %v4096_v7 = vld [vmem:[%s5595_s10 + $0x18] sm:$0xff]  }
0x148f   :  { %v4222_v20 = vpop.eup %4221 }
0x1490   :  { %v1449_v33 = vsub.f32 1.0, %v4222_v20  ;;  %v1455_v6 = vmul.f32 %v4222_v20, %v5100_v50 }
0x1496   :  { %v4224_v23 = vpop.eup %4223 }
0x1497   :  { %v1374_v40 = vsub.f32 1.0, %v4224_v23  ;;  %v1380_v57 = vmul.f32 %v4224_v23, %v5112_v54 }
0x14e8   :  { %v1440_v21 = vpop.permute.xlu0 %1439 }
0x14e9   :  { %v1442_v22 = vmul.f32 %v4222_v20, %v1440_v21 }
0x14eb   :  { %1444 = vrot.lane.b32.xlu0 %v1442_v22, %s4569_s28 }
0x14ef   :  { %v1365_v24 = vpop.permute.xlu1 %1364 }
0x14f0   :  { %v1367_v25 = vmul.f32 %v4224_v23, %v1365_v24 }
0x14f2   :  { %1369 = vrot.lane.b32.xlu1 %v1367_v25, %s4569_s28 }
0x155d   :  { %v1445_v61 = vpop.permute.xlu0 %1444 }
0x155e   :  { %v1447_v26 = vadd.f32 %v1445_v61, %v266_v43  ;;  %v4093_v43 = vld [vmem:[#allocation13] sm:$0xff]  }
0x1560   :  { %4225 = vtanh.f32 %v1447_v26 }
0x1564   :  { %v1370_v27 = vpop.permute.xlu1 %1369 }
0x1565   :  { %v1372_v28 = vadd.f32 %v1370_v27, %v1352_v4 }
0x1567   :  { %4227 = vtanh.f32 %v1372_v28 }
0x156a   :  { %v4226_v31 = vpop.eup %4225 }
0x156b   :  { %1451 = vrot.lane.b32.xlu0 %v4226_v31, %s4581_s22 }
0x1571   :  { %v4228_v32 = vpop.eup %4227 }
0x1572   :  { %1376 = vrot.lane.b32.xlu1 %v4228_v32, %s4581_s22 }
0x15dd   :  { %v1452_v34 = vpop.permute.xlu0 %1451 }
0x15de   :  { %v1454_v35 = vmul.f32 %v1452_v34, %v1449_v33 }
0x15e0   :  { %v5138_v36 = vadd.f32 %v1455_v6, %v1454_v35  ;;  %v5211_v35 = vld [vmem:[%s5596_s11] ss:$0 sm:$0xff] }
0x15e2   :  { %1458 = vrot.lane.b32.xlu0 %v5138_v36, %s4581_s22  ;;  %v1531_v37 = vpack.c.bf16 %v5138_v36, %v5138_v36 }
0x15e4   :  { %1544 = vrot.lane.b32.xlu1 %v1531_v37, %s4581_s22  ;;  %v1377_v39 = vpop.permute.xlu1 %1376 }
0x15e5   :  { %v1379_v19 = vmul.f32 %v1377_v39, %v1374_v40 }
0x15e7   :  { %v5146_v44 = vadd.f32 %v1380_v57, %v1379_v19 }
0x1654   :  { %v1459_v45 = vpop.permute.xlu0 %1458 }
0x1655   :  { %v1461_v63 = vsel %vm294_vm3, %v1459_v45, %v5146_v44 }
0x1656   :  { %v1462_v2 = vpack.c.bf16 %v1461_v63, %v1461_v63  ;;  %v1545_v46 = vpop.permute.xlu1 %1544 }
0x1657   :  { %3892 = vmatmul.mubr.msk.bf16.vlgmr.msra.gmra.mrb[36].mxu0 %vm294_vm3, %v1545_v46 }
0x1658   :  { %3884 = vmatmul.mubr.msk.bf16.vlgmr.msra.gmra.mrb[32].mxu1 %vm419_vm4, %v1462_v2  ;;  %3903 = vmatprep.mubr.msk.bf16.mxu0 %vm4579_vm0, %v4578_v0 }
0x1659   :  { %3911 = vmatprep.mubr.msk.bf16.mxu1 %vm4579_vm0, %v4578_v0  ;;  %3896 = vmatpush3.bf16.msra.mxu0 %v4091_v8 }
0x165a   :  { %3908 = vmatpush3.bf16.msra.mxu1 %v4093_v43  ;;  %3897 = vmatprep.subr.bf16.mxu0 %v4578_v0 }
0x165b   :  { %3909 = vmatprep.subr.bf16.mxu1 %v4578_v0 }
0x165d   :  { %3898 = vmatpush3.bf16.msra.mxu0 %v4092_v14 }
0x165e   :  { %3899 = vmatprep.subr.bf16.mxu0 %v4578_v0  ;;  %3910 = vmatpush3.bf16.msra.mxu1 %v4095_v18 }
0x165f   :  { %3915 = vmatprep.subr.bf16.mxu1 %v4578_v0 }
0x1661   :  { %3900 = vmatpush3.bf16.msra.mxu0 %v4094_v16 }
0x1662   :  { %3901 = vmatprep.subr.bf16.mxu0 %v4578_v0 }
0x1665   :  { %3902 = vmatpush3.bf16.msra.mxu0 %v4096_v7 }
0x1666   :  { %3927 = vmatprep.subr.bf16.mxu0 %v4578_v0 }
0x172a   :  { %v1595_v48 = vpop.f32.mrb[36].mxu0 }
0x172b   :  { %v1596_v49 = vadd.f32 %v5156_v47, %v1595_v48  ;;  %v1500_v50 = vpop.f32.mrb[32].mxu1  ;;  %v3893_v11 = vpop.f32.mrb[37].mxu0 }
0x172c   :  { %v1501_v51 = vadd.f32 %v4892_v5, %v1500_v50  ;;  %v3885_v52 = vpop.f32.mrb[33].mxu1  ;;  %v1598_v59 = vpop.f32.mrb[38].mxu0 }
0x172d   :  { %1609 = vrot.lane.b32.xlu1 %v1596_v49, %s4569_s28  ;;  %v1503_v53 = vpop.f32.mrb[34].mxu1  ;;  %v3894_v9 = vpop.f32.mrb[39].mxu0  ;;  %v3471_v55 = vmul.f32 -1.442695, %v1596_v49 }
0x172e   :  { %1513 = vrot.lane.b32.xlu0 %v1501_v51, %s4582_s5  ;;  %v3886_v54 = vpop.f32.mrb[35].mxu1  ;;  %v3466_v56 = vmul.f32 -1.442695, %v1501_v51 }
0x172f   :  { %4229 = vpow2.f32 %v3471_v55 }
0x1730   :  { %4231 = vpow2.f32 %v3466_v56  ;;  %v4097_v56 = vld [vmem:[%s5595_s10] sm:$0xff]  }
0x1739   :  { %v4230_v58 = vpop.eup %4229 }
0x173a   :  { %v4232_v38 = vpop.eup %4231  ;;  %v1604_v60 = vadd.f32 1.0, %v4230_v58  ;;  %v4099_v58 = vld [vmem:[#allocation13] sm:$0xff]  }
0x173b   :  { %v1509_v1 = vadd.f32 1.0, %v4232_v38  ;;  %v4098_v38 = vld [vmem:[%s5595_s10 + $0x8] sm:$0xff]  }
0x173c   :  { %4233 = vrcp.f32 %v1604_v60 }
0x173d   :  { %4235 = vrcp.f32 %v1509_v1  ;;  %v4100_v1 = vld [vmem:[%s5595_s10 + $0x10] sm:$0xff]  }
0x1746   :  { %v4234_v5 = vpop.eup %4233 }
0x1747   :  { %v4236_v3 = vpop.eup %4235  ;;  %v1621_v20 = vsub.f32 1.0, %v4234_v5  ;;  %v1627_v23 = vmul.f32 %v4234_v5, %v5138_v36 }
0x1748   :  { %v1523_v26 = vsub.f32 1.0, %v4236_v3  ;;  %v1529_v28 = vmul.f32 %v4236_v3, %v5146_v44 }
0x179f   :  { %v1610_v62 = vpop.permute.xlu1 %1609 }
0x17a0   :  { %v1612_v4 = vmul.f32 %v4234_v5, %v1610_v62  ;;  %v1514_v10 = vpop.permute.xlu0 %1513  ;;  %v4101_v62 = vld [vmem:[#allocation13 + $0x8] sm:$0xff]  }
0x17a1   :  { %v1516_v13 = vmul.f32 %v4236_v3, %v1514_v10 }
0x17a2   :  { %v1619_v42 = vadd.f32 %v5165_v41, %v1612_v4  ;;  %v4102_v4 = vld [vmem:[%s5595_s10 + $0x18] sm:$0xff]  }
0x17a3   :  { %1518 = vrot.lane.b32.xlu0 %v1516_v13, %s4569_s28 }
0x17a4   :  { %4237 = vtanh.f32 %v1619_v42 }
0x17ae   :  { %v4238_v15 = vpop.eup %4237 }
0x17af   :  { %1623 = vrot.lane.b32.xlu1 %v4238_v15, %s4582_s5 }
0x1815   :  { %v1519_v12 = vpop.permute.xlu0 %1518 }
0x1816   :  { %v1521_v17 = vadd.f32 %v1519_v12, %v1501_v51 }
0x1818   :  { %4239 = vtanh.f32 %v1521_v17 }
0x1821   :  { %v1624_v21 = vpop.permute.xlu1 %1623 }
0x1822   :  { %v4240_v22 = vpop.eup %4239  ;;  %v1626_v24 = vmul.f32 %v1624_v21, %v1621_v20 }
0x1823   :  { %1525 = vrot.lane.b32.xlu0 %v4240_v22, %s4581_s22 }
0x1824   :  { %v5190_v25 = vadd.f32 %v1627_v23, %v1626_v24 }
0x1826   :  { %1630 = vrot.lane.b32.xlu1 %v5190_v25, %s4581_s22  ;;  %v1747_v61 = vpack.c.bf16 %v5190_v25, %v5190_v25 }
0x1828   :  { %1760 = vrot.lane.b32.xlu0 %v1747_v61, %s4581_s22 }
0x1895   :  { %v1526_v27 = vpop.permute.xlu0 %1525 }
0x1896   :  { %v1528_v29 = vmul.f32 %v1526_v27, %v1523_v26 }
0x1898   :  { %v5198_v30 = vadd.f32 %v1529_v28, %v1528_v29  ;;  %v1631_v31 = vpop.permute.xlu1 %1630 }
0x189a   :  { %v1633_v32 = vsel %vm294_vm3, %v1631_v31, %v5198_v30  ;;  %v1761_v33 = vpop.permute.xlu0 %1760 }
0x189b   :  { %v1634_v34 = vpack.c.bf16 %v1633_v32, %v1633_v32  ;;  %3912 = vmatmul.mubr.msk.bf16.vlgmr.msra.gmra.mrb[36].mxu1 %vm294_vm3, %v1761_v33 }
0x189c   :  { %3923 = vmatprep.mubr.msk.bf16.mxu1 %vm4579_vm0, %v4578_v0  ;;  %3916 = vmatpush3.bf16.msra.mxu1 %v4097_v56 }
0x189d   :  { %3904 = vmatmul.mubr.msk.bf16.vlgmr.msra.gmra.mrb[40].mxu0 %vm419_vm4, %v1634_v34  ;;  %3917 = vmatprep.subr.bf16.mxu1 %v4578_v0 }
0x189e   :  { %3931 = vmatprep.mubr.msk.bf16.mxu0 %vm4579_vm0, %v4578_v0  ;;  %3928 = vmatpush3.bf16.msra.mxu0 %v4099_v58 }
0x189f   :  { %3929 = vmatprep.subr.bf16.mxu0 %v4578_v0 }
0x18a0   :  { %3918 = vmatpush3.bf16.msra.mxu1 %v4098_v38 }
0x18a1   :  { %3919 = vmatprep.subr.bf16.mxu1 %v4578_v0 }
0x18a2   :  { %3930 = vmatpush3.bf16.msra.mxu0 %v4101_v62 }
0x18a3   :  { %3935 = vmatprep.subr.bf16.mxu0 %v4578_v0 }
0x18a4   :  { %3920 = vmatpush3.bf16.msra.mxu1 %v4100_v1 }
0x18a5   :  { %3921 = vmatprep.subr.bf16.mxu1 %v4578_v0 }
0x18a8   :  { %3922 = vmatpush3.bf16.msra.mxu1 %v4102_v4 }
0x18a9   :  { %3947 = vmatprep.subr.bf16.mxu1 %v4578_v0 }
0x196e   :  { %v1811_v6 = vpop.f32.mrb[36].mxu1 }
0x196f   :  { %v1812_v36 = vadd.f32 %v5156_v47, %v1811_v6  ;;  %v3913_v37 = vpop.f32.mrb[37].mxu1 }
0x1970   :  { %v1711_v39 = vpop.f32.mrb[40].mxu0  ;;  %v1814_v40 = vpop.f32.mrb[38].mxu1 }
0x1971   :  { %v1712_v19 = vadd.f32 %v5211_v35, %v1711_v39  ;;  %v3905_v57 = vpop.f32.mrb[41].mxu0  ;;  %1825 = vrot.lane.b32.xlu0 %v1812_v36, %s4569_s28  ;;  %v3914_v44 = vpop.f32.mrb[39].mxu1  ;;  %v3484_v2 = vmul.f32 -1.442695, %v1812_v36 }
0x1972   :  { %v1714_v45 = vpop.f32.mrb[42].mxu0 }
0x1973   :  { %1724 = vrot.lane.b32.xlu1 %v1712_v19, %s4582_s5  ;;  %v3906_v63 = vpop.f32.mrb[43].mxu0  ;;  %v3479_v46 = vmul.f32 -1.442695, %v1712_v19  ;;  %4241 = vpow2.f32 %v3484_v2 }
0x1975   :  { %4243 = vpow2.f32 %v3479_v46  ;;  %v4103_v46 = vld [vmem:[%s5595_s10] sm:$0xff]  }
0x197d   :  { %v4242_v48 = vpop.eup %4241 }
0x197e   :  { %v1820_v50 = vadd.f32 1.0, %v4242_v48  ;;  %v4105_v48 = vld [vmem:[#allocation13] sm:$0xff]  }
0x197f   :  { %v4244_v49 = vpop.eup %4243 }
0x1980   :  { %v1720_v11 = vadd.f32 1.0, %v4244_v49  ;;  %4245 = vrcp.f32 %v1820_v50  ;;  %v4104_v49 = vld [vmem:[%s5595_s10 + $0x8] sm:$0xff]  }
0x1982   :  { %4247 = vrcp.f32 %v1720_v11  ;;  %v4106_v11 = vld [vmem:[%s5595_s10 + $0x10] sm:$0xff]  }
0x198a   :  { %v4246_v51 = vpop.eup %4245 }
0x198b   :  { %v1837_v10 = vsub.f32 1.0, %v4246_v51  ;;  %v1843_v42 = vmul.f32 %v4246_v51, %v5190_v25 }
0x198c   :  { %v4248_v53 = vpop.eup %4247 }
0x198d   :  { %v1734_v16 = vsub.f32 1.0, %v4248_v53  ;;  %v1740_v17 = vmul.f32 %v4248_v53, %v5198_v30 }
0x19e3   :  { %v1826_v52 = vpop.permute.xlu0 %1825 }
0x19e4   :  { %v1828_v59 = vmul.f32 %v4246_v51, %v1826_v52  ;;  %v4107_v52 = vld [vmem:[#allocation13 + $0x8] sm:$0xff]  }
0x19e5   :  { %v1725_v9 = vpop.permute.xlu1 %1724 }
0x19e6   :  { %v1835_v54 = vadd.f32 %v5165_v41, %v1828_v59  ;;  %v1727_v55 = vmul.f32 %v4248_v53, %v1725_v9  ;;  %v4108_v53 = vld [vmem:[%s5595_s10 + $0x18] sm:$0xff]  }
0x19e8   :  { %4249 = vtanh.f32 %v1835_v54  ;;  %1729 = vrot.lane.b32.xlu1 %v1727_v55, %s4569_s28 }
0x19f2   :  { %v4250_v60 = vpop.eup %4249 }
0x19f3   :  { %1839 = vrot.lane.b32.xlu0 %v4250_v60, %s4582_s5 }
0x1a5a   :  { %v1730_v5 = vpop.permute.xlu1 %1729 }
0x1a5b   :  { %v1732_v3 = vadd.f32 %v1730_v5, %v1712_v19 }
0x1a5d   :  { %4251 = vtanh.f32 %v1732_v3 }
0x1a65   :  { %v1840_v13 = vpop.permute.xlu0 %1839 }
0x1a66   :  { %v1842_v8 = vmul.f32 %v1840_v13, %v1837_v10 }
0x1a67   :  { %v4252_v43 = vpop.eup %4251 }
0x1a68   :  { %v5239_v14 = vadd.f32 %v1843_v42, %v1842_v8  ;;  %1736 = vrot.lane.b32.xlu1 %v4252_v43, %s4581_s22 }
0x1a6a   :  { %1846 = vrot.lane.b32.xlu0 %v5239_v14, %s4581_s22  ;;  %v1963_v15 = vpack.c.bf16 %v5239_v14, %v5239_v14 }
0x1a6c   :  { %1976 = vrot.lane.b32.xlu1 %v1963_v15, %s4581_s22 }
0x1ada   :  { %v1737_v12 = vpop.permute.xlu1 %1736 }
0x1adb   :  { %v1739_v18 = vmul.f32 %v1737_v12, %v1734_v16 }
0x1adc   :  { %v1847_v20 = vpop.permute.xlu0 %1846 }
0x1add   :  { %v5248_v7 = vadd.f32 %v1740_v17, %v1739_v18 }
0x1ade   :  { %v1977_v21 = vpop.permute.xlu1 %1976 }
0x1adf   :  { %v1849_v22 = vsel %vm294_vm3, %v1847_v20, %v5248_v7  ;;  %3932 = vmatmul.mubr.msk.bf16.vlgmr.msra.gmra.mrb[44].mxu0 %vm294_vm3, %v1977_v21 }
0x1ae0   :  { %v1850_v23 = vpack.c.bf16 %v1849_v22, %v1849_v22  ;;  %3943 = vmatprep.mubr.msk.bf16.mxu0 %vm4579_vm0, %v4578_v0  ;;  %3936 = vmatpush3.bf16.msra.mxu0 %v4103_v46 }
0x1ae1   :  { %3937 = vmatprep.subr.bf16.mxu0 %v4578_v0 }
0x1ae2   :  { %3924 = vmatmul.mubr.msk.bf16.vlgmr.msra.gmra.mrb[40].mxu1 %vm419_vm4, %v1850_v23 }
0x1ae3   :  { %3951 = vmatprep.mubr.msk.bf16.mxu1 %vm4579_vm0, %v4578_v0  ;;  %3948 = vmatpush3.bf16.msra.mxu1 %v4105_v48 }
0x1ae4   :  { %3949 = vmatprep.subr.bf16.mxu1 %v4578_v0  ;;  %3938 = vmatpush3.bf16.msra.mxu0 %v4104_v49 }
0x1ae5   :  { %3939 = vmatprep.subr.bf16.mxu0 %v4578_v0 }
0x1ae7   :  { %3950 = vmatpush3.bf16.msra.mxu1 %v4107_v52 }
0x1ae8   :  { %3940 = vmatpush3.bf16.msra.mxu0 %v4106_v11  ;;  %3955 = vmatprep.subr.bf16.mxu1 %v4578_v0 }
0x1ae9   :  { %3941 = vmatprep.subr.bf16.mxu0 %v4578_v0 }
0x1aec   :  { %3942 = vmatpush3.bf16.msra.mxu0 %v4108_v53 }
0x1aed   :  { %3967 = vmatprep.subr.bf16.mxu0 %v4578_v0 }
0x1bb2   :  { %v2027_v24 = vpop.f32.mrb[44].mxu0 }
0x1bb3   :  { %v2028_v25 = vadd.f32 %v5156_v47, %v2027_v24  ;;  %v3933_v61 = vpop.f32.mrb[45].mxu0 }
0x1bb4   :  { %v2030_v26 = vpop.f32.mrb[46].mxu0 }
0x1bb5   :  { %2041 = vrot.lane.b32.xlu1 %v2028_v25, %s4569_s28  ;;  %v1927_v27 = vpop.f32.mrb[40].mxu1  ;;  %v3934_v28 = vpop.f32.mrb[47].mxu0  ;;  %v3497_v33 = vmul.f32 -1.442695, %v2028_v25 }
0x1bb6   :  { %v1928_v29 = vadd.f32 %v5211_v35, %v1927_v27  ;;  %v3925_v30 = vpop.f32.mrb[41].mxu1 }
0x1bb7   :  { %v1930_v31 = vpop.f32.mrb[42].mxu1  ;;  %4253 = vpow2.f32 %v3497_v33 }
0x1bb8   :  { %1940 = vrot.lane.b32.xlu0 %v1928_v29, %s4582_s5  ;;  %v3926_v32 = vpop.f32.mrb[43].mxu1  ;;  %v3492_v34 = vmul.f32 -1.442695, %v1928_v29 }
0x1bba   :  { %4255 = vpow2.f32 %v3492_v34 }
0x1bc1   :  { %v4254_v6 = vpop.eup %4253 }
0x1bc2   :  { %v2036_v37 = vadd.f32 1.0, %v4254_v6  ;;  %v4109_v6 = vld [vmem:[%s5595_s10] sm:$0xff]  }
0x1bc4   :  { %v4256_v36 = vpop.eup %4255  ;;  %4257 = vrcp.f32 %v2036_v37  ;;  %v4110_v37 = vld [vmem:[%s5595_s10 + $0x8] sm:$0xff]  }
0x1bc5   :  { %v1936_v39 = vadd.f32 1.0, %v4256_v36  ;;  %v4111_v36 = vld [vmem:[#allocation13] sm:$0xff]  }
0x1bc7   :  { %4259 = vrcp.f32 %v1936_v39 }
0x1bce   :  { %v4258_v40 = vpop.eup %4257 }
0x1bcf   :  { %v2053_v9 = vsub.f32 1.0, %v4258_v40  ;;  %v2059_v55 = vmul.f32 %v4258_v40, %v5239_v14 }
0x1bd1   :  { %v4260_v44 = vpop.eup %4259 }
0x1bd2   :  { %v1950_v1 = vsub.f32 1.0, %v4260_v44  ;;  %v1956_v62 = vmul.f32 %v4260_v44, %v5248_v7 }
0x1c27   :  { %v2042_v19 = vpop.permute.xlu1 %2041 }
0x1c28   :  { %v2044_v57 = vmul.f32 %v4258_v40, %v2042_v19  ;;  %v4112_v40 = vld [vmem:[%s5595_s10 + $0x10] sm:$0xff]  }
0x1c2a   :  { %v2051_v45 = vadd.f32 %v5165_v41, %v2044_v57  ;;  %v1941_v63 = vpop.permute.xlu0 %1940  ;;  %v4113_v57 = vld [vmem:[#allocation13 + $0x8] sm:$0xff]  }
0x1c2b   :  { %v1943_v2 = vmul.f32 %v4260_v44, %v1941_v63 }
0x1c2c   :  { %4261 = vtanh.f32 %v2051_v45  ;;  %v4114_v45 = vld [vmem:[%s5595_s10 + $0x18] sm:$0xff]  }
0x1c2d   :  { %1945 = vrot.lane.b32.xlu0 %v1943_v2, %s4569_s28 }
0x1c36   :  { %v4262_v50 = vpop.eup %4261 }
0x1c37   :  { %2055 = vrot.lane.b32.xlu1 %v4262_v50, %s4582_s5 }
0x1c9f   :  { %v1946_v51 = vpop.permute.xlu0 %1945 }
0x1ca0   :  { %v1948_v59 = vadd.f32 %v1946_v51, %v1928_v29 }
0x1ca2   :  { %4263 = vtanh.f32 %v1948_v59 }
0x1ca9   :  { %v2056_v54 = vpop.permute.xlu1 %2055 }
0x1caa   :  { %v2058_v56 = vmul.f32 %v2056_v54, %v2053_v9 }
0x1cac   :  { %v4264_v58 = vpop.eup %4263  ;;  %v5284_v38 = vadd.f32 %v2059_v55, %v2058_v56 }
0x1cad   :  { %1952 = vrot.lane.b32.xlu0 %v4264_v58, %s4581_s22 }
0x1cae   :  { %2062 = vrot.lane.b32.xlu1 %v5284_v38, %s4581_s22  ;;  %v2179_v60 = vpack.c.bf16 %v5284_v38, %v5284_v38 }
0x1cb1   :  { %2192 = vrot.lane.b32.xlu0 %v2179_v60, %s4581_s22 }
0x1d1f   :  { %v1953_v5 = vpop.permute.xlu0 %1952 }
0x1d20   :  { %v1955_v3 = vmul.f32 %v1953_v5, %v1950_v1  ;;  %v2063_v10 = vpop.permute.xlu1 %2062 }
0x1d22   :  { %v5293_v4 = vadd.f32 %v1956_v62, %v1955_v3 }
0x1d23   :  { %v2193_v13 = vpop.permute.xlu0 %2192 }
0x1d24   :  { %v2065_v42 = vsel %vm294_vm3, %v2063_v10, %v5293_v4  ;;  %3952 = vmatmul.mubr.msk.bf16.vlgmr.msra.gmra.mrb[44].mxu1 %vm294_vm3, %v2193_v13 }
0x1d25   :  { %v2066_v8 = vpack.c.bf16 %v2065_v42, %v2065_v42  ;;  %3963 = vmatprep.mubr.msk.bf16.mxu1 %vm4579_vm0, %v4578_v0  ;;  %3956 = vmatpush3.bf16.msra.mxu1 %v4109_v6 }
0x1d26   :  { %3957 = vmatprep.subr.bf16.mxu1 %v4578_v0 }
0x1d27   :  { %3944 = vmatmul.mubr.msk.bf16.vlgmr.msra.gmra.mrb[48].mxu0 %vm419_vm4, %v2066_v8 }
0x1d28   :  { %3971 = vmatprep.mubr.msk.bf16.mxu0 %vm4579_vm0, %v4578_v0  ;;  %3968 = vmatpush3.bf16.msra.mxu0 %v4111_v36 }
0x1d29   :  { %3969 = vmatprep.subr.bf16.mxu0 %v4578_v0  ;;  %3958 = vmatpush3.bf16.msra.mxu1 %v4110_v37 }
0x1d2a   :  { %3959 = vmatprep.subr.bf16.mxu1 %v4578_v0 }
0x1d2c   :  { %3970 = vmatpush3.bf16.msra.mxu0 %v4113_v57 }
0x1d2d   :  { %3960 = vmatpush3.bf16.msra.mxu1 %v4112_v40  ;;  %3975 = vmatprep.subr.bf16.mxu0 %v4578_v0 }
0x1d2e   :  { %3961 = vmatprep.subr.bf16.mxu1 %v4578_v0 }
0x1d31   :  { %3962 = vmatpush3.bf16.msra.mxu1 %v4114_v45 }
0x1d32   :  { %3987 = vmatprep.subr.bf16.mxu1 %v4578_v0 }
0x1df7   :  { %v2243_v43 = vpop.f32.mrb[44].mxu1 }
0x1df8   :  { %v2244_v14 = vadd.f32 %v5156_v47, %v2243_v43  ;;  %v3953_v15 = vpop.f32.mrb[45].mxu1 }
0x1df9   :  { %v2246_v16 = vpop.f32.mrb[46].mxu1 }
0x1dfa   :  { %v2143_v12 = vpop.f32.mrb[48].mxu0  ;;  %2257 = vrot.lane.b32.xlu0 %v2244_v14, %s4569_s28  ;;  %v3954_v17 = vpop.f32.mrb[47].mxu1  ;;  %v3510_v23 = vmul.f32 -1.442695, %v2244_v14 }
0x1dfb   :  { %v2144_v18 = vadd.f32 %v5211_v35, %v2143_v12  ;;  %v3945_v20 = vpop.f32.mrb[49].mxu0 }
0x1dfc   :  { %v2146_v21 = vpop.f32.mrb[50].mxu0  ;;  %4265 = vpow2.f32 %v3510_v23 }
0x1dfd   :  { %2156 = vrot.lane.b32.xlu1 %v2144_v18, %s4582_s5  ;;  %v3946_v22 = vpop.f32.mrb[51].mxu0  ;;  %v3505_v24 = vmul.f32 -1.442695, %v2144_v18 }
0x1dff   :  { %4267 = vpow2.f32 %v3505_v24 }
0x1e06   :  { %v4266_v25 = vpop.eup %4265 }
0x1e07   :  { %v2252_v26 = vadd.f32 1.0, %v4266_v25 }
0x1e09   :  { %v4268_v61 = vpop.eup %4267  ;;  %4269 = vrcp.f32 %v2252_v26  ;;  %v4117_v26 = vld [vmem:[#allocation13] sm:$0xff]  }
0x1e0a   :  { %v2152_v27 = vadd.f32 1.0, %v4268_v61  ;;  %v4115_v61 = vld [vmem:[%s5595_s10] sm:$0xff]  }
0x1e0c   :  { %4271 = vrcp.f32 %v2152_v27  ;;  %v4116_v27 = vld [vmem:[%s5595_s10 + $0x8] sm:$0xff]  }
0x1e13   :  { %v4270_v28 = vpop.eup %4269 }
0x1e14   :  { %v2269_v63 = vsub.f32 1.0, %v4270_v28  ;;  %v2275_v46 = vmul.f32 %v4270_v28, %v5284_v38 }
0x1e16   :  { %v4272_v31 = vpop.eup %4271 }
0x1e17   :  { %v2166_v51 = vsub.f32 1.0, %v4272_v31  ;;  %v2172_v59 = vmul.f32 %v4272_v31, %v5293_v4 }
0x1e6c   :  { %v2258_v29 = vpop.permute.xlu0 %2257 }
0x1e6d   :  { %v2260_v30 = vmul.f32 %v4270_v28, %v2258_v29  ;;  %v4118_v29 = vld [vmem:[%s5595_s10 + $0x10] sm:$0xff]  }
0x1e6f   :  { %v2267_v32 = vadd.f32 %v5165_v41, %v2260_v30  ;;  %v2157_v33 = vpop.permute.xlu1 %2156 }
0x1e70   :  { %v2159_v34 = vmul.f32 %v4272_v31, %v2157_v33  ;;  %v4119_v31 = vld [vmem:[#allocation13 + $0x8] sm:$0xff]   ;;  %v4120_v33 = vld [vmem:[%s5595_s10 + $0x18] sm:$0xff]  }
0x1e71   :  { %4273 = vtanh.f32 %v2267_v32 }
0x1e72   :  { %2161 = vrot.lane.b32.xlu1 %v2159_v34, %s4569_s28 }
0x1e7b   :  { %v4274_v39 = vpop.eup %4273 }
0x1e7c   :  { %2271 = vrot.lane.b32.xlu0 %v4274_v39, %s4582_s5 }
0x1ee4   :  { %v2162_v19 = vpop.permute.xlu1 %2161 }
0x1ee5   :  { %v2164_v44 = vadd.f32 %v2162_v19, %v2144_v18 }
0x1ee7   :  { %4275 = vtanh.f32 %v2164_v44 }
0x1eee   :  { %v2272_v2 = vpop.permute.xlu0 %2271 }
0x1eef   :  { %v2274_v48 = vmul.f32 %v2272_v2, %v2269_v63 }
0x1ef1   :  { %v4276_v49 = vpop.eup %4275  ;;  %v5329_v50 = vadd.f32 %v2275_v46, %v2274_v48 }
0x1ef2   :  { %2168 = vrot.lane.b32.xlu1 %v4276_v49, %s4581_s22 }
0x1ef3   :  { %2278 = vrot.lane.b32.xlu0 %v5329_v50, %s4581_s22  ;;  %v2395_v11 = vpack.c.bf16 %v5329_v50, %v5329_v50 }
0x1ef6   :  { %2408 = vrot.lane.b32.xlu1 %v2395_v11, %s4581_s22 }
0x1f64   :  { %v2169_v52 = vpop.permute.xlu1 %2168 }
0x1f65   :  { %v2171_v53 = vmul.f32 %v2169_v52, %v2166_v51  ;;  %v2279_v54 = vpop.permute.xlu0 %2278 }
0x1f67   :  { %v5338_v9 = vadd.f32 %v2172_v59, %v2171_v53 }
0x1f68   :  { %v2409_v55 = vpop.permute.xlu1 %2408 }
0x1f69   :  { %v2281_v56 = vsel %vm294_vm3, %v2279_v54, %v5338_v9  ;;  %3972 = vmatmul.mubr.msk.bf16.vlgmr.msra.gmra.mrb[52].mxu0 %vm294_vm3, %v2409_v55 }
0x1f6a   :  { %v2282_v58 = vpack.c.bf16 %v2281_v56, %v2281_v56  ;;  %3983 = vmatprep.mubr.msk.bf16.mxu0 %vm4579_vm0, %v4578_v0  ;;  %3976 = vmatpush3.bf16.msra.mxu0 %v4115_v61 }
0x1f6b   :  { %3977 = vmatprep.subr.bf16.mxu0 %v4578_v0 }
0x1f6c   :  { %3964 = vmatmul.mubr.msk.bf16.vlgmr.msra.gmra.mrb[48].mxu1 %vm419_vm4, %v2282_v58 }
0x1f6d   :  { %3991 = vmatprep.mubr.msk.bf16.mxu1 %vm4579_vm0, %v4578_v0  ;;  %3988 = vmatpush3.bf16.msra.mxu1 %v4117_v26 }
0x1f6e   :  { %3989 = vmatprep.subr.bf16.mxu1 %v4578_v0  ;;  %3978 = vmatpush3.bf16.msra.mxu0 %v4116_v27 }
0x1f6f   :  { %3979 = vmatprep.subr.bf16.mxu0 %v4578_v0 }
0x1f71   :  { %3990 = vmatpush3.bf16.msra.mxu1 %v4119_v31 }
0x1f72   :  { %3980 = vmatpush3.bf16.msra.mxu0 %v4118_v29  ;;  %3995 = vmatprep.subr.bf16.mxu1 %v4578_v0 }
0x1f73   :  { %3981 = vmatprep.subr.bf16.mxu0 %v4578_v0 }
0x1f76   :  { %3982 = vmatpush3.bf16.msra.mxu0 %v4120_v33 }
0x1f77   :  { %4007 = vmatprep.subr.bf16.mxu0 %v4578_v0 }
0x203c   :  { %v2459_v38 = vpop.f32.mrb[52].mxu0 }
0x203d   :  { %v2460_v60 = vadd.f32 %v5156_v47, %v2459_v38  ;;  %v3973_v1 = vpop.f32.mrb[53].mxu0 }
0x203e   :  { %v2462_v5 = vpop.f32.mrb[54].mxu0 }
0x203f   :  { %2473 = vrot.lane.b32.xlu1 %v2460_v60, %s4569_s28  ;;  %v2359_v62 = vpop.f32.mrb[48].mxu1  ;;  %v3974_v3 = vpop.f32.mrb[55].mxu0  ;;  %v3523_v43 = vmul.f32 -1.442695, %v2460_v60 }
0x2040   :  { %v2360_v10 = vadd.f32 %v5211_v35, %v2359_v62  ;;  %v3965_v13 = vpop.f32.mrb[49].mxu1 }
0x2041   :  { %v2362_v42 = vpop.f32.mrb[50].mxu1  ;;  %4277 = vpow2.f32 %v3523_v43 }
0x2042   :  { %2372 = vrot.lane.b32.xlu0 %v2360_v10, %s4582_s5  ;;  %v3966_v8 = vpop.f32.mrb[51].mxu1  ;;  %v3518_v14 = vmul.f32 -1.442695, %v2360_v10 }
0x2044   :  { %4279 = vpow2.f32 %v3518_v14 }
0x204b   :  { %v4278_v15 = vpop.eup %4277 }
0x204c   :  { %v2468_v12 = vadd.f32 1.0, %v4278_v15 }
0x204e   :  { %v4280_v16 = vpop.eup %4279  ;;  %4281 = vrcp.f32 %v2468_v12  ;;  %v4123_v12 = vld [vmem:[#allocation13] sm:$0xff]  }
0x204f   :  { %v2368_v17 = vadd.f32 1.0, %v4280_v16  ;;  %v4121_v16 = vld [vmem:[%s5595_s10] sm:$0xff]  }
0x2051   :  { %4283 = vrcp.f32 %v2368_v17  ;;  %v4122_v17 = vld [vmem:[%s5595_s10 + $0x8] sm:$0xff]  }
0x2058   :  { %v4282_v18 = vpop.eup %4281 }
0x2059   :  { %v2485_v34 = vsub.f32 1.0, %v4282_v18  ;;  %v2491_v36 = vmul.f32 %v4282_v18, %v5329_v50 }
0x205b   :  { %v4284_v22 = vpop.eup %4283 }
0x205c   :  { %v2382_v57 = vsub.f32 1.0, %v4284_v22  ;;  %v2388_v45 = vmul.f32 %v4284_v22, %v5338_v9 }
0x20b1   :  { %v2474_v20 = vpop.permute.xlu1 %2473 }
0x20b2   :  { %v2476_v21 = vmul.f32 %v4282_v18, %v2474_v20  ;;  %v4124_v18 = vld [vmem:[%s5595_s10 + $0x10] sm:$0xff]  }
0x20b4   :  { %v2483_v23 = vadd.f32 %v5165_v41, %v2476_v21  ;;  %v2373_v24 = vpop.permute.xlu0 %2372  ;;  %v4125_v21 = vld [vmem:[#allocation13 + $0x8] sm:$0xff]  }
0x20b5   :  { %v2375_v25 = vmul.f32 %v4284_v22, %v2373_v24 }
0x20b6   :  { %4285 = vtanh.f32 %v2483_v23  ;;  %v4126_v23 = vld [vmem:[%s5595_s10 + $0x18] sm:$0xff]  }
0x20b7   :  { %2377 = vrot.lane.b32.xlu0 %v2375_v25, %s4569_s28 }
0x20c0   :  { %v4286_v28 = vpop.eup %4285 }
0x20c1   :  { %2487 = vrot.lane.b32.xlu1 %v4286_v28, %s4582_s5 }
0x2129   :  { %v2378_v30 = vpop.permute.xlu0 %2377 }
0x212a   :  { %v2380_v32 = vadd.f32 %v2378_v30, %v2360_v10 }
0x212c   :  { %4287 = vtanh.f32 %v2380_v32 }
0x2133   :  { %v2488_v6 = vpop.permute.xlu1 %2487 }
0x2134   :  { %v2490_v37 = vmul.f32 %v2488_v6, %v2485_v34 }
0x2136   :  { %v4288_v39 = vpop.eup %4287  ;;  %v5374_v40 = vadd.f32 %v2491_v36, %v2490_v37 }
0x2137   :  { %2384 = vrot.lane.b32.xlu0 %v4288_v39, %s4581_s22 }
0x2138   :  { %2494 = vrot.lane.b32.xlu1 %v5374_v40, %s4581_s22  ;;  %v2611_v19 = vpack.c.bf16 %v5374_v40, %v5374_v40 }
0x213b   :  { %2624 = vrot.lane.b32.xlu0 %v2611_v19, %s4581_s22 }
0x21a9   :  { %v2385_v44 = vpop.permute.xlu0 %2384 }
0x21aa   :  { %v2387_v63 = vmul.f32 %v2385_v44, %v2382_v57  ;;  %v2495_v46 = vpop.permute.xlu1 %2494 }
0x21ac   :  { %v5383_v2 = vadd.f32 %v2388_v45, %v2387_v63 }
0x21ad   :  { %v2625_v48 = vpop.permute.xlu0 %2624 }
0x21ae   :  { %v2497_v49 = vsel %vm294_vm3, %v2495_v46, %v5383_v2  ;;  %3992 = vmatmul.mubr.msk.bf16.vlgmr.msra.gmra.mrb[52].mxu1 %vm294_vm3, %v2625_v48 }
0x21af   :  { %v2498_v50 = vpack.c.bf16 %v2497_v49, %v2497_v49  ;;  %4003 = vmatprep.mubr.msk.bf16.mxu1 %vm4579_vm0, %v4578_v0  ;;  %3996 = vmatpush3.bf16.msra.mxu1 %v4121_v16 }
0x21b0   :  { %3997 = vmatprep.subr.bf16.mxu1 %v4578_v0 }
0x21b1   :  { %3984 = vmatmul.mubr.msk.bf16.vlgmr.msra.gmra.mrb[56].mxu0 %vm419_vm4, %v2498_v50 }
0x21b2   :  { %4011 = vmatprep.mubr.msk.bf16.mxu0 %vm4579_vm0, %v4578_v0  ;;  %4008 = vmatpush3.bf16.msra.mxu0 %v4123_v12 }
0x21b3   :  { %4009 = vmatprep.subr.bf16.mxu0 %v4578_v0  ;;  %3998 = vmatpush3.bf16.msra.mxu1 %v4122_v17 }
0x21b4   :  { %3999 = vmatprep.subr.bf16.mxu1 %v4578_v0 }
0x21b6   :  { %4010 = vmatpush3.bf16.msra.mxu0 %v4125_v21 }
0x21b7   :  { %4000 = vmatpush3.bf16.msra.mxu1 %v4124_v18  ;;  %4015 = vmatprep.subr.bf16.mxu0 %v4578_v0 }
0x21b8   :  { %4001 = vmatprep.subr.bf16.mxu1 %v4578_v0 }
0x21bb   :  { %4002 = vmatpush3.bf16.msra.mxu1 %v4126_v23 }
0x21bc   :  { %4027 = vmatprep.subr.bf16.mxu1 %v4578_v0 }
0x2281   :  { %v2675_v11 = vpop.f32.mrb[52].mxu1 }
0x2282   :  { %v2676_v51 = vadd.f32 %v5156_v47, %v2675_v11  ;;  %v3993_v52 = vpop.f32.mrb[53].mxu1 }
0x2283   :  { %v2678_v59 = vpop.f32.mrb[54].mxu1 }
0x2284   :  { %v2575_v53 = vpop.f32.mrb[56].mxu0  ;;  %2689 = vrot.lane.b32.xlu0 %v2676_v51, %s4569_s28  ;;  %v3994_v54 = vpop.f32.mrb[55].mxu1  ;;  %v3536_v60 = vmul.f32 -1.442695, %v2676_v51 }
0x2285   :  { %v2576_v55 = vadd.f32 %v5211_v35, %v2575_v53  ;;  %v3985_v56 = vpop.f32.mrb[57].mxu0 }
0x2286   :  { %v2578_v58 = vpop.f32.mrb[58].mxu0  ;;  %4289 = vpow2.f32 %v3536_v60 }
0x2287   :  { %2588 = vrot.lane.b32.xlu1 %v2576_v55, %s4582_s5  ;;  %v3986_v38 = vpop.f32.mrb[59].mxu0  ;;  %v3531_v1 = vmul.f32 -1.442695, %v2576_v55 }
0x2289   :  { %4291 = vpow2.f32 %v3531_v1 }
0x2290   :  { %v4290_v5 = vpop.eup %4289 }
0x2291   :  { %v2684_v47 = vadd.f32 1.0, %v4290_v5 }
0x2293   :  { %v4292_v62 = vpop.eup %4291  ;;  %4293 = vrcp.f32 %v2684_v47  ;;  %v4127_v47 = vld [vmem:[%s5595_s10] sm:$0xff]  }
0x2294   :  { %v2584_v3 = vadd.f32 1.0, %v4292_v62 }
0x2296   :  { %4295 = vrcp.f32 %v2584_v3  ;;  %v4129_v3 = vld [vmem:[#allocation13] sm:$0xff]  }
0x229d   :  { %v4294_v10 = vpop.eup %4293 }
0x229e   :  { %v2701_v24 = vsub.f32 1.0, %v4294_v10  ;;  %v2707_v61 = vmul.f32 %v4294_v10, %v5374_v40  ;;  %v5438_v40 = vld [vmem:[#allocation15] ss:$0 sm:$0xff] }
0x22a0   :  { %v4296_v8 = vpop.eup %4295 }
0x22a1   :  { %v2598_v30 = vsub.f32 1.0, %v4296_v8  ;;  %v2604_v32 = vmul.f32 %v4296_v8, %v5383_v2 }
0x22f6   :  { %v2690_v13 = vpop.permute.xlu0 %2689 }
0x22f7   :  { %v2692_v42 = vmul.f32 %v4294_v10, %v2690_v13  ;;  %v4128_v10 = vld [vmem:[%s5595_s10 + $0x8] sm:$0xff]  }
0x22f9   :  { %v2699_v43 = vadd.f32 %v5165_v41, %v2692_v42  ;;  %v2589_v14 = vpop.permute.xlu1 %2588  ;;  %v4130_v42 = vld [vmem:[%s5595_s10 + $0x10] sm:$0xff]  }
0x22fa   :  { %v2591_v15 = vmul.f32 %v4296_v8, %v2589_v14 }
0x22fb   :  { %4297 = vtanh.f32 %v2699_v43  ;;  %v4131_v43 = vld [vmem:[#allocation13 + $0x8] sm:$0xff]  }
0x22fc   :  { %2593 = vrot.lane.b32.xlu1 %v2591_v15, %s4569_s28  ;;  %v4132_v15 = vld [vmem:[%s5595_s10 + $0x18] sm:$0xff]  }
0x2305   :  { %v4298_v41 = vpop.eup %4297 }
0x2306   :  { %2703 = vrot.lane.b32.xlu0 %v4298_v41, %s4582_s5 }
0x236e   :  { %v2594_v20 = vpop.permute.xlu1 %2593 }
0x236f   :  { %v2596_v22 = vadd.f32 %v2594_v20, %v2576_v55 }
0x2371   :  { %4299 = vtanh.f32 %v2596_v22 }
0x2378   :  { %v2704_v25 = vpop.permute.xlu0 %2703 }
0x2379   :  { %v2706_v26 = vmul.f32 %v2704_v25, %v2701_v24 }
0x237b   :  { %v4300_v27 = vpop.eup %4299  ;;  %v5419_v28 = vadd.f32 %v2707_v61, %v2706_v26 }
0x237c   :  { %2600 = vrot.lane.b32.xlu1 %v4300_v27, %s4581_s22 }
0x237d   :  { %v2827_v29 = vpack.c.bf16 %v5419_v28, %v5419_v28  ;;  %2710 = vrot.lane.b32.xlu0 %v5419_v28, %s4581_s22 }
0x2380   :  { %2840 = vrot.lane.b32.xlu1 %v2827_v29, %s4581_s22 }
0x23ee   :  { %v2601_v31 = vpop.permute.xlu1 %2600 }
0x23ef   :  { %v2603_v33 = vmul.f32 %v2601_v31, %v2598_v30  ;;  %v2711_v6 = vpop.permute.xlu0 %2710 }
0x23f1   :  { %v5428_v34 = vadd.f32 %v2604_v32, %v2603_v33  ;;  %v5491_v33 = vld [vmem:[%s5596_s11] ss:$0 sm:$0xff] }
0x23f2   :  { %v2841_v36 = vpop.permute.xlu1 %2840 }
0x23f3   :  { %v2713_v37 = vsel %vm294_vm3, %v2711_v6, %v5428_v34  ;;  %4012 = vmatmul.mubr.msk.bf16.vlgmr.msra.gmra.mrb[60].mxu0 %vm294_vm3, %v2841_v36 }
0x23f4   :  { %v2714_v39 = vpack.c.bf16 %v2713_v37, %v2713_v37  ;;  %4023 = vmatprep.mubr.msk.bf16.mxu0 %vm4579_vm0, %v4578_v0  ;;  %4016 = vmatpush3.bf16.msra.mxu0 %v4127_v47 }
0x23f5   :  { %4017 = vmatprep.subr.bf16.mxu0 %v4578_v0 }
0x23f6   :  { %4004 = vmatmul.mubr.msk.bf16.vlgmr.msra.gmra.mrb[56].mxu1 %vm419_vm4, %v2714_v39 }
0x23f7   :  { %4031 = vmatprep.mubr.msk.bf16.mxu1 %vm4579_vm0, %v4578_v0  ;;  %4028 = vmatpush3.bf16.msra.mxu1 %v4129_v3 }
0x23f8   :  { %4029 = vmatprep.subr.bf16.mxu1 %v4578_v0  ;;  %4018 = vmatpush3.bf16.msra.mxu0 %v4128_v10 }
0x23f9   :  { %4019 = vmatprep.subr.bf16.mxu0 %v4578_v0 }
0x23fb   :  { %4030 = vmatpush3.bf16.msra.mxu1 %v4131_v43 }
0x23fc   :  { %4020 = vmatpush3.bf16.msra.mxu0 %v4130_v42  ;;  %4035 = vmatprep.subr.bf16.mxu1 %v4578_v0 }
0x23fd   :  { %4021 = vmatprep.subr.bf16.mxu0 %v4578_v0 }
0x2400   :  { %4022 = vmatpush3.bf16.msra.mxu0 %v4132_v15 }
0x24c6   :  { %v2891_v19 = vpop.f32.mrb[60].mxu0 }
0x24c7   :  { %v2892_v57 = vadd.f32 %v5438_v40, %v2891_v19  ;;  %v4013_v44 = vpop.f32.mrb[61].mxu0 }
0x24c8   :  { %v2894_v45 = vpop.f32.mrb[62].mxu0 }
0x24c9   :  { %2905 = vrot.lane.b32.xlu1 %v2892_v57, %s4569_s28  ;;  %v2791_v63 = vpop.f32.mrb[56].mxu1  ;;  %v4014_v46 = vpop.f32.mrb[63].mxu0  ;;  %v3549_v51 = vmul.f32 -1.442695, %v2892_v57 }
0x24ca   :  { %v2792_v48 = vadd.f32 %v5211_v35, %v2791_v63  ;;  %v4005_v49 = vpop.f32.mrb[57].mxu1  ;;  %v5447_v35 = vld [vmem:[%s5594_s9] ss:$0 sm:$0xff] }
0x24cb   :  { %v2794_v50 = vpop.f32.mrb[58].mxu1  ;;  %4301 = vpow2.f32 %v3549_v51 }
0x24cc   :  { %2804 = vrot.lane.b32.xlu0 %v2792_v48, %s4582_s5  ;;  %v4006_v11 = vpop.f32.mrb[59].mxu1  ;;  %v3544_v52 = vmul.f32 -1.442695, %v2792_v48 }
0x24ce   :  { %4303 = vpow2.f32 %v3544_v52 }
0x24d5   :  { %v4302_v59 = vpop.eup %4301 }
0x24d6   :  { %v2900_v54 = vadd.f32 1.0, %v4302_v59 }
0x24d8   :  { %v4304_v53 = vpop.eup %4303  ;;  %4305 = vrcp.f32 %v2900_v54 }
0x24d9   :  { %v2800_v55 = vadd.f32 1.0, %v4304_v53 }
0x24db   :  { %4307 = vrcp.f32 %v2800_v55  ;;  %v4133_v55 = vld [vmem:[%s5595_s10] sm:$0xff]  }
0x24e2   :  { %v4306_v56 = vpop.eup %4305 }
0x24e3   :  { %v2917_v16 = vsub.f32 1.0, %v4306_v56  ;;  %v2923_v17 = vmul.f32 %v4306_v56, %v5419_v28 }
0x24e5   :  { %v4308_v60 = vpop.eup %4307 }
0x24e6   :  { %v2814_v22 = vsub.f32 1.0, %v4308_v60  ;;  %v2820_v24 = vmul.f32 %v4308_v60, %v5428_v34 }
0x253b   :  { %v2906_v58 = vpop.permute.xlu1 %2905 }
0x253c   :  { %v2908_v38 = vmul.f32 %v4306_v56, %v2906_v58  ;;  %v4134_v56 = vld [vmem:[%s5595_s10 + $0x8] sm:$0xff]   ;;  %v4135_v58 = vld [vmem:[%s5595_s10 + $0x10] sm:$0xff]  }
0x253e   :  { %v2915_v1 = vadd.f32 %v5447_v35, %v2908_v38  ;;  %v2805_v5 = vpop.permute.xlu0 %2804 }
0x253f   :  { %v2807_v62 = vmul.f32 %v4308_v60, %v2805_v5 }
0x2540   :  { %4309 = vtanh.f32 %v2915_v1  ;;  %v4136_v1 = vld [vmem:[%s5595_s10 + $0x18] sm:$0xff]   ;;  %s4583_s10 = smov [#allocation19]  }
0x2541   :  { %2809 = vrot.lane.b32.xlu0 %v2807_v62, %s4569_s28 }
0x254a   :  { %v4310_v13 = vpop.eup %4309 }
0x254b   :  { %2919 = vrot.lane.b32.xlu1 %v4310_v13, %s4582_s5 }
0x25b3   :  { %v2810_v8 = vpop.permute.xlu0 %2809 }
0x25b4   :  { %v2812_v14 = vadd.f32 %v2810_v8, %v2792_v48 }
0x25b6   :  { %4311 = vtanh.f32 %v2812_v14 }
0x25bd   :  { %v2920_v12 = vpop.permute.xlu1 %2919 }
0x25be   :  { %v2922_v41 = vmul.f32 %v2920_v12, %v2917_v16 }
0x25c0   :  { %v4312_v18 = vpop.eup %4311  ;;  %v5470_v20 = vadd.f32 %v2923_v17, %v2922_v41 }
0x25c1   :  { %2816 = vrot.lane.b32.xlu0 %v4312_v18, %s4581_s22 }
0x25c2   :  { %v3043_v21 = vpack.c.bf16 %v5470_v20, %v5470_v20  ;;  %2926 = vrot.lane.b32.xlu1 %v5470_v20, %s4581_s22 }
0x25c5   :  { %3056 = vrot.lane.b32.xlu0 %v3043_v21, %s4581_s22 }
0x2633   :  { %v2817_v23 = vpop.permute.xlu0 %2816 }
0x2634   :  { %v2819_v25 = vmul.f32 %v2817_v23, %v2814_v22  ;;  %v2927_v26 = vpop.permute.xlu1 %2926 }
0x2636   :  { %v5479_v61 = vadd.f32 %v2820_v24, %v2819_v25 }
0x2637   :  { %v3057_v27 = vpop.permute.xlu0 %3056 }
0x2638   :  { %v2929_v28 = vsel %vm294_vm3, %v2927_v26, %v5479_v61  ;;  %4032 = vmatmul.mubr.msk.bf16.vlgmr.msra.gmra.mrb[60].mxu1 %vm294_vm3, %v3057_v27 }
0x2639   :  { %v2930_v29 = vpack.c.bf16 %v2929_v28, %v2929_v28  ;;  %4043 = vmatprep.mubr.msk.bf16.mxu1 %vm4579_vm0, %v4578_v0  ;;  %4036 = vmatpush3.bf16.msra.mxu1 %v4133_v55 }
0x263a   :  { %4037 = vmatprep.subr.bf16.mxu1 %v4578_v0 }
0x263b   :  { %4024 = vmatmul.mubr.msk.bf16.vlgmr.msra.gmra.mrb[64].mxu0 %vm419_vm4, %v2930_v29 }
0x263d   :  { %4038 = vmatpush3.bf16.msra.mxu1 %v4134_v56 }
0x263e   :  { %4039 = vmatprep.subr.bf16.mxu1 %v4578_v0 }
0x2641   :  { %4040 = vmatpush3.bf16.msra.mxu1 %v4135_v58 }
0x2642   :  { %4041 = vmatprep.subr.bf16.mxu1 %v4578_v0 }
0x2645   :  { %4042 = vmatpush3.bf16.msra.mxu1 %v4136_v1 }
0x270b   :  { %v3107_v30 = vpop.f32.mrb[60].mxu1 }
0x270c   :  { %v3108_v31 = vadd.f32 %v5438_v40, %v3107_v30  ;;  %v4033_v32 = vpop.f32.mrb[61].mxu1 }
0x270d   :  { %v3110_v6 = vpop.f32.mrb[62].mxu1  ;;  %v4137_v32 = vld [vmem:[#allocation16] sm:$0xff]  }
0x270e   :  { %v3007_v36 = vpop.f32.mrb[64].mxu0  ;;  %3121 = vrot.lane.b32.xlu0 %v3108_v31, %s4569_s28  ;;  %v4034_v37 = vpop.f32.mrb[63].mxu1  ;;  %v3562_v45 = vmul.f32 -1.442695, %v3108_v31  ;;  %4047 = vmatprep.subr.bf16.mxu0 %v4137_v32 }
0x270f   :  { %v3008_v39 = vadd.f32 %v5491_v33, %v3007_v36  ;;  %v4025_v19 = vpop.f32.mrb[65].mxu0  ;;  %4048 = vmatpush3.bf16.msra.mxu0 %v4137_v32 }
0x2710   :  { %v3010_v57 = vpop.f32.mrb[66].mxu0  ;;  %4313 = vpow2.f32 %v3562_v45 }
0x2711   :  { %3020 = vrot.lane.b32.xlu1 %v3008_v39, %s4582_s5  ;;  %v4026_v44 = vpop.f32.mrb[67].mxu0  ;;  %v3557_v40 = vmul.f32 -1.442695, %v3008_v39 }
0x2713   :  { %4315 = vpow2.f32 %v3557_v40 }
0x271a   :  { %v4314_v63 = vpop.eup %4313 }
0x271b   :  { %v3116_v48 = vadd.f32 1.0, %v4314_v63 }
0x271d   :  { %v4316_v46 = vpop.eup %4315  ;;  %4317 = vrcp.f32 %v3116_v48 }
0x271e   :  { %v3016_v49 = vadd.f32 1.0, %v4316_v46 }
0x2720   :  { %4319 = vrcp.f32 %v3016_v49 }
0x2727   :  { %v4318_v50 = vpop.eup %4317 }
0x2728   :  { %v3133_v5 = vsub.f32 1.0, %v4318_v50  ;;  %v3139_v47 = vmul.f32 %v4318_v50, %v5470_v20 }
0x272a   :  { %v4320_v52 = vpop.eup %4319 }
0x272b   :  { %v3030_v42 = vsub.f32 1.0, %v4320_v52  ;;  %v3036_v0 = vmul.f32 %v4320_v52, %v5479_v61 }
0x2780   :  { %v3122_v11 = vpop.permute.xlu0 %3121 }
0x2781   :  { %v3124_v51 = vmul.f32 %v4318_v50, %v3122_v11 }
0x2783   :  { %v3131_v59 = vadd.f32 %v5447_v35, %v3124_v51  ;;  %v3021_v53 = vpop.permute.xlu1 %3020 }
0x2784   :  { %v3023_v54 = vmul.f32 %v4320_v52, %v3021_v53 }
0x2785   :  { %4321 = vtanh.f32 %v3131_v59 }
0x2786   :  { %3025 = vrot.lane.b32.xlu1 %v3023_v54, %s4569_s28 }
0x278f   :  { %v4322_v35 = vpop.eup %4321 }
0x2790   :  { %3135 = vrot.lane.b32.xlu0 %v4322_v35, %s4582_s5 }
0x27f8   :  { %v3026_v38 = vpop.permute.xlu1 %3025 }
0x27f9   :  { %v3028_v60 = vadd.f32 %v3026_v38, %v3008_v39 }
0x27fb   :  { %4323 = vtanh.f32 %v3028_v60 }
0x2802   :  { %v3136_v62 = vpop.permute.xlu0 %3135 }
0x2803   :  { %v3138_v3 = vmul.f32 %v3136_v62, %v3133_v5 }
0x2805   :  { %v4324_v10 = vpop.eup %4323  ;;  %v3140_v13 = vadd.f32 %v3139_v47, %v3138_v3 }
0x2806   :  { %3032 = vrot.lane.b32.xlu1 %v4324_v10, %s4581_s22 }
0x2807   :  { %3142 = vrot.lane.b32.xlu0 %v3140_v13, %s4581_s22 }
0x2878   :  { %v3033_v8 = vpop.permute.xlu1 %3032 }
0x2879   :  { %v3035_v43 = vmul.f32 %v3033_v8, %v3030_v42  ;;  %v3143_v14 = vpop.permute.xlu0 %3142 }
0x287a   :  { %3379 = vst.msk [vmem:[#allocation19] sm:$0xff] %vm294_vm3, %v3143_v14 }
0x287b   :  { %v3037_v15 = vadd.f32 %v3036_v0, %v3035_v43 }
0x287d   :  { %v3145_v16 = vsel %vm294_vm3, %v3143_v14, %v3037_v15 }
0x287e   :  { %v3146_v12 = vpack.c.bf16 %v3145_v16, %v3145_v16 }
0x2880   :  { %4044 = vmatmul.mubr.msk.bf16.vlgmr.msra.gmra.mrb[64].mxu1 %vm419_vm4, %v3146_v12 }
0x2953   :  { %v3223_v17 = vpop.f32.mrb[64].mxu1 }
0x2954   :  { %v3224_v41 = vadd.f32 %v5491_v33, %v3223_v17  ;;  %v4045_v18 = vpop.f32.mrb[65].mxu1 }
0x2955   :  { %v3226_v20 = vpop.f32.mrb[66].mxu1 }
0x2956   :  { %3236 = vrot.lane.b32.xlu1 %v3224_v41, %s4582_s5  ;;  %v4046_v21 = vpop.f32.mrb[67].mxu1  ;;  %v3570_v22 = vmul.f32 -1.442695, %v3224_v41 }
0x2958   :  { %4325 = vpow2.f32 %v3570_v22 }
0x2962   :  { %v4326_v23 = vpop.eup %4325 }
0x2963   :  { %v3232_v24 = vadd.f32 1.0, %v4326_v23 }
0x2965   :  { %4327 = vrcp.f32 %v3232_v24 }
0x296f   :  { %v4328_v25 = vpop.eup %4327 }
0x2970   :  { %v3246_v6 = vsub.f32 1.0, %v4328_v25  ;;  %v3252_v37 = vmul.f32 %v4328_v25, %v3037_v15 }
0x29c8   :  { %v3237_v26 = vpop.permute.xlu1 %3236 }
0x29c9   :  { %v3239_v27 = vmul.f32 %v4328_v25, %v3237_v26 }
0x29cb   :  { %3241 = vrot.lane.b32.xlu0 %v3239_v27, %s4569_s28  ;;  %s3399_s28 = sshll.u32 %s4583_s10, 4  ;;  %s3400_s28 = int_to_ptr.vmem [resolvable:$true] %s3399_s28 }
0x29cc   :  { %p4515_p9 = scmp.lt.s32.totalorder %s3400_s28, %s3400_s28 }
0x29cf   :  { %1743 = vrot.lane.b32.xlu0 %v5248_v7, %s4581_s22 }
0x29d3   :  { %2175 = vrot.lane.b32.xlu0 %v5338_v9, %s4581_s22  ;;  %v4138_v9 = vld [vmem:[#allocation16 + $0x8] sm:$0xff]  }
0x29d4   :  { %4049 = vmatprep.subr.bf16.mxu0 %v4138_v9 }
0x29d5   :  { %4050 = vmatpush3.bf16.msra.mxu0 %v4138_v9 }
0x29d7   :  { %2607 = vrot.lane.b32.xlu0 %v5428_v34, %s4581_s22 }
0x29db   :  { %3039 = vrot.lane.b32.xlu0 %v3037_v15, %s4581_s22 }
0x2a3d   :  { %v3242_v28 = vpop.permute.xlu0 %3241 }
0x2a3e   :  { %v3244_v29 = vadd.f32 %v3242_v28, %v3224_v41 }
0x2a40   :  { %4329 = vtanh.f32 %v3244_v29 }
0x2a41   :  { %v1744_v30 = vpop.permute.xlu0 %1743 }
0x2a42   :  { %1746 = vst.msk [vmem:[#allocation3] sm:$0xff] %vm294_vm3, %v1744_v30 }
0x2a45   :  { %v2176_v31 = vpop.permute.xlu0 %2175 }
0x2a46   :  { %2178 = vst.msk [vmem:[#allocation3 + $0x10] sm:$0xff] %vm294_vm3, %v2176_v31 }
0x2a49   :  { %v2608_v7 = vpop.permute.xlu0 %2607  ;;  %v3259_v45 = vld [vmem:[#allocation3] sm:$0xff] }
0x2a4a   :  { %v4330_v33 = vpop.eup %4329  ;;  %2610 = vst.msk [vmem:[#allocation3 + $0x20] sm:$0xff] %vm294_vm3, %v2608_v7 }
0x2a4b   :  { %3248 = vrot.lane.b32.xlu1 %v4330_v33, %s4581_s22 }
0x2a4d   :  { %v3040_v34 = vpop.permute.xlu0 %3039 }
0x2a4e   :  { %3042 = vst.msk [vmem:[#allocation3 + $0x30] sm:$0xff] %vm294_vm3, %v3040_v34 }
0x2a4f   :  { %1959 = vrot.lane.b32.xlu1 %v5293_v4, %s4581_s22 }
0x2a51   :  { %v3263_v48 = vld [vmem:[#allocation3 + $0x20] sm:$0xff] }
0x2a53   :  { %2391 = vrot.lane.b32.xlu1 %v5383_v2, %s4581_s22 }
0x2a55   :  { %v3265_v51 = vld [vmem:[#allocation3 + $0x30] sm:$0xff] }
0x2a57   :  { %2823 = vrot.lane.b32.xlu1 %v5479_v61, %s4581_s22  ;;  %v3261_v61 = vld [vmem:[#allocation3 + $0x10] sm:$0xff] }
0x2abd   :  { %v3249_v36 = vpop.permute.xlu1 %3248 }
0x2abe   :  { %v3251_v39 = vmul.f32 %v3249_v36, %v3246_v6 }
0x2ac0   :  { %v3253_v19 = vadd.f32 %v3252_v37, %v3251_v39 }
0x2ac1   :  { %v1960_v57 = vpop.permute.xlu1 %1959 }
0x2ac2   :  { %1962 = vst.msk [vmem:[#allocation3 + $0x8] sm:$0xff] %vm294_vm3, %v1960_v57  ;;  %3255 = vrot.lane.b32.xlu1 %v3253_v19, %s4581_s22  ;;  %s4510_s22 = scalar_lea.vmem %s3400_s28, 256 }
0x2ac3   :  { %p4511_p8 = scmp.ne.s32.totalorder %s3400_s28, %s4510_s22  ;;  %p4516_p10 = scmp.lt.s32.totalorder %s4510_s22, %s4510_s22 }
0x2ac5   :  { %v2392_v44 = vpop.permute.xlu1 %2391  ;;  %p4517_p11 = por %p4516_p10, %p4515_p9 }
0x2ac6   :  { %2394 = vst.msk [vmem:[#allocation3 + $0x18] sm:$0xff] %vm294_vm3, %v2392_v44 }
0x2ac7   :  { %p4518_p12 = pnand %p4517_p11, %p4511_p8 }
0x2ac9   :  { %v2824_v4 = vpop.permute.xlu1 %2823  ;;  %v3260_v40 = vld [vmem:[#allocation3 + $0x8] sm:$0xff] }
0x2aca   :  { %2826 = vst.msk [vmem:[#allocation3 + $0x28] sm:$0xff] %vm294_vm3, %v2824_v4  ;;  %v3267_v2 = vpack.c.bf16 %v3260_v40, %v3259_v45 }
0x2acc   :  { %4051 = vmatprep.mubr.msk.bf16.mxu0 %vm294_vm3, %v3267_v2 }
0x2acd   :  { %v3262_v63 = vld [vmem:[#allocation3 + $0x18] sm:$0xff] }
0x2ace   :  { %v3268_v46 = vpack.c.bf16 %v3262_v63, %v3261_v61 }
0x2ad0   :  { %4052 = vmatmul.mubr.msk.bf16.vlgmr.msra.gmra.mrb[68].mxu0 %vm294_vm3, %v3268_v46 }
0x2ad1   :  { %v3264_v49 = vld [vmem:[#allocation3 + $0x28] sm:$0xff] }
0x2ad2   :  { %v3269_v50 = vpack.c.bf16 %v3264_v49, %v3263_v48 }
0x2ad4   :  { %4055 = vmatprep.mubr.msk.bf16.mxu0 %vm294_vm3, %v3269_v50 }
0x2b34   :  { %v3256_v11 = vpop.permute.xlu1 %3255 }
0x2b35   :  { %3258 = vst.msk [vmem:[#allocation3 + $0x38] sm:$0xff] %vm294_vm3, %v3256_v11  ;;  %3381 = vst.msk [vmem:[#allocation19 + $0x8] sm:$0xff] %vm294_vm3, %v3256_v11 }
0x2b3c   :  { %v3266_v52 = vld [vmem:[#allocation3 + $0x38] sm:$0xff] }
0x2b3d   :  { %v3270_v59 = vpack.c.bf16 %v3266_v52, %v3265_v51 }
0x2b3f   :  { %4056 = vmatmul.mubr.msk.bf16.gmra.mrb[72].mxu0 %vm294_vm3, %v3270_v59 }
0x2b40   :  { %4521 = shalt.err (!%p4518_p12)
}
0x2b41   :  { %s4522_s17 = scalar_lea.hbm %s5600_s15, 256 }
0x2b42   :  { %p4523_p13 = scmp.ne.s32.totalorder %s5600_s15, %s4522_s17  ;;  %p4526_p0 = scmp.lt.u32.totalorder %s4522_s17, %s5600_s15 }
0x2b44   :  { %p4528_p1 = pnand %p4526_p0, %p4523_p13 }
0x2b46   :  { %4531 = shalt.err (!%p4528_p1)
}
0x2b47   :  { %s4584_s12 = smov 128   ;;  %s4585_s29 = smov 8   ;;  %v3571_v53 = vld [vmem:[%s5598_s13] ss:$0 sm:$0xff] }
0x2b48   :  { %3405 = dma.vmem_to_hbm [thread:$0]  %s3400_s28, 256, %s5600_s15, [#allocation20], %s4584_s12, %s4584_s12, %s4585_s29  }
0x2b49   :  { %s4586_s15 = smov [#allocation18]  }
0x2b4a   :  { %s3387_s21 = sshll.u32 %s4586_s15, 4  ;;  %s3388_s21 = int_to_ptr.vmem [resolvable:$true] %s3387_s21 }
0x2b4b   :  { %s4532_s13 = scalar_lea.vmem %s3388_s21, 1024  ;;  %p4537_p3 = scmp.lt.s32.totalorder %s3388_s21, %s3388_s21 }
0x2b4c   :  { %p4533_p2 = scmp.ne.s32.totalorder %s3388_s21, %s4532_s13  ;;  %p4538_p4 = scmp.lt.s32.totalorder %s4532_s13, %s4532_s13 }
0x2b4e   :  { %p4539_p5 = por %p4538_p4, %p4537_p3 }
0x2b50   :  { %p4540_p6 = pnand %p4539_p5, %p4533_p2 }
0x2ba3   :  { %v4053_v54 = vpop.f32.mrb[68].mxu0 }
0x2ba4   :  { %v3349_v55 = vadd.f32 %v4053_v54, %v3571_v53  ;;  %v3340_v56 = vpop.f32.mrb[69].mxu0 }
0x2ba5   :  { %v3341_v35 = vadd.f32 %v3571_v53, %v3340_v56  ;;  %v4054_v58 = vpop.f32.mrb[70].mxu0 }
0x2ba6   :  { %3373 = vst [vmem:[#allocation18 + $0x10] sm:$0xff] %v3349_v55  ;;  %v3352_v38 = vadd.f32 %v4054_v58, %v3571_v53  ;;  %v3343_v60 = vpop.f32.mrb[71].mxu0 }
0x2ba7   :  { %3371 = vst [vmem:[#allocation18] sm:$0xff] %v3341_v35  ;;  %v3344_v1 = vadd.f32 %v3571_v53, %v3343_v60 }
0x2ba8   :  { %3374 = vst [vmem:[#allocation18 + $0x18] sm:$0xff] %v3352_v38 }
0x2ba9   :  { %3372 = vst [vmem:[#allocation18 + $0x8] sm:$0xff] %v3344_v1 }
0x2c12   :  { %v4057_v5 = vpop.f32.mrb[72].mxu0 }
0x2c13   :  { %v3365_v62 = vadd.f32 %v4057_v5, %v3571_v53  ;;  %v3356_v47 = vpop.f32.mrb[73].mxu0 }
0x2c14   :  { %v3357_v3 = vadd.f32 %v3571_v53, %v3356_v47  ;;  %v4058_v10 = vpop.f32.mrb[74].mxu0 }
0x2c15   :  { %3377 = vst [vmem:[#allocation18 + $0x30] sm:$0xff] %v3365_v62  ;;  %v3368_v13 = vadd.f32 %v4058_v10, %v3571_v53  ;;  %v3359_v42 = vpop.f32.mrb[75].mxu0 }
0x2c16   :  { %3375 = vst [vmem:[#allocation18 + $0x20] sm:$0xff] %v3357_v3  ;;  %v3360_v8 = vadd.f32 %v3571_v53, %v3359_v42 }
0x2c17   :  { %3378 = vst [vmem:[#allocation18 + $0x38] sm:$0xff] %v3368_v13 }
0x2c18   :  { %3376 = vst [vmem:[#allocation18 + $0x28] sm:$0xff] %v3360_v8 }
0x2c19   :  { %4543 = shalt.err (!%p4540_p6)
}
0x2c1a   :  { %s5603_s6 = sld [smem:[#allocation28_spill]] }
0x2c20   :  { %s4544_s23 = scalar_lea.hbm %s5603_s6, 1024 }
0x2c21   :  { %p4545_p7 = scmp.ne.s32.totalorder %s5603_s6, %s4544_s23  ;;  %p4548_p8 = scmp.lt.u32.totalorder %s4544_s23, %s5603_s6 }
0x2c23   :  { %p4550_p9 = pnand %p4548_p8, %p4545_p7 }
0x2c25   :  { %4553 = shalt.err (!%p4550_p9)
}
0x2c26   :  { %3393 = dma.vmem_to_hbm [thread:$0]  %s3388_s21, 1024, %s5603_s6, [#allocation6], %s4584_s12, %s4584_s12, %s4585_s29  }
0x2c27   :  { %4564 = dma.done.wait [#allocation6], 1024  }
0x2c28   :  { %4565 = vsyncadd [#allocation6], 4294966272 }
0x2c29   :  { %4566 = dma.done.wait [#allocation20], 256  }
0x2c2a   :  { %4567 = vsyncadd [#allocation20], 4294967040 }
0x2c2b   :  { %3412 = vsyncpa [#allocation5], 1 }
0x2c2c   :  { %3413 = vsyncpa [#allocation8], 1 }
0x2c2d   :  { %3414 = vsyncpa [#allocation11], 1 }
0x2c2e   :  { %3415 = vsyncpa [#allocation14], 1 }
0x2c2f   :  { %3416 = vsyncpa [#allocation17], 1 }
0x2c30   :  { %3417 = vsyncpa [#allocation6], 1 }
0x2c31   :  { %3418 = vsyncpa [#allocation20], 1 }

</bundles_post_ra>
